<compile_context>
chip_gen: v7x
topology: tpu7x:2x2x1
jax: 0.10.0
libtpu: 0.0.40
codegen_flags: <defaults>
</compile_context>

<pallas_src>
import functools

import jax
import jax.numpy as jnp
from jax.experimental import pallas as pl
from jax.experimental.pallas import tpu as pltpu


# ----------------------------- in-kernel helpers ----------------------------

def _pad_axis(x, axis, before, after, val):
    if before == 0 and after == 0:
        return x
    parts = []
    if before:
        shp = list(x.shape)
        shp[axis] = before
        parts.append(jnp.full(shp, val, x.dtype))
    parts.append(x)
    if after:
        shp = list(x.shape)
        shp[axis] = after
        parts.append(jnp.full(shp, val, x.dtype))
    return jnp.concatenate(parts, axis=axis)


def _pad_hw(x, before, after, val):
    """Pad the two spatial dims (-3: rows, -2: cols) of a (..., H, W, C) value."""
    x = _pad_axis(x, x.ndim - 3, before, after, val)
    x = _pad_axis(x, x.ndim - 2, before, after, val)
    return x


def _dw_specific_stride2(x_ph, dw_ref, *, k, p, ho):
    """Depthwise conv, stride 2, with NASNet 'specific' ZeroPad2d((1,0,1,0)) and
    the [1:, 1:] crop folded in.  x_ph: (2, 2, ho, ho, C) phase-split (ReLU'd)
    input (phases of the 2*ho x 2*ho map).  dw_ref: (k*k, C).  Result tap for
    output (h, w) is x[2h + kh + 1 - p, 2w + kw + 1 - p] (zero outside)."""
    pb = -((1 - p) // 2)           # zero rows needed before each phase
    pa = (k - p) // 2              # zero rows needed after each phase
    xpad = _pad_hw(x_ph, pb, pa, 0.0)
    acc = None
    for kw in range(k):            # width shift hoisted: k sublane slices total
        qw, rw = (kw + 1 - p) // 2, (kw + 1 - p) % 2
        slab = xpad[:, rw, :, pb + qw:pb + qw + ho, :]      # (2, Hp, ho, C)
        for kh in range(k):
            qh, rh = (kh + 1 - p) // 2, (kh + 1 - p) % 2
            tap = slab[rh, pb + qh:pb + qh + ho, :, :]      # (ho, ho, C), free slice
            term = tap * dw_ref[kh * k + kw:kh * k + kw + 1, :]
            acc = term if acc is None else acc + term
    return acc


def _dw_stride1(x_sp, dw_ref, *, k, p, ho):
    """Plain depthwise conv, stride 1, zero padding p (k == 2p+1).  x_sp: (ho,ho,C)."""
    xpad = _pad_hw(x_sp, p, p, 0.0)
    acc = None
    for kw in range(k):
        slab = xpad[:, kw:kw + ho, :]                       # sublane slice (k of them)
        for kh in range(k):
            term = slab[kh:kh + ho, :, :] * dw_ref[kh * k + kw:kh * k + kw + 1, :]
            acc = term if acc is None else acc + term
    return acc


def _branch_tail(acc1, pw1_ref, sb1_ref, dw2_ref, pw2_ref, sb2_ref, *, k, p, ho):
    """pointwise-1 -> bn1 -> relu -> depthwise-2 (stride 1, pad p) -> pointwise-2 -> bn2.
    acc1: (ho, ho, C) output of the first depthwise conv.  Returns (ho*ho, C)."""
    c = acc1.shape[-1]
    y = jnp.dot(acc1.reshape(ho * ho, c), pw1_ref[...],
                preferred_element_type=jnp.float32)
    y = jnp.maximum(y * sb1_ref[0:1, :] + sb1_ref[1:2, :], 0.0)
    acc2 = _dw_stride1(y.reshape(ho, ho, c), dw2_ref, k=k, p=p, ho=ho)
    z = jnp.dot(acc2.reshape(ho * ho, c), pw2_ref[...],
                preferred_element_type=jnp.float32)
    return z * sb2_ref[0:1, :] + sb2_ref[1:2, :]


def _pool_pad_3x3_s2(x_ph, ho):
    """MaxPoolPad / AvgPoolPad bodies (3x3, stride 2, ZeroPad2d((1,0,1,0)), crop).
    x_ph: (2,2,ho,ho,C).  Returns (max, window-sum); the caller applies the
    count_include_pad=False reciprocal divisors to the sum."""
    neg = float(jnp.finfo(jnp.float32).min)
    xpad_m = _pad_hw(x_ph, 0, 1, neg)
    xpad_a = _pad_hw(x_ph, 0, 1, 0.0)
    mx, sm = None, None
    for kw in range(3):
        qw, rw = kw // 2, kw % 2
        slab_m = xpad_m[:, rw, :, qw:qw + ho, :]
        slab_a = xpad_a[:, rw, :, qw:qw + ho, :]
        for kh in range(3):
            qh, rh = kh // 2, kh % 2
            tm = slab_m[rh, qh:qh + ho, :, :]
            ta = slab_a[rh, qh:qh + ho, :, :]
            mx = tm if mx is None else jnp.maximum(mx, tm)
            sm = ta if sm is None else sm + ta
    return mx, sm


def _avg_3x3_s1_sum(x_sp, ho):
    """3x3 / stride-1 / zero-pad-1 window sum (divisors applied by the caller)."""
    xpad = _pad_hw(x_sp, 1, 1, 0.0)
    sm = None
    for kw in range(3):
        slab = xpad[:, kw:kw + ho, :]
        for kh in range(3):
            t = slab[kh:kh + ho, :, :]
            sm = t if sm is None else sm + t
    return sm


# ------------------------------- fused kernel -------------------------------

def _cell_stem1_kernel(xs0_ref, pcat_ref, rc_pool_ref, rc_ap0_ref,
                       wl_ref, sbl_ref, wr_ref, sbr_ref,
                       sdw1_ref, spw1_ref, ssb1_ref,
                       sdw2_ref, spw2_ref, ssb2_ref,
                       fdw1_ref, fpw1_ref, fsb1_ref,
                       fdw2_ref, fpw2_ref, fsb2_ref,
                       o_ref, *, nf, ho):
    c = nf
    hw = ho * ho

    # ---- x_left = conv_1x1(x_stem_0); x_right = final_path_bn([path_1|path_2]) ----
    # Inputs arrive phase-major: rows ordered (row-phase, col-phase, i, j).
    xl = (jnp.dot(jnp.maximum(xs0_ref[...], 0.0), wl_ref[...],
                  preferred_element_type=jnp.float32)
          * sbl_ref[0:1, :] + sbl_ref[1:2, :])                      # (4*hw, nf)
    xr = (jnp.dot(jnp.maximum(pcat_ref[...], 0.0), wr_ref[...],
                  preferred_element_type=jnp.float32)
          * sbr_ref[0:1, :] + sbr_ref[1:2, :])                      # (4*hw, nf)

    xl_relu = jnp.maximum(xl, 0.0)
    xr_relu = jnp.maximum(xr, 0.0)

    # ---- channel-stacked stride-2 branches: [b0r(7), b1r(7), b2r(5), b0l(5)] ----
    # (5x5 branches are zero-embedded in the 7x7/pad-3 frame; pointwise weights
    #  are block-diagonal, so the four branches stay independent.)
    xcat = jnp.concatenate([xr_relu, xr_relu, xr_relu, xl_relu], axis=-1)   # (4hw, 4nf)
    xcat_ph = xcat.reshape(2, 2, ho, ho, 4 * c)
    s_acc = _dw_specific_stride2(xcat_ph, sdw1_ref, k=7, p=3, ho=ho)
    s_out = _branch_tail(s_acc, spw1_ref, ssb1_ref, sdw2_ref, spw2_ref, ssb2_ref,
                         k=7, p=3, ho=ho)                                   # (hw, 4nf)

    r0r = s_out[:, 0 * c:1 * c]     # comb_iter_0_right
    r1 = s_out[:, 1 * c:2 * c]      # comb_iter_1_right
    r2 = s_out[:, 2 * c:3 * c]      # comb_iter_2_right
    r0l = s_out[:, 3 * c:4 * c]     # comb_iter_0_left
    comb0 = r0l + r0r               # x_comb_iter_0, (hw, nf)

    # ---- comb_iter_4_left: BranchSeparables 3x3 / stride 1 on x_comb_iter_0 ----
    comb0_sp = comb0.reshape(ho, ho, c)
    f_acc = _dw_stride1(jnp.maximum(comb0_sp, 0.0), fdw1_ref, k=3, p=1, ho=ho)
    l4 = _branch_tail(f_acc, fpw1_ref, fsb1_ref, fdw2_ref, fpw2_ref, fsb2_ref,
                      k=3, p=1, ho=ho)                                      # (hw, nf)

    # ---- MaxPoolPad / AvgPoolPad on x_left (shared by comb_iter_1 / 2 / 4) ----
    xl_ph = xl.reshape(2, 2, ho, ho, c)
    mx, av_sum = _pool_pad_3x3_s2(xl_ph, ho)
    av = av_sum * rc_pool_ref[...]

    # ---- comb_iter_3_right: AvgPool2d(3, stride 1, count_include_pad=False) ----
    ap0 = _avg_3x3_s1_sum(comb0_sp, ho) * rc_ap0_ref[...]

    # ---- combine + single lane-concatenated store ----
    mx_f = mx.reshape(hw, c)
    av_f = av.reshape(hw, c)
    ap0_f = ap0.reshape(hw, c)
    comb1 = mx_f + r1
    comb2 = av_f + r2
    comb3 = ap0_f + comb1
    comb4 = l4 + mx_f               # comb_iter_4_right = MaxPoolPad(x_left) per spec
    o_ref[...] = jnp.concatenate([comb1, comb2, comb3, comb4],
                                 axis=-1).astype(o_ref.dtype)


# ------------------------------- parameters ---------------------------------

def bn_fold(gamma, beta, mean, var, eps=1e-3):
    scale = gamma / jnp.sqrt(var + eps)
    bias = beta - mean * scale
    return scale, bias


class _ParamGen:
    def __init__(self, key):
        self.key = key

    def next(self, shape, scale=0.1):
        self.key, sub = jax.random.split(self.key)
        return (scale * jax.random.normal(sub, shape)).astype(jnp.float32)


def _make_branch(gen, c, k):
    d = {'k': k}
    d['dw1'] = gen.next((k, k, c))
    d['pw1'] = gen.next((c, c))
    d['bn1'] = bn_fold(1.0 + gen.next((c,)), gen.next((c,)), jnp.zeros(c), jnp.ones(c))
    d['dw2'] = gen.next((k, k, c))
    d['pw2'] = gen.next((c, c))
    d['bn2'] = bn_fold(1.0 + gen.next((c,)), gen.next((c,)), jnp.zeros(c), jnp.ones(c))
    return d


def _embed_center(w, kb):
    """Zero-embed a (k,k,C) depthwise kernel into the center of a (kb,kb,C) one."""
    k = w.shape[0]
    off = (kb - k) // 2
    out = jnp.zeros((kb, kb, w.shape[-1]), w.dtype)
    return out.at[off:off + k, off:off + k, :].set(w)


def _block_diag(mats):
    rows = sum(m.shape[0] for m in mats)
    cols = sum(m.shape[1] for m in mats)
    out = jnp.zeros((rows, cols), mats[0].dtype)
    r = c = 0
    for m in mats:
        out = out.at[r:r + m.shape[0], c:c + m.shape[1]].set(m)
        r += m.shape[0]
        c += m.shape[1]
    return out


def make_params(stem_filters, num_filters, key):
    gen = _ParamGen(key)
    nf = num_filters
    half = nf // 2
    p = {'nf': nf, 'stem': stem_filters}

    # conv_1x1 on x_stem_0: ReLU -> 1x1 conv (2nf -> nf) -> BN (eval, folded).
    p['wl'] = gen.next((2 * nf, nf))
    s, b = bn_fold(1.0 + gen.next((nf,)), gen.next((nf,)), jnp.zeros(nf), jnp.ones(nf))
    p['sbl'] = jnp.stack([s, b])

    # path_1 / path_2 1x1 convs fused as one block-diagonal matmul + final_path_bn.
    path1_w = gen.next((stem_filters, half))
    path2_w = gen.next((stem_filters, half))
    wr = jnp.zeros((2 * stem_filters, nf), jnp.float32)
    wr = wr.at[:stem_filters, :half].set(path1_w)
    wr = wr.at[stem_filters:, half:].set(path2_w)
    p['wr'] = wr
    s, b = bn_fold(1.0 + gen.next((nf,)), gen.next((nf,)), jnp.zeros(nf), jnp.ones(nf))
    p['sbr'] = jnp.stack([s, b])

    # BranchSeparables.  Stacked group slot order: [b0r(7), b1r(7), b2r(5), b0l(5)].
    b0l = _make_branch(gen, nf, 5)
    b0r = _make_branch(gen, nf, 7)
    b1r = _make_branch(gen, nf, 7)
    b2r = _make_branch(gen, nf, 5)
    b4l = _make_branch(gen, nf, 3)
    group = [b0r, b1r, b2r, b0l]
    p['sdw1'] = jnp.concatenate(
        [_embed_center(g['dw1'], 7).reshape(49, nf) for g in group], axis=-1)
    p['sdw2'] = jnp.concatenate(
        [_embed_center(g['dw2'], 7).reshape(49, nf) for g in group], axis=-1)
    p['spw1'] = _block_diag([g['pw1'] for g in group])
    p['spw2'] = _block_diag([g['pw2'] for g in group])
    p['ssb1'] = jnp.stack([jnp.concatenate([g['bn1'][0] for g in group]),
                           jnp.concatenate([g['bn1'][1] for g in group])])
    p['ssb2'] = jnp.stack([jnp.concatenate([g['bn2'][0] for g in group]),
                           jnp.concatenate([g['bn2'][1] for g in group])])

    # comb_iter_4_left (3x3, stride 1).
    p['fdw1'] = b4l['dw1'].reshape(9, nf)
    p['fdw2'] = b4l['dw2'].reshape(9, nf)
    p['fpw1'] = b4l['pw1']
    p['fpw2'] = b4l['pw2']
    p['fsb1'] = jnp.stack(list(b4l['bn1']))
    p['fsb2'] = jnp.stack(list(b4l['bn2']))
    return p


# --------------------------------- forward ----------------------------------

def cell_stem_1_forward(x_conv0, x_stem_0, params):
    nf = params['nf']
    xc = jnp.transpose(x_conv0, (0, 2, 3, 1)).astype(jnp.float32)   # NCHW -> NHWC
    xs = jnp.transpose(x_stem_0, (0, 2, 3, 1)).astype(jnp.float32)
    n, h, w, stem = xc.shape
    assert h == w and h % 4 == 0, "spatial size must be a multiple of 4"
    assert xs.shape == (n, h // 2, w // 2, 2 * nf)
    ho = h // 4
    hw = ho * ho

    # path_1 / path_2 inputs: AvgPool2d(1, stride 2) == subsampling (ReLU in-kernel).
    pcat = jnp.concatenate([xc[:, 0::2, 0::2, :], xc[:, 1::2, 1::2, :]], axis=-1)

    def phase_major(x):
        b, hh, ww, cc = x.shape
        x = x.reshape(b, hh // 2, 2, ww // 2, 2, cc)
        x = jnp.transpose(x, (0, 2, 4, 1, 3, 5))      # (b, rh, rw, i, j, c)
        return x.reshape(b, hh * ww, cc)

    xs_ph = phase_major(xs)          # (n, 4*hw, 2*nf)
    pc_ph = phase_major(pcat)        # (n, 4*hw, 2*stem)

    # count_include_pad=False reciprocal divisors (multiplies, not divides).
    idx = jnp.arange(ho, dtype=jnp.float32)
    c_pp = jnp.where(idx < ho - 1, 3.0, 2.0)                     # AvgPoolPad
    rc_pool = jnp.broadcast_to(
        (1.0 / (c_pp[:, None] * c_pp[None, :]))[:, :, None],
        (ho, ho, nf)).astype(jnp.float32)
    c_a0 = jnp.where((idx > 0) & (idx < ho - 1), 3.0, 2.0)       # AvgPool 3x3 s1
    rc_ap0 = jnp.broadcast_to(
        (1.0 / (c_a0[:, None] * c_a0[None, :]))[:, :, None],
        (ho, ho, nf)).astype(jnp.float32)

    ins = (xs_ph, pc_ph, rc_pool, rc_ap0,
           params['wl'], params['sbl'], params['wr'], params['sbr'],
           params['sdw1'], params['spw1'], params['ssb1'],
           params['sdw2'], params['spw2'], params['ssb2'],
           params['fdw1'], params['fpw1'], params['fsb1'],
           params['fdw2'], params['fpw2'], params['fsb2'])

    def batched(arr):
        nd = arr.ndim
        return pl.BlockSpec((None,) + arr.shape[1:],
                            lambda i, _nd=nd: (i,) + (0,) * (_nd - 1))

    def shared(arr):
        if arr.ndim == 2:
            return pl.BlockSpec(arr.shape, lambda i: (0, 0))
        return pl.BlockSpec(arr.shape, lambda i: (0, 0, 0))

    in_specs = [batched(xs_ph), batched(pc_ph)] + [shared(a) for a in ins[2:]]

    out = pl.pallas_call(
        functools.partial(_cell_stem1_kernel, nf=nf, ho=ho),
        out_shape=jax.ShapeDtypeStruct((n, hw, 4 * nf), jnp.float32),
        grid=(n,),
        in_specs=in_specs,
        out_specs=pl.BlockSpec((None, hw, 4 * nf), lambda i: (i, 0, 0)),
        compiler_params=pltpu.CompilerParams(dimension_semantics=("parallel",)),
    )(*ins)

    out = out.reshape(n, ho, ho, 4 * nf)
    return jnp.transpose(out, (0, 3, 1, 2))             # NHWC -> NCHW


# ----------------------------------- main ------------------------------------

if __name__ == "__main__":
    stem_filters, num_filters = 16, 16
    N, H, W = 2, 16, 16

    key = jax.random.PRNGKey(0)
    k_params, k_x0, k_xs = jax.random.split(key, 3)

    params = make_params(stem_filters, num_filters, k_params)
    # x_conv0: (N, stem_filters, H, W); x_stem_0: (N, 2*num_filters, H//2, W//2)
    x_conv0 = jax.random.normal(k_x0, (N, stem_filters, H, W), jnp.float32)
    x_stem_0 = jax.random.normal(k_xs, (N, 2 * num_filters, H // 2, W // 2),
                                 jnp.float32)

    fwd = jax.jit(functools.partial(cell_stem_1_forward, params=params))
    out = jax.block_until_ready(fwd(x_conv0, x_stem_0))

    expected_shape = (N, 4 * num_filters, H // 4, W // 4)
    assert out.shape == expected_shape, (out.shape, expected_shape)
    assert bool(jnp.all(jnp.isfinite(out)))
    print("KERNEL_OK")
</pallas_src>

<mosaic_0001>
module attributes {stable_mosaic.version = 11 : i64} {
  func.func @_cell_stem1_kernel(%arg0: i32, %arg1: memref<1x64x32xf32, #tpu.memory_space<vmem>>, %arg2: memref<1x64x32xf32, #tpu.memory_space<vmem>>, %arg3: memref<4x4x16xf32, #tpu.memory_space<vmem>>, %arg4: memref<4x4x16xf32, #tpu.memory_space<vmem>>, %arg5: memref<32x16xf32, #tpu.memory_space<vmem>>, %arg6: memref<2x16xf32, #tpu.memory_space<vmem>>, %arg7: memref<32x16xf32, #tpu.memory_space<vmem>>, %arg8: memref<2x16xf32, #tpu.memory_space<vmem>>, %arg9: memref<49x64xf32, #tpu.memory_space<vmem>>, %arg10: memref<64x64xf32, #tpu.memory_space<vmem>>, %arg11: memref<2x64xf32, #tpu.memory_space<vmem>>, %arg12: memref<49x64xf32, #tpu.memory_space<vmem>>, %arg13: memref<64x64xf32, #tpu.memory_space<vmem>>, %arg14: memref<2x64xf32, #tpu.memory_space<vmem>>, %arg15: memref<9x16xf32, #tpu.memory_space<vmem>>, %arg16: memref<16x16xf32, #tpu.memory_space<vmem>>, %arg17: memref<2x16xf32, #tpu.memory_space<vmem>>, %arg18: memref<9x16xf32, #tpu.memory_space<vmem>>, %arg19: memref<16x16xf32, #tpu.memory_space<vmem>>, %arg20: memref<2x16xf32, #tpu.memory_space<vmem>>, %arg21: memref<1x16x64xf32, #tpu.memory_space<vmem>>) attributes {dimension_semantics = [#tpu.dimension_semantics<parallel>], iteration_bounds = array<i64: 2>, scalar_prefetch = 0 : i64, scratch_operands = 0 : i64, tpu.core_type = #tpu.core_type<tc>, window_params = [{transform_indices = @transform_0, window_bounds = array<i64: 1, 64, 32>}, {transform_indices = @transform_1, window_bounds = array<i64: 1, 64, 32>}, {pipeline_mode = #tpu.pipeline_mode<synchronous>, transform_indices = @transform_2, window_bounds = array<i64: 4, 4, 16>}, {pipeline_mode = #tpu.pipeline_mode<synchronous>, transform_indices = @transform_3, window_bounds = array<i64: 4, 4, 16>}, {pipeline_mode = #tpu.pipeline_mode<synchronous>, transform_indices = @transform_4, window_bounds = array<i64: 32, 16>}, {pipeline_mode = #tpu.pipeline_mode<synchronous>, transform_indices = @transform_5, window_bounds = array<i64: 2, 16>}, {pipeline_mode = #tpu.pipeline_mode<synchronous>, transform_indices = @transform_6, window_bounds = array<i64: 32, 16>}, {pipeline_mode = #tpu.pipeline_mode<synchronous>, transform_indices = @transform_7, window_bounds = array<i64: 2, 16>}, {pipeline_mode = #tpu.pipeline_mode<synchronous>, transform_indices = @transform_8, window_bounds = array<i64: 49, 64>}, {pipeline_mode = #tpu.pipeline_mode<synchronous>, transform_indices = @transform_9, window_bounds = array<i64: 64, 64>}, {pipeline_mode = #tpu.pipeline_mode<synchronous>, transform_indices = @transform_10, window_bounds = array<i64: 2, 64>}, {pipeline_mode = #tpu.pipeline_mode<synchronous>, transform_indices = @transform_11, window_bounds = array<i64: 49, 64>}, {pipeline_mode = #tpu.pipeline_mode<synchronous>, transform_indices = @transform_12, window_bounds = array<i64: 64, 64>}, {pipeline_mode = #tpu.pipeline_mode<synchronous>, transform_indices = @transform_13, window_bounds = array<i64: 2, 64>}, {pipeline_mode = #tpu.pipeline_mode<synchronous>, transform_indices = @transform_14, window_bounds = array<i64: 9, 16>}, {pipeline_mode = #tpu.pipeline_mode<synchronous>, transform_indices = @transform_15, window_bounds = array<i64: 16, 16>}, {pipeline_mode = #tpu.pipeline_mode<synchronous>, transform_indices = @transform_16, window_bounds = array<i64: 2, 16>}, {pipeline_mode = #tpu.pipeline_mode<synchronous>, transform_indices = @transform_17, window_bounds = array<i64: 9, 16>}, {pipeline_mode = #tpu.pipeline_mode<synchronous>, transform_indices = @transform_18, window_bounds = array<i64: 16, 16>}, {pipeline_mode = #tpu.pipeline_mode<synchronous>, transform_indices = @transform_19, window_bounds = array<i64: 2, 16>}, {transform_indices = @transform_20, window_bounds = array<i64: 1, 16, 64>}]} {
    %c0 = arith.constant 0 : index
    %c0_0 = arith.constant 0 : index
    %c0_1 = arith.constant 0 : index
    %0 = vector.load %arg1[%c0, %c0_0, %c0_1] : memref<1x64x32xf32, #tpu.memory_space<vmem>>, vector<1x64x32xf32>
    %1 = vector.shape_cast %0 : vector<1x64x32xf32> to vector<64x32xf32>
    %cst = arith.constant 0.000000e+00 : f32
    %2 = vector.broadcast %cst : f32 to vector<64x32xf32>
    %3 = arith.maximumf %1, %2 : vector<64x32xf32>
    %c0_2 = arith.constant 0 : index
    %c0_3 = arith.constant 0 : index
    %4 = vector.load %arg5[%c0_2, %c0_3] : memref<32x16xf32, #tpu.memory_space<vmem>>, vector<32x16xf32>
    %cst_4 = arith.constant dense<0.000000e+00> : vector<64x16xf32>
    %5 = tpu.matmul %3, %4, %cst_4 {dimension_numbers = #tpu.dot_dimension_numbers<[1], [0], [0], [1], [0, 0, 1, 1], [], []>} : vector<64x32xf32>, vector<32x16xf32>, vector<64x16xf32> -> vector<64x16xf32>
    %c0_5 = arith.constant 0 : index
    %c0_6 = arith.constant 0 : index
    %6 = vector.load %arg6[%c0_5, %c0_6] : memref<2x16xf32, #tpu.memory_space<vmem>>, vector<1x16xf32>
    %7 = vector.broadcast %6 : vector<1x16xf32> to vector<64x16xf32>
    %8 = arith.mulf %5, %7 : vector<64x16xf32>
    %c1 = arith.constant 1 : index
    %c0_7 = arith.constant 0 : index
    %9 = vector.load %arg6[%c1, %c0_7] : memref<2x16xf32, #tpu.memory_space<vmem>>, vector<1x16xf32>
    %10 = vector.broadcast %9 : vector<1x16xf32> to vector<64x16xf32>
    %11 = arith.addf %8, %10 : vector<64x16xf32>
    %c0_8 = arith.constant 0 : index
    %c0_9 = arith.constant 0 : index
    %c0_10 = arith.constant 0 : index
    %12 = vector.load %arg2[%c0_8, %c0_9, %c0_10] : memref<1x64x32xf32, #tpu.memory_space<vmem>>, vector<1x64x32xf32>
    %13 = vector.shape_cast %12 : vector<1x64x32xf32> to vector<64x32xf32>
    %cst_11 = arith.constant 0.000000e+00 : f32
    %14 = vector.broadcast %cst_11 : f32 to vector<64x32xf32>
    %15 = arith.maximumf %13, %14 : vector<64x32xf32>
    %c0_12 = arith.constant 0 : index
    %c0_13 = arith.constant 0 : index
    %16 = vector.load %arg7[%c0_12, %c0_13] : memref<32x16xf32, #tpu.memory_space<vmem>>, vector<32x16xf32>
    %cst_14 = arith.constant dense<0.000000e+00> : vector<64x16xf32>
    %17 = tpu.matmul %15, %16, %cst_14 {dimension_numbers = #tpu.dot_dimension_numbers<[1], [0], [0], [1], [0, 0, 1, 1], [], []>} : vector<64x32xf32>, vector<32x16xf32>, vector<64x16xf32> -> vector<64x16xf32>
    %c0_15 = arith.constant 0 : index
    %c0_16 = arith.constant 0 : index
    %18 = vector.load %arg8[%c0_15, %c0_16] : memref<2x16xf32, #tpu.memory_space<vmem>>, vector<1x16xf32>
    %19 = vector.broadcast %18 : vector<1x16xf32> to vector<64x16xf32>
    %20 = arith.mulf %17, %19 : vector<64x16xf32>
    %c1_17 = arith.constant 1 : index
    %c0_18 = arith.constant 0 : index
    %21 = vector.load %arg8[%c1_17, %c0_18] : memref<2x16xf32, #tpu.memory_space<vmem>>, vector<1x16xf32>
    %22 = vector.broadcast %21 : vector<1x16xf32> to vector<64x16xf32>
    %23 = arith.addf %20, %22 : vector<64x16xf32>
    %cst_19 = arith.constant 0.000000e+00 : f32
    %24 = vector.broadcast %cst_19 : f32 to vector<64x16xf32>
    %25 = arith.maximumf %11, %24 : vector<64x16xf32>
    %cst_20 = arith.constant 0.000000e+00 : f32
    %26 = vector.broadcast %cst_20 : f32 to vector<64x16xf32>
    %27 = arith.maximumf %23, %26 : vector<64x16xf32>
    %28 = tpu.concatenate %27, %27, %27, %25 in 1 : vector<64x16xf32>, vector<64x16xf32>, vector<64x16xf32>, vector<64x16xf32> -> vector<64x64xf32>
    %29 = vector.shape_cast %28 : vector<64x64xf32> to vector<2x2x4x4x64xf32>
    %cst_21 = arith.constant 0.000000e+00 : f32
    %30 = vector.broadcast %cst_21 : f32 to vector<2x2x1x4x64xf32>
    %cst_22 = arith.constant 0.000000e+00 : f32
    %31 = vector.broadcast %cst_22 : f32 to vector<2x2x2x4x64xf32>
    %32 = tpu.concatenate %30, %29, %31 in 2 : vector<2x2x1x4x64xf32>, vector<2x2x4x4x64xf32>, vector<2x2x2x4x64xf32> -> vector<2x2x7x4x64xf32>
    %cst_23 = arith.constant 0.000000e+00 : f32
    %33 = vector.broadcast %cst_23 : f32 to vector<2x2x7x1x64xf32>
    %cst_24 = arith.constant 0.000000e+00 : f32
    %34 = vector.broadcast %cst_24 : f32 to vector<2x2x7x2x64xf32>
    %35 = tpu.concatenate %33, %32, %34 in 3 : vector<2x2x7x1x64xf32>, vector<2x2x7x4x64xf32>, vector<2x2x7x2x64xf32> -> vector<2x2x7x7x64xf32>
    %36 = vector.extract_strided_slice %35 {offsets = [0, 0, 0, 0, 0], sizes = [2, 1, 7, 4, 64], strides = [1, 1, 1, 1, 1]} : vector<2x2x7x7x64xf32> to vector<2x1x7x4x64xf32>
    %37 = vector.shape_cast %36 : vector<2x1x7x4x64xf32> to vector<2x7x4x64xf32>
    %38 = vector.extract_strided_slice %37 {offsets = [0, 0, 0, 0], sizes = [1, 4, 4, 64], strides = [1, 1, 1, 1]} : vector<2x7x4x64xf32> to vector<1x4x4x64xf32>
    %39 = vector.shape_cast %38 : vector<1x4x4x64xf32> to vector<4x4x64xf32>
    %c0_25 = arith.constant 0 : index
    %c0_26 = arith.constant 0 : index
    %40 = vector.load %arg9[%c0_25, %c0_26] : memref<49x64xf32, #tpu.memory_space<vmem>>, vector<1x64xf32>
    %41 = vector.shape_cast %40 : vector<1x64xf32> to vector<1x1x64xf32>
    %42 = vector.broadcast %41 : vector<1x1x64xf32> to vector<4x4x64xf32>
    %43 = arith.mulf %39, %42 : vector<4x4x64xf32>
    %44 = vector.extract_strided_slice %37 {offsets = [1, 0, 0, 0], sizes = [1, 4, 4, 64], strides = [1, 1, 1, 1]} : vector<2x7x4x64xf32> to vector<1x4x4x64xf32>
    %45 = vector.shape_cast %44 : vector<1x4x4x64xf32> to vector<4x4x64xf32>
    %c7 = arith.constant 7 : index
    %c0_27 = arith.constant 0 : index
    %46 = vector.load %arg9[%c7, %c0_27] : memref<49x64xf32, #tpu.memory_space<vmem>>, vector<1x64xf32>
    %47 = vector.shape_cast %46 : vector<1x64xf32> to vector<1x1x64xf32>
    %48 = vector.broadcast %47 : vector<1x1x64xf32> to vector<4x4x64xf32>
    %49 = arith.mulf %45, %48 : vector<4x4x64xf32>
    %50 = arith.addf %43, %49 : vector<4x4x64xf32>
    %51 = vector.extract_strided_slice %37 {offsets = [0, 1, 0, 0], sizes = [1, 4, 4, 64], strides = [1, 1, 1, 1]} : vector<2x7x4x64xf32> to vector<1x4x4x64xf32>
    %52 = vector.shape_cast %51 : vector<1x4x4x64xf32> to vector<4x4x64xf32>
    %c14 = arith.constant 14 : index
    %c0_28 = arith.constant 0 : index
    %53 = vector.load %arg9[%c14, %c0_28] : memref<49x64xf32, #tpu.memory_space<vmem>>, vector<1x64xf32>
    %54 = vector.shape_cast %53 : vector<1x64xf32> to vector<1x1x64xf32>
    %55 = vector.broadcast %54 : vector<1x1x64xf32> to vector<4x4x64xf32>
    %56 = arith.mulf %52, %55 : vector<4x4x64xf32>
    %57 = arith.addf %50, %56 : vector<4x4x64xf32>
    %58 = vector.extract_strided_slice %37 {offsets = [1, 1, 0, 0], sizes = [1, 4, 4, 64], strides = [1, 1, 1, 1]} : vector<2x7x4x64xf32> to vector<1x4x4x64xf32>
    %59 = vector.shape_cast %58 : vector<1x4x4x64xf32> to vector<4x4x64xf32>
    %c21 = arith.constant 21 : index
    %c0_29 = arith.constant 0 : index
    %60 = vector.load %arg9[%c21, %c0_29] : memref<49x64xf32, #tpu.memory_space<vmem>>, vector<1x64xf32>
    %61 = vector.shape_cast %60 : vector<1x64xf32> to vector<1x1x64xf32>
    %62 = vector.broadcast %61 : vector<1x1x64xf32> to vector<4x4x64xf32>
    %63 = arith.mulf %59, %62 : vector<4x4x64xf32>
    %64 = arith.addf %57, %63 : vector<4x4x64xf32>
    %65 = vector.extract_strided_slice %37 {offsets = [0, 2, 0, 0], sizes = [1, 4, 4, 64], strides = [1, 1, 1, 1]} : vector<2x7x4x64xf32> to vector<1x4x4x64xf32>
    %66 = vector.shape_cast %65 : vector<1x4x4x64xf32> to vector<4x4x64xf32>
    %c28 = arith.constant 28 : index
    %c0_30 = arith.constant 0 : index
    %67 = vector.load %arg9[%c28, %c0_30] : memref<49x64xf32, #tpu.memory_space<vmem>>, vector<1x64xf32>
    %68 = vector.shape_cast %67 : vector<1x64xf32> to vector<1x1x64xf32>
    %69 = vector.broadcast %68 : vector<1x1x64xf32> to vector<4x4x64xf32>
    %70 = arith.mulf %66, %69 : vector<4x4x64xf32>
    %71 = arith.addf %64, %70 : vector<4x4x64xf32>
    %72 = vector.extract_strided_slice %37 {offsets = [1, 2, 0, 0], sizes = [1, 4, 4, 64], strides = [1, 1, 1, 1]} : vector<2x7x4x64xf32> to vector<1x4x4x64xf32>
    %73 = vector.shape_cast %72 : vector<1x4x4x64xf32> to vector<4x4x64xf32>
    %c35 = arith.constant 35 : index
    %c0_31 = arith.constant 0 : index
    %74 = vector.load %arg9[%c35, %c0_31] : memref<49x64xf32, #tpu.memory_space<vmem>>, vector<1x64xf32>
    %75 = vector.shape_cast %74 : vector<1x64xf32> to vector<1x1x64xf32>
    %76 = vector.broadcast %75 : vector<1x1x64xf32> to vector<4x4x64xf32>
    %77 = arith.mulf %73, %76 : vector<4x4x64xf32>
    %78 = arith.addf %71, %77 : vector<4x4x64xf32>
    %79 = vector.extract_strided_slice %37 {offsets = [0, 3, 0, 0], sizes = [1, 4, 4, 64], strides = [1, 1, 1, 1]} : vector<2x7x4x64xf32> to vector<1x4x4x64xf32>
    %80 = vector.shape_cast %79 : vector<1x4x4x64xf32> to vector<4x4x64xf32>
    %c42 = arith.constant 42 : index
    %c0_32 = arith.constant 0 : index
    %81 = vector.load %arg9[%c42, %c0_32] : memref<49x64xf32, #tpu.memory_space<vmem>>, vector<1x64xf32>
    %82 = vector.shape_cast %81 : vector<1x64xf32> to vector<1x1x64xf32>
    %83 = vector.broadcast %82 : vector<1x1x64xf32> to vector<4x4x64xf32>
    %84 = arith.mulf %80, %83 : vector<4x4x64xf32>
    %85 = arith.addf %78, %84 : vector<4x4x64xf32>
    %86 = vector.extract_strided_slice %35 {offsets = [0, 1, 0, 0, 0], sizes = [2, 1, 7, 4, 64], strides = [1, 1, 1, 1, 1]} : vector<2x2x7x7x64xf32> to vector<2x1x7x4x64xf32>
    %87 = vector.shape_cast %86 : vector<2x1x7x4x64xf32> to vector<2x7x4x64xf32>
    %88 = vector.extract_strided_slice %87 {offsets = [0, 0, 0, 0], sizes = [1, 4, 4, 64], strides = [1, 1, 1, 1]} : vector<2x7x4x64xf32> to vector<1x4x4x64xf32>
    %89 = vector.shape_cast %88 : vector<1x4x4x64xf32> to vector<4x4x64xf32>
    %c1_33 = arith.constant 1 : index
    %c0_34 = arith.constant 0 : index
    %90 = vector.load %arg9[%c1_33, %c0_34] : memref<49x64xf32, #tpu.memory_space<vmem>>, vector<1x64xf32>
    %91 = vector.shape_cast %90 : vector<1x64xf32> to vector<1x1x64xf32>
    %92 = vector.broadcast %91 : vector<1x1x64xf32> to vector<4x4x64xf32>
    %93 = arith.mulf %89, %92 : vector<4x4x64xf32>
    %94 = arith.addf %85, %93 : vector<4x4x64xf32>
    %95 = vector.extract_strided_slice %87 {offsets = [1, 0, 0, 0], sizes = [1, 4, 4, 64], strides = [1, 1, 1, 1]} : vector<2x7x4x64xf32> to vector<1x4x4x64xf32>
    %96 = vector.shape_cast %95 : vector<1x4x4x64xf32> to vector<4x4x64xf32>
    %c8 = arith.constant 8 : index
    %c0_35 = arith.constant 0 : index
    %97 = vector.load %arg9[%c8, %c0_35] : memref<49x64xf32, #tpu.memory_space<vmem>>, vector<1x64xf32>
    %98 = vector.shape_cast %97 : vector<1x64xf32> to vector<1x1x64xf32>
    %99 = vector.broadcast %98 : vector<1x1x64xf32> to vector<4x4x64xf32>
    %100 = arith.mulf %96, %99 : vector<4x4x64xf32>
    %101 = arith.addf %94, %100 : vector<4x4x64xf32>
    %102 = vector.extract_strided_slice %87 {offsets = [0, 1, 0, 0], sizes = [1, 4, 4, 64], strides = [1, 1, 1, 1]} : vector<2x7x4x64xf32> to vector<1x4x4x64xf32>
    %103 = vector.shape_cast %102 : vector<1x4x4x64xf32> to vector<4x4x64xf32>
    %c15 = arith.constant 15 : index
    %c0_36 = arith.constant 0 : index
    %104 = vector.load %arg9[%c15, %c0_36] : memref<49x64xf32, #tpu.memory_space<vmem>>, vector<1x64xf32>
    %105 = vector.shape_cast %104 : vector<1x64xf32> to vector<1x1x64xf32>
    %106 = vector.broadcast %105 : vector<1x1x64xf32> to vector<4x4x64xf32>
    %107 = arith.mulf %103, %106 : vector<4x4x64xf32>
    %108 = arith.addf %101, %107 : vector<4x4x64xf32>
    %109 = vector.extract_strided_slice %87 {offsets = [1, 1, 0, 0], sizes = [1, 4, 4, 64], strides = [1, 1, 1, 1]} : vector<2x7x4x64xf32> to vector<1x4x4x64xf32>
    %110 = vector.shape_cast %109 : vector<1x4x4x64xf32> to vector<4x4x64xf32>
    %c22 = arith.constant 22 : index
    %c0_37 = arith.constant 0 : index
    %111 = vector.load %arg9[%c22, %c0_37] : memref<49x64xf32, #tpu.memory_space<vmem>>, vector<1x64xf32>
    %112 = vector.shape_cast %111 : vector<1x64xf32> to vector<1x1x64xf32>
    %113 = vector.broadcast %112 : vector<1x1x64xf32> to vector<4x4x64xf32>
    %114 = arith.mulf %110, %113 : vector<4x4x64xf32>
    %115 = arith.addf %108, %114 : vector<4x4x64xf32>
    %116 = vector.extract_strided_slice %87 {offsets = [0, 2, 0, 0], sizes = [1, 4, 4, 64], strides = [1, 1, 1, 1]} : vector<2x7x4x64xf32> to vector<1x4x4x64xf32>
    %117 = vector.shape_cast %116 : vector<1x4x4x64xf32> to vector<4x4x64xf32>
    %c29 = arith.constant 29 : index
    %c0_38 = arith.constant 0 : index
    %118 = vector.load %arg9[%c29, %c0_38] : memref<49x64xf32, #tpu.memory_space<vmem>>, vector<1x64xf32>
    %119 = vector.shape_cast %118 : vector<1x64xf32> to vector<1x1x64xf32>
    %120 = vector.broadcast %119 : vector<1x1x64xf32> to vector<4x4x64xf32>
    %121 = arith.mulf %117, %120 : vector<4x4x64xf32>
    %122 = arith.addf %115, %121 : vector<4x4x64xf32>
    %123 = vector.extract_strided_slice %87 {offsets = [1, 2, 0, 0], sizes = [1, 4, 4, 64], strides = [1, 1, 1, 1]} : vector<2x7x4x64xf32> to vector<1x4x4x64xf32>
    %124 = vector.shape_cast %123 : vector<1x4x4x64xf32> to vector<4x4x64xf32>
    %c36 = arith.constant 36 : index
    %c0_39 = arith.constant 0 : index
    %125 = vector.load %arg9[%c36, %c0_39] : memref<49x64xf32, #tpu.memory_space<vmem>>, vector<1x64xf32>
    %126 = vector.shape_cast %125 : vector<1x64xf32> to vector<1x1x64xf32>
    %127 = vector.broadcast %126 : vector<1x1x64xf32> to vector<4x4x64xf32>
    %128 = arith.mulf %124, %127 : vector<4x4x64xf32>
    %129 = arith.addf %122, %128 : vector<4x4x64xf32>
    %130 = vector.extract_strided_slice %87 {offsets = [0, 3, 0, 0], sizes = [1, 4, 4, 64], strides = [1, 1, 1, 1]} : vector<2x7x4x64xf32> to vector<1x4x4x64xf32>
    %131 = vector.shape_cast %130 : vector<1x4x4x64xf32> to vector<4x4x64xf32>
    %c43 = arith.constant 43 : index
    %c0_40 = arith.constant 0 : index
    %132 = vector.load %arg9[%c43, %c0_40] : memref<49x64xf32, #tpu.memory_space<vmem>>, vector<1x64xf32>
    %133 = vector.shape_cast %132 : vector<1x64xf32> to vector<1x1x64xf32>
    %134 = vector.broadcast %133 : vector<1x1x64xf32> to vector<4x4x64xf32>
    %135 = arith.mulf %131, %134 : vector<4x4x64xf32>
    %136 = arith.addf %129, %135 : vector<4x4x64xf32>
    %137 = vector.extract_strided_slice %35 {offsets = [0, 0, 0, 1, 0], sizes = [2, 1, 7, 4, 64], strides = [1, 1, 1, 1, 1]} : vector<2x2x7x7x64xf32> to vector<2x1x7x4x64xf32>
    %138 = vector.shape_cast %137 : vector<2x1x7x4x64xf32> to vector<2x7x4x64xf32>
    %139 = vector.extract_strided_slice %138 {offsets = [0, 0, 0, 0], sizes = [1, 4, 4, 64], strides = [1, 1, 1, 1]} : vector<2x7x4x64xf32> to vector<1x4x4x64xf32>
    %140 = vector.shape_cast %139 : vector<1x4x4x64xf32> to vector<4x4x64xf32>
    %c2 = arith.constant 2 : index
    %c0_41 = arith.constant 0 : index
    %141 = vector.load %arg9[%c2, %c0_41] : memref<49x64xf32, #tpu.memory_space<vmem>>, vector<1x64xf32>
    %142 = vector.shape_cast %141 : vector<1x64xf32> to vector<1x1x64xf32>
    %143 = vector.broadcast %142 : vector<1x1x64xf32> to vector<4x4x64xf32>
    %144 = arith.mulf %140, %143 : vector<4x4x64xf32>
    %145 = arith.addf %136, %144 : vector<4x4x64xf32>
    %146 = vector.extract_strided_slice %138 {offsets = [1, 0, 0, 0], sizes = [1, 4, 4, 64], strides = [1, 1, 1, 1]} : vector<2x7x4x64xf32> to vector<1x4x4x64xf32>
    %147 = vector.shape_cast %146 : vector<1x4x4x64xf32> to vector<4x4x64xf32>
    %c9 = arith.constant 9 : index
    %c0_42 = arith.constant 0 : index
    %148 = vector.load %arg9[%c9, %c0_42] : memref<49x64xf32, #tpu.memory_space<vmem>>, vector<1x64xf32>
    %149 = vector.shape_cast %148 : vector<1x64xf32> to vector<1x1x64xf32>
    %150 = vector.broadcast %149 : vector<1x1x64xf32> to vector<4x4x64xf32>
    %151 = arith.mulf %147, %150 : vector<4x4x64xf32>
    %152 = arith.addf %145, %151 : vector<4x4x64xf32>
    %153 = vector.extract_strided_slice %138 {offsets = [0, 1, 0, 0], sizes = [1, 4, 4, 64], strides = [1, 1, 1, 1]} : vector<2x7x4x64xf32> to vector<1x4x4x64xf32>
    %154 = vector.shape_cast %153 : vector<1x4x4x64xf32> to vector<4x4x64xf32>
    %c16 = arith.constant 16 : index
    %c0_43 = arith.constant 0 : index
    %155 = vector.load %arg9[%c16, %c0_43] : memref<49x64xf32, #tpu.memory_space<vmem>>, vector<1x64xf32>
    %156 = vector.shape_cast %155 : vector<1x64xf32> to vector<1x1x64xf32>
    %157 = vector.broadcast %156 : vector<1x1x64xf32> to vector<4x4x64xf32>
    %158 = arith.mulf %154, %157 : vector<4x4x64xf32>
    %159 = arith.addf %152, %158 : vector<4x4x64xf32>
    %160 = vector.extract_strided_slice %138 {offsets = [1, 1, 0, 0], sizes = [1, 4, 4, 64], strides = [1, 1, 1, 1]} : vector<2x7x4x64xf32> to vector<1x4x4x64xf32>
    %161 = vector.shape_cast %160 : vector<1x4x4x64xf32> to vector<4x4x64xf32>
    %c23 = arith.constant 23 : index
    %c0_44 = arith.constant 0 : index
    %162 = vector.load %arg9[%c23, %c0_44] : memref<49x64xf32, #tpu.memory_space<vmem>>, vector<1x64xf32>
    %163 = vector.shape_cast %162 : vector<1x64xf32> to vector<1x1x64xf32>
    %164 = vector.broadcast %163 : vector<1x1x64xf32> to vector<4x4x64xf32>
    %165 = arith.mulf %161, %164 : vector<4x4x64xf32>
    %166 = arith.addf %159, %165 : vector<4x4x64xf32>
    %167 = vector.extract_strided_slice %138 {offsets = [0, 2, 0, 0], sizes = [1, 4, 4, 64], strides = [1, 1, 1, 1]} : vector<2x7x4x64xf32> to vector<1x4x4x64xf32>
    %168 = vector.shape_cast %167 : vector<1x4x4x64xf32> to vector<4x4x64xf32>
    %c30 = arith.constant 30 : index
    %c0_45 = arith.constant 0 : index
    %169 = vector.load %arg9[%c30, %c0_45] : memref<49x64xf32, #tpu.memory_space<vmem>>, vector<1x64xf32>
    %170 = vector.shape_cast %169 : vector<1x64xf32> to vector<1x1x64xf32>
    %171 = vector.broadcast %170 : vector<1x1x64xf32> to vector<4x4x64xf32>
    %172 = arith.mulf %168, %171 : vector<4x4x64xf32>
    %173 = arith.addf %166, %172 : vector<4x4x64xf32>
    %174 = vector.extract_strided_slice %138 {offsets = [1, 2, 0, 0], sizes = [1, 4, 4, 64], strides = [1, 1, 1, 1]} : vector<2x7x4x64xf32> to vector<1x4x4x64xf32>
    %175 = vector.shape_cast %174 : vector<1x4x4x64xf32> to vector<4x4x64xf32>
    %c37 = arith.constant 37 : index
    %c0_46 = arith.constant 0 : index
    %176 = vector.load %arg9[%c37, %c0_46] : memref<49x64xf32, #tpu.memory_space<vmem>>, vector<1x64xf32>
    %177 = vector.shape_cast %176 : vector<1x64xf32> to vector<1x1x64xf32>
    %178 = vector.broadcast %177 : vector<1x1x64xf32> to vector<4x4x64xf32>
    %179 = arith.mulf %175, %178 : vector<4x4x64xf32>
    %180 = arith.addf %173, %179 : vector<4x4x64xf32>
    %181 = vector.extract_strided_slice %138 {offsets = [0, 3, 0, 0], sizes = [1, 4, 4, 64], strides = [1, 1, 1, 1]} : vector<2x7x4x64xf32> to vector<1x4x4x64xf32>
    %182 = vector.shape_cast %181 : vector<1x4x4x64xf32> to vector<4x4x64xf32>
    %c44 = arith.constant 44 : index
    %c0_47 = arith.constant 0 : index
    %183 = vector.load %arg9[%c44, %c0_47] : memref<49x64xf32, #tpu.memory_space<vmem>>, vector<1x64xf32>
    %184 = vector.shape_cast %183 : vector<1x64xf32> to vector<1x1x64xf32>
    %185 = vector.broadcast %184 : vector<1x1x64xf32> to vector<4x4x64xf32>
    %186 = arith.mulf %182, %185 : vector<4x4x64xf32>
    %187 = arith.addf %180, %186 : vector<4x4x64xf32>
    %188 = vector.extract_strided_slice %35 {offsets = [0, 1, 0, 1, 0], sizes = [2, 1, 7, 4, 64], strides = [1, 1, 1, 1, 1]} : vector<2x2x7x7x64xf32> to vector<2x1x7x4x64xf32>
    %189 = vector.shape_cast %188 : vector<2x1x7x4x64xf32> to vector<2x7x4x64xf32>
    %190 = vector.extract_strided_slice %189 {offsets = [0, 0, 0, 0], sizes = [1, 4, 4, 64], strides = [1, 1, 1, 1]} : vector<2x7x4x64xf32> to vector<1x4x4x64xf32>
    %191 = vector.shape_cast %190 : vector<1x4x4x64xf32> to vector<4x4x64xf32>
    %c3 = arith.constant 3 : index
    %c0_48 = arith.constant 0 : index
    %192 = vector.load %arg9[%c3, %c0_48] : memref<49x64xf32, #tpu.memory_space<vmem>>, vector<1x64xf32>
    %193 = vector.shape_cast %192 : vector<1x64xf32> to vector<1x1x64xf32>
    %194 = vector.broadcast %193 : vector<1x1x64xf32> to vector<4x4x64xf32>
    %195 = arith.mulf %191, %194 : vector<4x4x64xf32>
    %196 = arith.addf %187, %195 : vector<4x4x64xf32>
    %197 = vector.extract_strided_slice %189 {offsets = [1, 0, 0, 0], sizes = [1, 4, 4, 64], strides = [1, 1, 1, 1]} : vector<2x7x4x64xf32> to vector<1x4x4x64xf32>
    %198 = vector.shape_cast %197 : vector<1x4x4x64xf32> to vector<4x4x64xf32>
    %c10 = arith.constant 10 : index
    %c0_49 = arith.constant 0 : index
    %199 = vector.load %arg9[%c10, %c0_49] : memref<49x64xf32, #tpu.memory_space<vmem>>, vector<1x64xf32>
    %200 = vector.shape_cast %199 : vector<1x64xf32> to vector<1x1x64xf32>
    %201 = vector.broadcast %200 : vector<1x1x64xf32> to vector<4x4x64xf32>
    %202 = arith.mulf %198, %201 : vector<4x4x64xf32>
    %203 = arith.addf %196, %202 : vector<4x4x64xf32>
    %204 = vector.extract_strided_slice %189 {offsets = [0, 1, 0, 0], sizes = [1, 4, 4, 64], strides = [1, 1, 1, 1]} : vector<2x7x4x64xf32> to vector<1x4x4x64xf32>
    %205 = vector.shape_cast %204 : vector<1x4x4x64xf32> to vector<4x4x64xf32>
    %c17 = arith.constant 17 : index
    %c0_50 = arith.constant 0 : index
    %206 = vector.load %arg9[%c17, %c0_50] : memref<49x64xf32, #tpu.memory_space<vmem>>, vector<1x64xf32>
    %207 = vector.shape_cast %206 : vector<1x64xf32> to vector<1x1x64xf32>
    %208 = vector.broadcast %207 : vector<1x1x64xf32> to vector<4x4x64xf32>
    %209 = arith.mulf %205, %208 : vector<4x4x64xf32>
    %210 = arith.addf %203, %209 : vector<4x4x64xf32>
    %211 = vector.extract_strided_slice %189 {offsets = [1, 1, 0, 0], sizes = [1, 4, 4, 64], strides = [1, 1, 1, 1]} : vector<2x7x4x64xf32> to vector<1x4x4x64xf32>
    %212 = vector.shape_cast %211 : vector<1x4x4x64xf32> to vector<4x4x64xf32>
    %c24 = arith.constant 24 : index
    %c0_51 = arith.constant 0 : index
    %213 = vector.load %arg9[%c24, %c0_51] : memref<49x64xf32, #tpu.memory_space<vmem>>, vector<1x64xf32>
    %214 = vector.shape_cast %213 : vector<1x64xf32> to vector<1x1x64xf32>
    %215 = vector.broadcast %214 : vector<1x1x64xf32> to vector<4x4x64xf32>
    %216 = arith.mulf %212, %215 : vector<4x4x64xf32>
    %217 = arith.addf %210, %216 : vector<4x4x64xf32>
    %218 = vector.extract_strided_slice %189 {offsets = [0, 2, 0, 0], sizes = [1, 4, 4, 64], strides = [1, 1, 1, 1]} : vector<2x7x4x64xf32> to vector<1x4x4x64xf32>
    %219 = vector.shape_cast %218 : vector<1x4x4x64xf32> to vector<4x4x64xf32>
    %c31 = arith.constant 31 : index
    %c0_52 = arith.constant 0 : index
    %220 = vector.load %arg9[%c31, %c0_52] : memref<49x64xf32, #tpu.memory_space<vmem>>, vector<1x64xf32>
    %221 = vector.shape_cast %220 : vector<1x64xf32> to vector<1x1x64xf32>
    %222 = vector.broadcast %221 : vector<1x1x64xf32> to vector<4x4x64xf32>
    %223 = arith.mulf %219, %222 : vector<4x4x64xf32>
    %224 = arith.addf %217, %223 : vector<4x4x64xf32>
    %225 = vector.extract_strided_slice %189 {offsets = [1, 2, 0, 0], sizes = [1, 4, 4, 64], strides = [1, 1, 1, 1]} : vector<2x7x4x64xf32> to vector<1x4x4x64xf32>
    %226 = vector.shape_cast %225 : vector<1x4x4x64xf32> to vector<4x4x64xf32>
    %c38 = arith.constant 38 : index
    %c0_53 = arith.constant 0 : index
    %227 = vector.load %arg9[%c38, %c0_53] : memref<49x64xf32, #tpu.memory_space<vmem>>, vector<1x64xf32>
    %228 = vector.shape_cast %227 : vector<1x64xf32> to vector<1x1x64xf32>
    %229 = vector.broadcast %228 : vector<1x1x64xf32> to vector<4x4x64xf32>
    %230 = arith.mulf %226, %229 : vector<4x4x64xf32>
    %231 = arith.addf %224, %230 : vector<4x4x64xf32>
    %232 = vector.extract_strided_slice %189 {offsets = [0, 3, 0, 0], sizes = [1, 4, 4, 64], strides = [1, 1, 1, 1]} : vector<2x7x4x64xf32> to vector<1x4x4x64xf32>
    %233 = vector.shape_cast %232 : vector<1x4x4x64xf32> to vector<4x4x64xf32>
    %c45 = arith.constant 45 : index
    %c0_54 = arith.constant 0 : index
    %234 = vector.load %arg9[%c45, %c0_54] : memref<49x64xf32, #tpu.memory_space<vmem>>, vector<1x64xf32>
    %235 = vector.shape_cast %234 : vector<1x64xf32> to vector<1x1x64xf32>
    %236 = vector.broadcast %235 : vector<1x1x64xf32> to vector<4x4x64xf32>
    %237 = arith.mulf %233, %236 : vector<4x4x64xf32>
    %238 = arith.addf %231, %237 : vector<4x4x64xf32>
    %239 = vector.extract_strided_slice %35 {offsets = [0, 0, 0, 2, 0], sizes = [2, 1, 7, 4, 64], strides = [1, 1, 1, 1, 1]} : vector<2x2x7x7x64xf32> to vector<2x1x7x4x64xf32>
    %240 = vector.shape_cast %239 : vector<2x1x7x4x64xf32> to vector<2x7x4x64xf32>
    %241 = vector.extract_strided_slice %240 {offsets = [0, 0, 0, 0], sizes = [1, 4, 4, 64], strides = [1, 1, 1, 1]} : vector<2x7x4x64xf32> to vector<1x4x4x64xf32>
    %242 = vector.shape_cast %241 : vector<1x4x4x64xf32> to vector<4x4x64xf32>
    %c4 = arith.constant 4 : index
    %c0_55 = arith.constant 0 : index
    %243 = vector.load %arg9[%c4, %c0_55] : memref<49x64xf32, #tpu.memory_space<vmem>>, vector<1x64xf32>
    %244 = vector.shape_cast %243 : vector<1x64xf32> to vector<1x1x64xf32>
    %245 = vector.broadcast %244 : vector<1x1x64xf32> to vector<4x4x64xf32>
    %246 = arith.mulf %242, %245 : vector<4x4x64xf32>
    %247 = arith.addf %238, %246 : vector<4x4x64xf32>
    %248 = vector.extract_strided_slice %240 {offsets = [1, 0, 0, 0], sizes = [1, 4, 4, 64], strides = [1, 1, 1, 1]} : vector<2x7x4x64xf32> to vector<1x4x4x64xf32>
    %249 = vector.shape_cast %248 : vector<1x4x4x64xf32> to vector<4x4x64xf32>
    %c11 = arith.constant 11 : index
    %c0_56 = arith.constant 0 : index
    %250 = vector.load %arg9[%c11, %c0_56] : memref<49x64xf32, #tpu.memory_space<vmem>>, vector<1x64xf32>
    %251 = vector.shape_cast %250 : vector<1x64xf32> to vector<1x1x64xf32>
    %252 = vector.broadcast %251 : vector<1x1x64xf32> to vector<4x4x64xf32>
    %253 = arith.mulf %249, %252 : vector<4x4x64xf32>
    %254 = arith.addf %247, %253 : vector<4x4x64xf32>
    %255 = vector.extract_strided_slice %240 {offsets = [0, 1, 0, 0], sizes = [1, 4, 4, 64], strides = [1, 1, 1, 1]} : vector<2x7x4x64xf32> to vector<1x4x4x64xf32>
    %256 = vector.shape_cast %255 : vector<1x4x4x64xf32> to vector<4x4x64xf32>
    %c18 = arith.constant 18 : index
    %c0_57 = arith.constant 0 : index
    %257 = vector.load %arg9[%c18, %c0_57] : memref<49x64xf32, #tpu.memory_space<vmem>>, vector<1x64xf32>
    %258 = vector.shape_cast %257 : vector<1x64xf32> to vector<1x1x64xf32>
    %259 = vector.broadcast %258 : vector<1x1x64xf32> to vector<4x4x64xf32>
    %260 = arith.mulf %256, %259 : vector<4x4x64xf32>
    %261 = arith.addf %254, %260 : vector<4x4x64xf32>
    %262 = vector.extract_strided_slice %240 {offsets = [1, 1, 0, 0], sizes = [1, 4, 4, 64], strides = [1, 1, 1, 1]} : vector<2x7x4x64xf32> to vector<1x4x4x64xf32>
    %263 = vector.shape_cast %262 : vector<1x4x4x64xf32> to vector<4x4x64xf32>
    %c25 = arith.constant 25 : index
    %c0_58 = arith.constant 0 : index
    %264 = vector.load %arg9[%c25, %c0_58] : memref<49x64xf32, #tpu.memory_space<vmem>>, vector<1x64xf32>
    %265 = vector.shape_cast %264 : vector<1x64xf32> to vector<1x1x64xf32>
    %266 = vector.broadcast %265 : vector<1x1x64xf32> to vector<4x4x64xf32>
    %267 = arith.mulf %263, %266 : vector<4x4x64xf32>
    %268 = arith.addf %261, %267 : vector<4x4x64xf32>
    %269 = vector.extract_strided_slice %240 {offsets = [0, 2, 0, 0], sizes = [1, 4, 4, 64], strides = [1, 1, 1, 1]} : vector<2x7x4x64xf32> to vector<1x4x4x64xf32>
    %270 = vector.shape_cast %269 : vector<1x4x4x64xf32> to vector<4x4x64xf32>
    %c32 = arith.constant 32 : index
    %c0_59 = arith.constant 0 : index
    %271 = vector.load %arg9[%c32, %c0_59] : memref<49x64xf32, #tpu.memory_space<vmem>>, vector<1x64xf32>
    %272 = vector.shape_cast %271 : vector<1x64xf32> to vector<1x1x64xf32>
    %273 = vector.broadcast %272 : vector<1x1x64xf32> to vector<4x4x64xf32>
    %274 = arith.mulf %270, %273 : vector<4x4x64xf32>
    %275 = arith.addf %268, %274 : vector<4x4x64xf32>
    %276 = vector.extract_strided_slice %240 {offsets = [1, 2, 0, 0], sizes = [1, 4, 4, 64], strides = [1, 1, 1, 1]} : vector<2x7x4x64xf32> to vector<1x4x4x64xf32>
    %277 = vector.shape_cast %276 : vector<1x4x4x64xf32> to vector<4x4x64xf32>
    %c39 = arith.constant 39 : index
    %c0_60 = arith.constant 0 : index
    %278 = vector.load %arg9[%c39, %c0_60] : memref<49x64xf32, #tpu.memory_space<vmem>>, vector<1x64xf32>
    %279 = vector.shape_cast %278 : vector<1x64xf32> to vector<1x1x64xf32>
    %280 = vector.broadcast %279 : vector<1x1x64xf32> to vector<4x4x64xf32>
    %281 = arith.mulf %277, %280 : vector<4x4x64xf32>
    %282 = arith.addf %275, %281 : vector<4x4x64xf32>
    %283 = vector.extract_strided_slice %240 {offsets = [0, 3, 0, 0], sizes = [1, 4, 4, 64], strides = [1, 1, 1, 1]} : vector<2x7x4x64xf32> to vector<1x4x4x64xf32>
    %284 = vector.shape_cast %283 : vector<1x4x4x64xf32> to vector<4x4x64xf32>
    %c46 = arith.constant 46 : index
    %c0_61 = arith.constant 0 : index
    %285 = vector.load %arg9[%c46, %c0_61] : memref<49x64xf32, #tpu.memory_space<vmem>>, vector<1x64xf32>
    %286 = vector.shape_cast %285 : vector<1x64xf32> to vector<1x1x64xf32>
    %287 = vector.broadcast %286 : vector<1x1x64xf32> to vector<4x4x64xf32>
    %288 = arith.mulf %284, %287 : vector<4x4x64xf32>
    %289 = arith.addf %282, %288 : vector<4x4x64xf32>
    %290 = vector.extract_strided_slice %35 {offsets = [0, 1, 0, 2, 0], sizes = [2, 1, 7, 4, 64], strides = [1, 1, 1, 1, 1]} : vector<2x2x7x7x64xf32> to vector<2x1x7x4x64xf32>
    %291 = vector.shape_cast %290 : vector<2x1x7x4x64xf32> to vector<2x7x4x64xf32>
    %292 = vector.extract_strided_slice %291 {offsets = [0, 0, 0, 0], sizes = [1, 4, 4, 64], strides = [1, 1, 1, 1]} : vector<2x7x4x64xf32> to vector<1x4x4x64xf32>
    %293 = vector.shape_cast %292 : vector<1x4x4x64xf32> to vector<4x4x64xf32>
    %c5 = arith.constant 5 : index
    %c0_62 = arith.constant 0 : index
    %294 = vector.load %arg9[%c5, %c0_62] : memref<49x64xf32, #tpu.memory_space<vmem>>, vector<1x64xf32>
    %295 = vector.shape_cast %294 : vector<1x64xf32> to vector<1x1x64xf32>
    %296 = vector.broadcast %295 : vector<1x1x64xf32> to vector<4x4x64xf32>
    %297 = arith.mulf %293, %296 : vector<4x4x64xf32>
    %298 = arith.addf %289, %297 : vector<4x4x64xf32>
    %299 = vector.extract_strided_slice %291 {offsets = [1, 0, 0, 0], sizes = [1, 4, 4, 64], strides = [1, 1, 1, 1]} : vector<2x7x4x64xf32> to vector<1x4x4x64xf32>
    %300 = vector.shape_cast %299 : vector<1x4x4x64xf32> to vector<4x4x64xf32>
    %c12 = arith.constant 12 : index
    %c0_63 = arith.constant 0 : index
    %301 = vector.load %arg9[%c12, %c0_63] : memref<49x64xf32, #tpu.memory_space<vmem>>, vector<1x64xf32>
    %302 = vector.shape_cast %301 : vector<1x64xf32> to vector<1x1x64xf32>
    %303 = vector.broadcast %302 : vector<1x1x64xf32> to vector<4x4x64xf32>
    %304 = arith.mulf %300, %303 : vector<4x4x64xf32>
    %305 = arith.addf %298, %304 : vector<4x4x64xf32>
    %306 = vector.extract_strided_slice %291 {offsets = [0, 1, 0, 0], sizes = [1, 4, 4, 64], strides = [1, 1, 1, 1]} : vector<2x7x4x64xf32> to vector<1x4x4x64xf32>
    %307 = vector.shape_cast %306 : vector<1x4x4x64xf32> to vector<4x4x64xf32>
    %c19 = arith.constant 19 : index
    %c0_64 = arith.constant 0 : index
    %308 = vector.load %arg9[%c19, %c0_64] : memref<49x64xf32, #tpu.memory_space<vmem>>, vector<1x64xf32>
    %309 = vector.shape_cast %308 : vector<1x64xf32> to vector<1x1x64xf32>
    %310 = vector.broadcast %309 : vector<1x1x64xf32> to vector<4x4x64xf32>
    %311 = arith.mulf %307, %310 : vector<4x4x64xf32>
    %312 = arith.addf %305, %311 : vector<4x4x64xf32>
    %313 = vector.extract_strided_slice %291 {offsets = [1, 1, 0, 0], sizes = [1, 4, 4, 64], strides = [1, 1, 1, 1]} : vector<2x7x4x64xf32> to vector<1x4x4x64xf32>
    %314 = vector.shape_cast %313 : vector<1x4x4x64xf32> to vector<4x4x64xf32>
    %c26 = arith.constant 26 : index
    %c0_65 = arith.constant 0 : index
    %315 = vector.load %arg9[%c26, %c0_65] : memref<49x64xf32, #tpu.memory_space<vmem>>, vector<1x64xf32>
    %316 = vector.shape_cast %315 : vector<1x64xf32> to vector<1x1x64xf32>
    %317 = vector.broadcast %316 : vector<1x1x64xf32> to vector<4x4x64xf32>
    %318 = arith.mulf %314, %317 : vector<4x4x64xf32>
    %319 = arith.addf %312, %318 : vector<4x4x64xf32>
    %320 = vector.extract_strided_slice %291 {offsets = [0, 2, 0, 0], sizes = [1, 4, 4, 64], strides = [1, 1, 1, 1]} : vector<2x7x4x64xf32> to vector<1x4x4x64xf32>
    %321 = vector.shape_cast %320 : vector<1x4x4x64xf32> to vector<4x4x64xf32>
    %c33 = arith.constant 33 : index
    %c0_66 = arith.constant 0 : index
    %322 = vector.load %arg9[%c33, %c0_66] : memref<49x64xf32, #tpu.memory_space<vmem>>, vector<1x64xf32>
    %323 = vector.shape_cast %322 : vector<1x64xf32> to vector<1x1x64xf32>
    %324 = vector.broadcast %323 : vector<1x1x64xf32> to vector<4x4x64xf32>
    %325 = arith.mulf %321, %324 : vector<4x4x64xf32>
    %326 = arith.addf %319, %325 : vector<4x4x64xf32>
    %327 = vector.extract_strided_slice %291 {offsets = [1, 2, 0, 0], sizes = [1, 4, 4, 64], strides = [1, 1, 1, 1]} : vector<2x7x4x64xf32> to vector<1x4x4x64xf32>
    %328 = vector.shape_cast %327 : vector<1x4x4x64xf32> to vector<4x4x64xf32>
    %c40 = arith.constant 40 : index
    %c0_67 = arith.constant 0 : index
    %329 = vector.load %arg9[%c40, %c0_67] : memref<49x64xf32, #tpu.memory_space<vmem>>, vector<1x64xf32>
    %330 = vector.shape_cast %329 : vector<1x64xf32> to vector<1x1x64xf32>
    %331 = vector.broadcast %330 : vector<1x1x64xf32> to vector<4x4x64xf32>
    %332 = arith.mulf %328, %331 : vector<4x4x64xf32>
    %333 = arith.addf %326, %332 : vector<4x4x64xf32>
    %334 = vector.extract_strided_slice %291 {offsets = [0, 3, 0, 0], sizes = [1, 4, 4, 64], strides = [1, 1, 1, 1]} : vector<2x7x4x64xf32> to vector<1x4x4x64xf32>
    %335 = vector.shape_cast %334 : vector<1x4x4x64xf32> to vector<4x4x64xf32>
    %c47 = arith.constant 47 : index
    %c0_68 = arith.constant 0 : index
    %336 = vector.load %arg9[%c47, %c0_68] : memref<49x64xf32, #tpu.memory_space<vmem>>, vector<1x64xf32>
    %337 = vector.shape_cast %336 : vector<1x64xf32> to vector<1x1x64xf32>
    %338 = vector.broadcast %337 : vector<1x1x64xf32> to vector<4x4x64xf32>
    %339 = arith.mulf %335, %338 : vector<4x4x64xf32>
    %340 = arith.addf %333, %339 : vector<4x4x64xf32>
    %341 = vector.extract_strided_slice %35 {offsets = [0, 0, 0, 3, 0], sizes = [2, 1, 7, 4, 64], strides = [1, 1, 1, 1, 1]} : vector<2x2x7x7x64xf32> to vector<2x1x7x4x64xf32>
    %342 = vector.shape_cast %341 : vector<2x1x7x4x64xf32> to vector<2x7x4x64xf32>
    %343 = vector.extract_strided_slice %342 {offsets = [0, 0, 0, 0], sizes = [1, 4, 4, 64], strides = [1, 1, 1, 1]} : vector<2x7x4x64xf32> to vector<1x4x4x64xf32>
    %344 = vector.shape_cast %343 : vector<1x4x4x64xf32> to vector<4x4x64xf32>
    %c6 = arith.constant 6 : index
    %c0_69 = arith.constant 0 : index
    %345 = vector.load %arg9[%c6, %c0_69] : memref<49x64xf32, #tpu.memory_space<vmem>>, vector<1x64xf32>
    %346 = vector.shape_cast %345 : vector<1x64xf32> to vector<1x1x64xf32>
    %347 = vector.broadcast %346 : vector<1x1x64xf32> to vector<4x4x64xf32>
    %348 = arith.mulf %344, %347 : vector<4x4x64xf32>
    %349 = arith.addf %340, %348 : vector<4x4x64xf32>
    %350 = vector.extract_strided_slice %342 {offsets = [1, 0, 0, 0], sizes = [1, 4, 4, 64], strides = [1, 1, 1, 1]} : vector<2x7x4x64xf32> to vector<1x4x4x64xf32>
    %351 = vector.shape_cast %350 : vector<1x4x4x64xf32> to vector<4x4x64xf32>
    %c13 = arith.constant 13 : index
    %c0_70 = arith.constant 0 : index
    %352 = vector.load %arg9[%c13, %c0_70] : memref<49x64xf32, #tpu.memory_space<vmem>>, vector<1x64xf32>
    %353 = vector.shape_cast %352 : vector<1x64xf32> to vector<1x1x64xf32>
    %354 = vector.broadcast %353 : vector<1x1x64xf32> to vector<4x4x64xf32>
    %355 = arith.mulf %351, %354 : vector<4x4x64xf32>
    %356 = arith.addf %349, %355 : vector<4x4x64xf32>
    %357 = vector.extract_strided_slice %342 {offsets = [0, 1, 0, 0], sizes = [1, 4, 4, 64], strides = [1, 1, 1, 1]} : vector<2x7x4x64xf32> to vector<1x4x4x64xf32>
    %358 = vector.shape_cast %357 : vector<1x4x4x64xf32> to vector<4x4x64xf32>
    %c20 = arith.constant 20 : index
    %c0_71 = arith.constant 0 : index
    %359 = vector.load %arg9[%c20, %c0_71] : memref<49x64xf32, #tpu.memory_space<vmem>>, vector<1x64xf32>
    %360 = vector.shape_cast %359 : vector<1x64xf32> to vector<1x1x64xf32>
    %361 = vector.broadcast %360 : vector<1x1x64xf32> to vector<4x4x64xf32>
    %362 = arith.mulf %358, %361 : vector<4x4x64xf32>
    %363 = arith.addf %356, %362 : vector<4x4x64xf32>
    %364 = vector.extract_strided_slice %342 {offsets = [1, 1, 0, 0], sizes = [1, 4, 4, 64], strides = [1, 1, 1, 1]} : vector<2x7x4x64xf32> to vector<1x4x4x64xf32>
    %365 = vector.shape_cast %364 : vector<1x4x4x64xf32> to vector<4x4x64xf32>
    %c27 = arith.constant 27 : index
    %c0_72 = arith.constant 0 : index
    %366 = vector.load %arg9[%c27, %c0_72] : memref<49x64xf32, #tpu.memory_space<vmem>>, vector<1x64xf32>
    %367 = vector.shape_cast %366 : vector<1x64xf32> to vector<1x1x64xf32>
    %368 = vector.broadcast %367 : vector<1x1x64xf32> to vector<4x4x64xf32>
    %369 = arith.mulf %365, %368 : vector<4x4x64xf32>
    %370 = arith.addf %363, %369 : vector<4x4x64xf32>
    %371 = vector.extract_strided_slice %342 {offsets = [0, 2, 0, 0], sizes = [1, 4, 4, 64], strides = [1, 1, 1, 1]} : vector<2x7x4x64xf32> to vector<1x4x4x64xf32>
    %372 = vector.shape_cast %371 : vector<1x4x4x64xf32> to vector<4x4x64xf32>
    %c34 = arith.constant 34 : index
    %c0_73 = arith.constant 0 : index
    %373 = vector.load %arg9[%c34, %c0_73] : memref<49x64xf32, #tpu.memory_space<vmem>>, vector<1x64xf32>
    %374 = vector.shape_cast %373 : vector<1x64xf32> to vector<1x1x64xf32>
    %375 = vector.broadcast %374 : vector<1x1x64xf32> to vector<4x4x64xf32>
    %376 = arith.mulf %372, %375 : vector<4x4x64xf32>
    %377 = arith.addf %370, %376 : vector<4x4x64xf32>
    %378 = vector.extract_strided_slice %342 {offsets = [1, 2, 0, 0], sizes = [1, 4, 4, 64], strides = [1, 1, 1, 1]} : vector<2x7x4x64xf32> to vector<1x4x4x64xf32>
    %379 = vector.shape_cast %378 : vector<1x4x4x64xf32> to vector<4x4x64xf32>
    %c41 = arith.constant 41 : index
    %c0_74 = arith.constant 0 : index
    %380 = vector.load %arg9[%c41, %c0_74] : memref<49x64xf32, #tpu.memory_space<vmem>>, vector<1x64xf32>
    %381 = vector.shape_cast %380 : vector<1x64xf32> to vector<1x1x64xf32>
    %382 = vector.broadcast %381 : vector<1x1x64xf32> to vector<4x4x64xf32>
    %383 = arith.mulf %379, %382 : vector<4x4x64xf32>
    %384 = arith.addf %377, %383 : vector<4x4x64xf32>
    %385 = vector.extract_strided_slice %342 {offsets = [0, 3, 0, 0], sizes = [1, 4, 4, 64], strides = [1, 1, 1, 1]} : vector<2x7x4x64xf32> to vector<1x4x4x64xf32>
    %386 = vector.shape_cast %385 : vector<1x4x4x64xf32> to vector<4x4x64xf32>
    %c48 = arith.constant 48 : index
    %c0_75 = arith.constant 0 : index
    %387 = vector.load %arg9[%c48, %c0_75] : memref<49x64xf32, #tpu.memory_space<vmem>>, vector<1x64xf32>
    %388 = vector.shape_cast %387 : vector<1x64xf32> to vector<1x1x64xf32>
    %389 = vector.broadcast %388 : vector<1x1x64xf32> to vector<4x4x64xf32>
    %390 = arith.mulf %386, %389 : vector<4x4x64xf32>
    %391 = arith.addf %384, %390 : vector<4x4x64xf32>
    %392 = vector.shape_cast %391 : vector<4x4x64xf32> to vector<16x64xf32>
    %c0_76 = arith.constant 0 : index
    %c0_77 = arith.constant 0 : index
    %393 = vector.load %arg10[%c0_76, %c0_77] : memref<64x64xf32, #tpu.memory_space<vmem>>, vector<64x64xf32>
    %cst_78 = arith.constant dense<0.000000e+00> : vector<16x64xf32>
    %394 = tpu.matmul %392, %393, %cst_78 {dimension_numbers = #tpu.dot_dimension_numbers<[1], [0], [0], [1], [0, 0, 1, 1], [], []>} : vector<16x64xf32>, vector<64x64xf32>, vector<16x64xf32> -> vector<16x64xf32>
    %c0_79 = arith.constant 0 : index
    %c0_80 = arith.constant 0 : index
    %395 = vector.load %arg11[%c0_79, %c0_80] : memref<2x64xf32, #tpu.memory_space<vmem>>, vector<1x64xf32>
    %396 = vector.broadcast %395 : vector<1x64xf32> to vector<16x64xf32>
    %397 = arith.mulf %394, %396 : vector<16x64xf32>
    %c1_81 = arith.constant 1 : index
    %c0_82 = arith.constant 0 : index
    %398 = vector.load %arg11[%c1_81, %c0_82] : memref<2x64xf32, #tpu.memory_space<vmem>>, vector<1x64xf32>
    %399 = vector.broadcast %398 : vector<1x64xf32> to vector<16x64xf32>
    %400 = arith.addf %397, %399 : vector<16x64xf32>
    %cst_83 = arith.constant 0.000000e+00 : f32
    %401 = vector.broadcast %cst_83 : f32 to vector<16x64xf32>
    %402 = arith.maximumf %400, %401 : vector<16x64xf32>
    %403 = vector.shape_cast %402 : vector<16x64xf32> to vector<4x4x64xf32>
    %cst_84 = arith.constant 0.000000e+00 : f32
    %404 = vector.broadcast %cst_84 : f32 to vector<3x4x64xf32>
    %cst_85 = arith.constant 0.000000e+00 : f32
    %405 = vector.broadcast %cst_85 : f32 to vector<3x4x64xf32>
    %406 = tpu.concatenate %404, %403, %405 in 0 : vector<3x4x64xf32>, vector<4x4x64xf32>, vector<3x4x64xf32> -> vector<10x4x64xf32>
    %cst_86 = arith.constant 0.000000e+00 : f32
    %407 = vector.broadcast %cst_86 : f32 to vector<10x3x64xf32>
    %cst_87 = arith.constant 0.000000e+00 : f32
    %408 = vector.broadcast %cst_87 : f32 to vector<10x3x64xf32>
    %409 = tpu.concatenate %407, %406, %408 in 1 : vector<10x3x64xf32>, vector<10x4x64xf32>, vector<10x3x64xf32> -> vector<10x10x64xf32>
    %410 = vector.extract_strided_slice %409 {offsets = [0, 0, 0], sizes = [10, 4, 64], strides = [1, 1, 1]} : vector<10x10x64xf32> to vector<10x4x64xf32>
    %411 = vector.extract_strided_slice %410 {offsets = [0, 0, 0], sizes = [4, 4, 64], strides = [1, 1, 1]} : vector<10x4x64xf32> to vector<4x4x64xf32>
    %c0_88 = arith.constant 0 : index
    %c0_89 = arith.constant 0 : index
    %412 = vector.load %arg12[%c0_88, %c0_89] : memref<49x64xf32, #tpu.memory_space<vmem>>, vector<1x64xf32>
    %413 = vector.shape_cast %412 : vector<1x64xf32> to vector<1x1x64xf32>
    %414 = vector.broadcast %413 : vector<1x1x64xf32> to vector<4x4x64xf32>
    %415 = arith.mulf %411, %414 : vector<4x4x64xf32>
    %416 = vector.extract_strided_slice %410 {offsets = [1, 0, 0], sizes = [4, 4, 64], strides = [1, 1, 1]} : vector<10x4x64xf32> to vector<4x4x64xf32>
    %c7_90 = arith.constant 7 : index
    %c0_91 = arith.constant 0 : index
    %417 = vector.load %arg12[%c7_90, %c0_91] : memref<49x64xf32, #tpu.memory_space<vmem>>, vector<1x64xf32>
    %418 = vector.shape_cast %417 : vector<1x64xf32> to vector<1x1x64xf32>
    %419 = vector.broadcast %418 : vector<1x1x64xf32> to vector<4x4x64xf32>
    %420 = arith.mulf %416, %419 : vector<4x4x64xf32>
    %421 = arith.addf %415, %420 : vector<4x4x64xf32>
    %422 = vector.extract_strided_slice %410 {offsets = [2, 0, 0], sizes = [4, 4, 64], strides = [1, 1, 1]} : vector<10x4x64xf32> to vector<4x4x64xf32>
    %c14_92 = arith.constant 14 : index
    %c0_93 = arith.constant 0 : index
    %423 = vector.load %arg12[%c14_92, %c0_93] : memref<49x64xf32, #tpu.memory_space<vmem>>, vector<1x64xf32>
    %424 = vector.shape_cast %423 : vector<1x64xf32> to vector<1x1x64xf32>
    %425 = vector.broadcast %424 : vector<1x1x64xf32> to vector<4x4x64xf32>
    %426 = arith.mulf %422, %425 : vector<4x4x64xf32>
    %427 = arith.addf %421, %426 : vector<4x4x64xf32>
    %428 = vector.extract_strided_slice %410 {offsets = [3, 0, 0], sizes = [4, 4, 64], strides = [1, 1, 1]} : vector<10x4x64xf32> to vector<4x4x64xf32>
    %c21_94 = arith.constant 21 : index
    %c0_95 = arith.constant 0 : index
    %429 = vector.load %arg12[%c21_94, %c0_95] : memref<49x64xf32, #tpu.memory_space<vmem>>, vector<1x64xf32>
    %430 = vector.shape_cast %429 : vector<1x64xf32> to vector<1x1x64xf32>
    %431 = vector.broadcast %430 : vector<1x1x64xf32> to vector<4x4x64xf32>
    %432 = arith.mulf %428, %431 : vector<4x4x64xf32>
    %433 = arith.addf %427, %432 : vector<4x4x64xf32>
    %434 = vector.extract_strided_slice %410 {offsets = [4, 0, 0], sizes = [4, 4, 64], strides = [1, 1, 1]} : vector<10x4x64xf32> to vector<4x4x64xf32>
    %c28_96 = arith.constant 28 : index
    %c0_97 = arith.constant 0 : index
    %435 = vector.load %arg12[%c28_96, %c0_97] : memref<49x64xf32, #tpu.memory_space<vmem>>, vector<1x64xf32>
    %436 = vector.shape_cast %435 : vector<1x64xf32> to vector<1x1x64xf32>
    %437 = vector.broadcast %436 : vector<1x1x64xf32> to vector<4x4x64xf32>
    %438 = arith.mulf %434, %437 : vector<4x4x64xf32>
    %439 = arith.addf %433, %438 : vector<4x4x64xf32>
    %440 = vector.extract_strided_slice %410 {offsets = [5, 0, 0], sizes = [4, 4, 64], strides = [1, 1, 1]} : vector<10x4x64xf32> to vector<4x4x64xf32>
    %c35_98 = arith.constant 35 : index
    %c0_99 = arith.constant 0 : index
    %441 = vector.load %arg12[%c35_98, %c0_99] : memref<49x64xf32, #tpu.memory_space<vmem>>, vector<1x64xf32>
    %442 = vector.shape_cast %441 : vector<1x64xf32> to vector<1x1x64xf32>
    %443 = vector.broadcast %442 : vector<1x1x64xf32> to vector<4x4x64xf32>
    %444 = arith.mulf %440, %443 : vector<4x4x64xf32>
    %445 = arith.addf %439, %444 : vector<4x4x64xf32>
    %446 = vector.extract_strided_slice %410 {offsets = [6, 0, 0], sizes = [4, 4, 64], strides = [1, 1, 1]} : vector<10x4x64xf32> to vector<4x4x64xf32>
    %c42_100 = arith.constant 42 : index
    %c0_101 = arith.constant 0 : index
    %447 = vector.load %arg12[%c42_100, %c0_101] : memref<49x64xf32, #tpu.memory_space<vmem>>, vector<1x64xf32>
    %448 = vector.shape_cast %447 : vector<1x64xf32> to vector<1x1x64xf32>
    %449 = vector.broadcast %448 : vector<1x1x64xf32> to vector<4x4x64xf32>
    %450 = arith.mulf %446, %449 : vector<4x4x64xf32>
    %451 = arith.addf %445, %450 : vector<4x4x64xf32>
    %452 = vector.extract_strided_slice %409 {offsets = [0, 1, 0], sizes = [10, 4, 64], strides = [1, 1, 1]} : vector<10x10x64xf32> to vector<10x4x64xf32>
    %453 = vector.extract_strided_slice %452 {offsets = [0, 0, 0], sizes = [4, 4, 64], strides = [1, 1, 1]} : vector<10x4x64xf32> to vector<4x4x64xf32>
    %c1_102 = arith.constant 1 : index
    %c0_103 = arith.constant 0 : index
    %454 = vector.load %arg12[%c1_102, %c0_103] : memref<49x64xf32, #tpu.memory_space<vmem>>, vector<1x64xf32>
    %455 = vector.shape_cast %454 : vector<1x64xf32> to vector<1x1x64xf32>
    %456 = vector.broadcast %455 : vector<1x1x64xf32> to vector<4x4x64xf32>
    %457 = arith.mulf %453, %456 : vector<4x4x64xf32>
    %458 = arith.addf %451, %457 : vector<4x4x64xf32>
    %459 = vector.extract_strided_slice %452 {offsets = [1, 0, 0], sizes = [4, 4, 64], strides = [1, 1, 1]} : vector<10x4x64xf32> to vector<4x4x64xf32>
    %c8_104 = arith.constant 8 : index
    %c0_105 = arith.constant 0 : index
    %460 = vector.load %arg12[%c8_104, %c0_105] : memref<49x64xf32, #tpu.memory_space<vmem>>, vector<1x64xf32>
    %461 = vector.shape_cast %460 : vector<1x64xf32> to vector<1x1x64xf32>
    %462 = vector.broadcast %461 : vector<1x1x64xf32> to vector<4x4x64xf32>
    %463 = arith.mulf %459, %462 : vector<4x4x64xf32>
    %464 = arith.addf %458, %463 : vector<4x4x64xf32>
    %465 = vector.extract_strided_slice %452 {offsets = [2, 0, 0], sizes = [4, 4, 64], strides = [1, 1, 1]} : vector<10x4x64xf32> to vector<4x4x64xf32>
    %c15_106 = arith.constant 15 : index
    %c0_107 = arith.constant 0 : index
    %466 = vector.load %arg12[%c15_106, %c0_107] : memref<49x64xf32, #tpu.memory_space<vmem>>, vector<1x64xf32>
    %467 = vector.shape_cast %466 : vector<1x64xf32> to vector<1x1x64xf32>
    %468 = vector.broadcast %467 : vector<1x1x64xf32> to vector<4x4x64xf32>
    %469 = arith.mulf %465, %468 : vector<4x4x64xf32>
    %470 = arith.addf %464, %469 : vector<4x4x64xf32>
    %471 = vector.extract_strided_slice %452 {offsets = [3, 0, 0], sizes = [4, 4, 64], strides = [1, 1, 1]} : vector<10x4x64xf32> to vector<4x4x64xf32>
    %c22_108 = arith.constant 22 : index
    %c0_109 = arith.constant 0 : index
    %472 = vector.load %arg12[%c22_108, %c0_109] : memref<49x64xf32, #tpu.memory_space<vmem>>, vector<1x64xf32>
    %473 = vector.shape_cast %472 : vector<1x64xf32> to vector<1x1x64xf32>
    %474 = vector.broadcast %473 : vector<1x1x64xf32> to vector<4x4x64xf32>
    %475 = arith.mulf %471, %474 : vector<4x4x64xf32>
    %476 = arith.addf %470, %475 : vector<4x4x64xf32>
    %477 = vector.extract_strided_slice %452 {offsets = [4, 0, 0], sizes = [4, 4, 64], strides = [1, 1, 1]} : vector<10x4x64xf32> to vector<4x4x64xf32>
    %c29_110 = arith.constant 29 : index
    %c0_111 = arith.constant 0 : index
    %478 = vector.load %arg12[%c29_110, %c0_111] : memref<49x64xf32, #tpu.memory_space<vmem>>, vector<1x64xf32>
    %479 = vector.shape_cast %478 : vector<1x64xf32> to vector<1x1x64xf32>
    %480 = vector.broadcast %479 : vector<1x1x64xf32> to vector<4x4x64xf32>
    %481 = arith.mulf %477, %480 : vector<4x4x64xf32>
    %482 = arith.addf %476, %481 : vector<4x4x64xf32>
    %483 = vector.extract_strided_slice %452 {offsets = [5, 0, 0], sizes = [4, 4, 64], strides = [1, 1, 1]} : vector<10x4x64xf32> to vector<4x4x64xf32>
    %c36_112 = arith.constant 36 : index
    %c0_113 = arith.constant 0 : index
    %484 = vector.load %arg12[%c36_112, %c0_113] : memref<49x64xf32, #tpu.memory_space<vmem>>, vector<1x64xf32>
    %485 = vector.shape_cast %484 : vector<1x64xf32> to vector<1x1x64xf32>
    %486 = vector.broadcast %485 : vector<1x1x64xf32> to vector<4x4x64xf32>
    %487 = arith.mulf %483, %486 : vector<4x4x64xf32>
    %488 = arith.addf %482, %487 : vector<4x4x64xf32>
    %489 = vector.extract_strided_slice %452 {offsets = [6, 0, 0], sizes = [4, 4, 64], strides = [1, 1, 1]} : vector<10x4x64xf32> to vector<4x4x64xf32>
    %c43_114 = arith.constant 43 : index
    %c0_115 = arith.constant 0 : index
    %490 = vector.load %arg12[%c43_114, %c0_115] : memref<49x64xf32, #tpu.memory_space<vmem>>, vector<1x64xf32>
    %491 = vector.shape_cast %490 : vector<1x64xf32> to vector<1x1x64xf32>
    %492 = vector.broadcast %491 : vector<1x1x64xf32> to vector<4x4x64xf32>
    %493 = arith.mulf %489, %492 : vector<4x4x64xf32>
    %494 = arith.addf %488, %493 : vector<4x4x64xf32>
    %495 = vector.extract_strided_slice %409 {offsets = [0, 2, 0], sizes = [10, 4, 64], strides = [1, 1, 1]} : vector<10x10x64xf32> to vector<10x4x64xf32>
    %496 = vector.extract_strided_slice %495 {offsets = [0, 0, 0], sizes = [4, 4, 64], strides = [1, 1, 1]} : vector<10x4x64xf32> to vector<4x4x64xf32>
    %c2_116 = arith.constant 2 : index
    %c0_117 = arith.constant 0 : index
    %497 = vector.load %arg12[%c2_116, %c0_117] : memref<49x64xf32, #tpu.memory_space<vmem>>, vector<1x64xf32>
    %498 = vector.shape_cast %497 : vector<1x64xf32> to vector<1x1x64xf32>
    %499 = vector.broadcast %498 : vector<1x1x64xf32> to vector<4x4x64xf32>
    %500 = arith.mulf %496, %499 : vector<4x4x64xf32>
    %501 = arith.addf %494, %500 : vector<4x4x64xf32>
    %502 = vector.extract_strided_slice %495 {offsets = [1, 0, 0], sizes = [4, 4, 64], strides = [1, 1, 1]} : vector<10x4x64xf32> to vector<4x4x64xf32>
    %c9_118 = arith.constant 9 : index
    %c0_119 = arith.constant 0 : index
    %503 = vector.load %arg12[%c9_118, %c0_119] : memref<49x64xf32, #tpu.memory_space<vmem>>, vector<1x64xf32>
    %504 = vector.shape_cast %503 : vector<1x64xf32> to vector<1x1x64xf32>
    %505 = vector.broadcast %504 : vector<1x1x64xf32> to vector<4x4x64xf32>
    %506 = arith.mulf %502, %505 : vector<4x4x64xf32>
    %507 = arith.addf %501, %506 : vector<4x4x64xf32>
    %508 = vector.extract_strided_slice %495 {offsets = [2, 0, 0], sizes = [4, 4, 64], strides = [1, 1, 1]} : vector<10x4x64xf32> to vector<4x4x64xf32>
    %c16_120 = arith.constant 16 : index
    %c0_121 = arith.constant 0 : index
    %509 = vector.load %arg12[%c16_120, %c0_121] : memref<49x64xf32, #tpu.memory_space<vmem>>, vector<1x64xf32>
    %510 = vector.shape_cast %509 : vector<1x64xf32> to vector<1x1x64xf32>
    %511 = vector.broadcast %510 : vector<1x1x64xf32> to vector<4x4x64xf32>
    %512 = arith.mulf %508, %511 : vector<4x4x64xf32>
    %513 = arith.addf %507, %512 : vector<4x4x64xf32>
    %514 = vector.extract_strided_slice %495 {offsets = [3, 0, 0], sizes = [4, 4, 64], strides = [1, 1, 1]} : vector<10x4x64xf32> to vector<4x4x64xf32>
    %c23_122 = arith.constant 23 : index
    %c0_123 = arith.constant 0 : index
    %515 = vector.load %arg12[%c23_122, %c0_123] : memref<49x64xf32, #tpu.memory_space<vmem>>, vector<1x64xf32>
    %516 = vector.shape_cast %515 : vector<1x64xf32> to vector<1x1x64xf32>
    %517 = vector.broadcast %516 : vector<1x1x64xf32> to vector<4x4x64xf32>
    %518 = arith.mulf %514, %517 : vector<4x4x64xf32>
    %519 = arith.addf %513, %518 : vector<4x4x64xf32>
    %520 = vector.extract_strided_slice %495 {offsets = [4, 0, 0], sizes = [4, 4, 64], strides = [1, 1, 1]} : vector<10x4x64xf32> to vector<4x4x64xf32>
    %c30_124 = arith.constant 30 : index
    %c0_125 = arith.constant 0 : index
    %521 = vector.load %arg12[%c30_124, %c0_125] : memref<49x64xf32, #tpu.memory_space<vmem>>, vector<1x64xf32>
    %522 = vector.shape_cast %521 : vector<1x64xf32> to vector<1x1x64xf32>
    %523 = vector.broadcast %522 : vector<1x1x64xf32> to vector<4x4x64xf32>
    %524 = arith.mulf %520, %523 : vector<4x4x64xf32>
    %525 = arith.addf %519, %524 : vector<4x4x64xf32>
    %526 = vector.extract_strided_slice %495 {offsets = [5, 0, 0], sizes = [4, 4, 64], strides = [1, 1, 1]} : vector<10x4x64xf32> to vector<4x4x64xf32>
    %c37_126 = arith.constant 37 : index
    %c0_127 = arith.constant 0 : index
    %527 = vector.load %arg12[%c37_126, %c0_127] : memref<49x64xf32, #tpu.memory_space<vmem>>, vector<1x64xf32>
    %528 = vector.shape_cast %527 : vector<1x64xf32> to vector<1x1x64xf32>
    %529 = vector.broadcast %528 : vector<1x1x64xf32> to vector<4x4x64xf32>
    %530 = arith.mulf %526, %529 : vector<4x4x64xf32>
    %531 = arith.addf %525, %530 : vector<4x4x64xf32>
    %532 = vector.extract_strided_slice %495 {offsets = [6, 0, 0], sizes = [4, 4, 64], strides = [1, 1, 1]} : vector<10x4x64xf32> to vector<4x4x64xf32>
    %c44_128 = arith.constant 44 : index
    %c0_129 = arith.constant 0 : index
    %533 = vector.load %arg12[%c44_128, %c0_129] : memref<49x64xf32, #tpu.memory_space<vmem>>, vector<1x64xf32>
    %534 = vector.shape_cast %533 : vector<1x64xf32> to vector<1x1x64xf32>
    %535 = vector.broadcast %534 : vector<1x1x64xf32> to vector<4x4x64xf32>
    %536 = arith.mulf %532, %535 : vector<4x4x64xf32>
    %537 = arith.addf %531, %536 : vector<4x4x64xf32>
    %538 = vector.extract_strided_slice %409 {offsets = [0, 3, 0], sizes = [10, 4, 64], strides = [1, 1, 1]} : vector<10x10x64xf32> to vector<10x4x64xf32>
    %539 = vector.extract_strided_slice %538 {offsets = [0, 0, 0], sizes = [4, 4, 64], strides = [1, 1, 1]} : vector<10x4x64xf32> to vector<4x4x64xf32>
    %c3_130 = arith.constant 3 : index
    %c0_131 = arith.constant 0 : index
    %540 = vector.load %arg12[%c3_130, %c0_131] : memref<49x64xf32, #tpu.memory_space<vmem>>, vector<1x64xf32>
    %541 = vector.shape_cast %540 : vector<1x64xf32> to vector<1x1x64xf32>
    %542 = vector.broadcast %541 : vector<1x1x64xf32> to vector<4x4x64xf32>
    %543 = arith.mulf %539, %542 : vector<4x4x64xf32>
    %544 = arith.addf %537, %543 : vector<4x4x64xf32>
    %545 = vector.extract_strided_slice %538 {offsets = [1, 0, 0], sizes = [4, 4, 64], strides = [1, 1, 1]} : vector<10x4x64xf32> to vector<4x4x64xf32>
    %c10_132 = arith.constant 10 : index
    %c0_133 = arith.constant 0 : index
    %546 = vector.load %arg12[%c10_132, %c0_133] : memref<49x64xf32, #tpu.memory_space<vmem>>, vector<1x64xf32>
    %547 = vector.shape_cast %546 : vector<1x64xf32> to vector<1x1x64xf32>
    %548 = vector.broadcast %547 : vector<1x1x64xf32> to vector<4x4x64xf32>
    %549 = arith.mulf %545, %548 : vector<4x4x64xf32>
    %550 = arith.addf %544, %549 : vector<4x4x64xf32>
    %551 = vector.extract_strided_slice %538 {offsets = [2, 0, 0], sizes = [4, 4, 64], strides = [1, 1, 1]} : vector<10x4x64xf32> to vector<4x4x64xf32>
    %c17_134 = arith.constant 17 : index
    %c0_135 = arith.constant 0 : index
    %552 = vector.load %arg12[%c17_134, %c0_135] : memref<49x64xf32, #tpu.memory_space<vmem>>, vector<1x64xf32>
    %553 = vector.shape_cast %552 : vector<1x64xf32> to vector<1x1x64xf32>
    %554 = vector.broadcast %553 : vector<1x1x64xf32> to vector<4x4x64xf32>
    %555 = arith.mulf %551, %554 : vector<4x4x64xf32>
    %556 = arith.addf %550, %555 : vector<4x4x64xf32>
    %557 = vector.extract_strided_slice %538 {offsets = [3, 0, 0], sizes = [4, 4, 64], strides = [1, 1, 1]} : vector<10x4x64xf32> to vector<4x4x64xf32>
    %c24_136 = arith.constant 24 : index
    %c0_137 = arith.constant 0 : index
    %558 = vector.load %arg12[%c24_136, %c0_137] : memref<49x64xf32, #tpu.memory_space<vmem>>, vector<1x64xf32>
    %559 = vector.shape_cast %558 : vector<1x64xf32> to vector<1x1x64xf32>
    %560 = vector.broadcast %559 : vector<1x1x64xf32> to vector<4x4x64xf32>
    %561 = arith.mulf %557, %560 : vector<4x4x64xf32>
    %562 = arith.addf %556, %561 : vector<4x4x64xf32>
    %563 = vector.extract_strided_slice %538 {offsets = [4, 0, 0], sizes = [4, 4, 64], strides = [1, 1, 1]} : vector<10x4x64xf32> to vector<4x4x64xf32>
    %c31_138 = arith.constant 31 : index
    %c0_139 = arith.constant 0 : index
    %564 = vector.load %arg12[%c31_138, %c0_139] : memref<49x64xf32, #tpu.memory_space<vmem>>, vector<1x64xf32>
    %565 = vector.shape_cast %564 : vector<1x64xf32> to vector<1x1x64xf32>
    %566 = vector.broadcast %565 : vector<1x1x64xf32> to vector<4x4x64xf32>
    %567 = arith.mulf %563, %566 : vector<4x4x64xf32>
    %568 = arith.addf %562, %567 : vector<4x4x64xf32>
    %569 = vector.extract_strided_slice %538 {offsets = [5, 0, 0], sizes = [4, 4, 64], strides = [1, 1, 1]} : vector<10x4x64xf32> to vector<4x4x64xf32>
    %c38_140 = arith.constant 38 : index
    %c0_141 = arith.constant 0 : index
    %570 = vector.load %arg12[%c38_140, %c0_141] : memref<49x64xf32, #tpu.memory_space<vmem>>, vector<1x64xf32>
    %571 = vector.shape_cast %570 : vector<1x64xf32> to vector<1x1x64xf32>
    %572 = vector.broadcast %571 : vector<1x1x64xf32> to vector<4x4x64xf32>
    %573 = arith.mulf %569, %572 : vector<4x4x64xf32>
    %574 = arith.addf %568, %573 : vector<4x4x64xf32>
    %575 = vector.extract_strided_slice %538 {offsets = [6, 0, 0], sizes = [4, 4, 64], strides = [1, 1, 1]} : vector<10x4x64xf32> to vector<4x4x64xf32>
    %c45_142 = arith.constant 45 : index
    %c0_143 = arith.constant 0 : index
    %576 = vector.load %arg12[%c45_142, %c0_143] : memref<49x64xf32, #tpu.memory_space<vmem>>, vector<1x64xf32>
    %577 = vector.shape_cast %576 : vector<1x64xf32> to vector<1x1x64xf32>
    %578 = vector.broadcast %577 : vector<1x1x64xf32> to vector<4x4x64xf32>
    %579 = arith.mulf %575, %578 : vector<4x4x64xf32>
    %580 = arith.addf %574, %579 : vector<4x4x64xf32>
    %581 = vector.extract_strided_slice %409 {offsets = [0, 4, 0], sizes = [10, 4, 64], strides = [1, 1, 1]} : vector<10x10x64xf32> to vector<10x4x64xf32>
    %582 = vector.extract_strided_slice %581 {offsets = [0, 0, 0], sizes = [4, 4, 64], strides = [1, 1, 1]} : vector<10x4x64xf32> to vector<4x4x64xf32>
    %c4_144 = arith.constant 4 : index
    %c0_145 = arith.constant 0 : index
    %583 = vector.load %arg12[%c4_144, %c0_145] : memref<49x64xf32, #tpu.memory_space<vmem>>, vector<1x64xf32>
    %584 = vector.shape_cast %583 : vector<1x64xf32> to vector<1x1x64xf32>
    %585 = vector.broadcast %584 : vector<1x1x64xf32> to vector<4x4x64xf32>
    %586 = arith.mulf %582, %585 : vector<4x4x64xf32>
    %587 = arith.addf %580, %586 : vector<4x4x64xf32>
    %588 = vector.extract_strided_slice %581 {offsets = [1, 0, 0], sizes = [4, 4, 64], strides = [1, 1, 1]} : vector<10x4x64xf32> to vector<4x4x64xf32>
    %c11_146 = arith.constant 11 : index
    %c0_147 = arith.constant 0 : index
    %589 = vector.load %arg12[%c11_146, %c0_147] : memref<49x64xf32, #tpu.memory_space<vmem>>, vector<1x64xf32>
    %590 = vector.shape_cast %589 : vector<1x64xf32> to vector<1x1x64xf32>
    %591 = vector.broadcast %590 : vector<1x1x64xf32> to vector<4x4x64xf32>
    %592 = arith.mulf %588, %591 : vector<4x4x64xf32>
    %593 = arith.addf %587, %592 : vector<4x4x64xf32>
    %594 = vector.extract_strided_slice %581 {offsets = [2, 0, 0], sizes = [4, 4, 64], strides = [1, 1, 1]} : vector<10x4x64xf32> to vector<4x4x64xf32>
    %c18_148 = arith.constant 18 : index
    %c0_149 = arith.constant 0 : index
    %595 = vector.load %arg12[%c18_148, %c0_149] : memref<49x64xf32, #tpu.memory_space<vmem>>, vector<1x64xf32>
    %596 = vector.shape_cast %595 : vector<1x64xf32> to vector<1x1x64xf32>
    %597 = vector.broadcast %596 : vector<1x1x64xf32> to vector<4x4x64xf32>
    %598 = arith.mulf %594, %597 : vector<4x4x64xf32>
    %599 = arith.addf %593, %598 : vector<4x4x64xf32>
    %600 = vector.extract_strided_slice %581 {offsets = [3, 0, 0], sizes = [4, 4, 64], strides = [1, 1, 1]} : vector<10x4x64xf32> to vector<4x4x64xf32>
    %c25_150 = arith.constant 25 : index
    %c0_151 = arith.constant 0 : index
    %601 = vector.load %arg12[%c25_150, %c0_151] : memref<49x64xf32, #tpu.memory_space<vmem>>, vector<1x64xf32>
    %602 = vector.shape_cast %601 : vector<1x64xf32> to vector<1x1x64xf32>
    %603 = vector.broadcast %602 : vector<1x1x64xf32> to vector<4x4x64xf32>
    %604 = arith.mulf %600, %603 : vector<4x4x64xf32>
    %605 = arith.addf %599, %604 : vector<4x4x64xf32>
    %606 = vector.extract_strided_slice %581 {offsets = [4, 0, 0], sizes = [4, 4, 64], strides = [1, 1, 1]} : vector<10x4x64xf32> to vector<4x4x64xf32>
    %c32_152 = arith.constant 32 : index
    %c0_153 = arith.constant 0 : index
    %607 = vector.load %arg12[%c32_152, %c0_153] : memref<49x64xf32, #tpu.memory_space<vmem>>, vector<1x64xf32>
    %608 = vector.shape_cast %607 : vector<1x64xf32> to vector<1x1x64xf32>
    %609 = vector.broadcast %608 : vector<1x1x64xf32> to vector<4x4x64xf32>
    %610 = arith.mulf %606, %609 : vector<4x4x64xf32>
    %611 = arith.addf %605, %610 : vector<4x4x64xf32>
    %612 = vector.extract_strided_slice %581 {offsets = [5, 0, 0], sizes = [4, 4, 64], strides = [1, 1, 1]} : vector<10x4x64xf32> to vector<4x4x64xf32>
    %c39_154 = arith.constant 39 : index
    %c0_155 = arith.constant 0 : index
    %613 = vector.load %arg12[%c39_154, %c0_155] : memref<49x64xf32, #tpu.memory_space<vmem>>, vector<1x64xf32>
    %614 = vector.shape_cast %613 : vector<1x64xf32> to vector<1x1x64xf32>
    %615 = vector.broadcast %614 : vector<1x1x64xf32> to vector<4x4x64xf32>
    %616 = arith.mulf %612, %615 : vector<4x4x64xf32>
    %617 = arith.addf %611, %616 : vector<4x4x64xf32>
    %618 = vector.extract_strided_slice %581 {offsets = [6, 0, 0], sizes = [4, 4, 64], strides = [1, 1, 1]} : vector<10x4x64xf32> to vector<4x4x64xf32>
    %c46_156 = arith.constant 46 : index
    %c0_157 = arith.constant 0 : index
    %619 = vector.load %arg12[%c46_156, %c0_157] : memref<49x64xf32, #tpu.memory_space<vmem>>, vector<1x64xf32>
    %620 = vector.shape_cast %619 : vector<1x64xf32> to vector<1x1x64xf32>
    %621 = vector.broadcast %620 : vector<1x1x64xf32> to vector<4x4x64xf32>
    %622 = arith.mulf %618, %621 : vector<4x4x64xf32>
    %623 = arith.addf %617, %622 : vector<4x4x64xf32>
    %624 = vector.extract_strided_slice %409 {offsets = [0, 5, 0], sizes = [10, 4, 64], strides = [1, 1, 1]} : vector<10x10x64xf32> to vector<10x4x64xf32>
    %625 = vector.extract_strided_slice %624 {offsets = [0, 0, 0], sizes = [4, 4, 64], strides = [1, 1, 1]} : vector<10x4x64xf32> to vector<4x4x64xf32>
    %c5_158 = arith.constant 5 : index
    %c0_159 = arith.constant 0 : index
    %626 = vector.load %arg12[%c5_158, %c0_159] : memref<49x64xf32, #tpu.memory_space<vmem>>, vector<1x64xf32>
    %627 = vector.shape_cast %626 : vector<1x64xf32> to vector<1x1x64xf32>
    %628 = vector.broadcast %627 : vector<1x1x64xf32> to vector<4x4x64xf32>
    %629 = arith.mulf %625, %628 : vector<4x4x64xf32>
    %630 = arith.addf %623, %629 : vector<4x4x64xf32>
    %631 = vector.extract_strided_slice %624 {offsets = [1, 0, 0], sizes = [4, 4, 64], strides = [1, 1, 1]} : vector<10x4x64xf32> to vector<4x4x64xf32>
    %c12_160 = arith.constant 12 : index
    %c0_161 = arith.constant 0 : index
    %632 = vector.load %arg12[%c12_160, %c0_161] : memref<49x64xf32, #tpu.memory_space<vmem>>, vector<1x64xf32>
    %633 = vector.shape_cast %632 : vector<1x64xf32> to vector<1x1x64xf32>
    %634 = vector.broadcast %633 : vector<1x1x64xf32> to vector<4x4x64xf32>
    %635 = arith.mulf %631, %634 : vector<4x4x64xf32>
    %636 = arith.addf %630, %635 : vector<4x4x64xf32>
    %637 = vector.extract_strided_slice %624 {offsets = [2, 0, 0], sizes = [4, 4, 64], strides = [1, 1, 1]} : vector<10x4x64xf32> to vector<4x4x64xf32>
    %c19_162 = arith.constant 19 : index
    %c0_163 = arith.constant 0 : index
    %638 = vector.load %arg12[%c19_162, %c0_163] : memref<49x64xf32, #tpu.memory_space<vmem>>, vector<1x64xf32>
    %639 = vector.shape_cast %638 : vector<1x64xf32> to vector<1x1x64xf32>
    %640 = vector.broadcast %639 : vector<1x1x64xf32> to vector<4x4x64xf32>
    %641 = arith.mulf %637, %640 : vector<4x4x64xf32>
    %642 = arith.addf %636, %641 : vector<4x4x64xf32>
    %643 = vector.extract_strided_slice %624 {offsets = [3, 0, 0], sizes = [4, 4, 64], strides = [1, 1, 1]} : vector<10x4x64xf32> to vector<4x4x64xf32>
    %c26_164 = arith.constant 26 : index
    %c0_165 = arith.constant 0 : index
    %644 = vector.load %arg12[%c26_164, %c0_165] : memref<49x64xf32, #tpu.memory_space<vmem>>, vector<1x64xf32>
    %645 = vector.shape_cast %644 : vector<1x64xf32> to vector<1x1x64xf32>
    %646 = vector.broadcast %645 : vector<1x1x64xf32> to vector<4x4x64xf32>
    %647 = arith.mulf %643, %646 : vector<4x4x64xf32>
    %648 = arith.addf %642, %647 : vector<4x4x64xf32>
    %649 = vector.extract_strided_slice %624 {offsets = [4, 0, 0], sizes = [4, 4, 64], strides = [1, 1, 1]} : vector<10x4x64xf32> to vector<4x4x64xf32>
    %c33_166 = arith.constant 33 : index
    %c0_167 = arith.constant 0 : index
    %650 = vector.load %arg12[%c33_166, %c0_167] : memref<49x64xf32, #tpu.memory_space<vmem>>, vector<1x64xf32>
    %651 = vector.shape_cast %650 : vector<1x64xf32> to vector<1x1x64xf32>
    %652 = vector.broadcast %651 : vector<1x1x64xf32> to vector<4x4x64xf32>
    %653 = arith.mulf %649, %652 : vector<4x4x64xf32>
    %654 = arith.addf %648, %653 : vector<4x4x64xf32>
    %655 = vector.extract_strided_slice %624 {offsets = [5, 0, 0], sizes = [4, 4, 64], strides = [1, 1, 1]} : vector<10x4x64xf32> to vector<4x4x64xf32>
    %c40_168 = arith.constant 40 : index
    %c0_169 = arith.constant 0 : index
    %656 = vector.load %arg12[%c40_168, %c0_169] : memref<49x64xf32, #tpu.memory_space<vmem>>, vector<1x64xf32>
    %657 = vector.shape_cast %656 : vector<1x64xf32> to vector<1x1x64xf32>
    %658 = vector.broadcast %657 : vector<1x1x64xf32> to vector<4x4x64xf32>
    %659 = arith.mulf %655, %658 : vector<4x4x64xf32>
    %660 = arith.addf %654, %659 : vector<4x4x64xf32>
    %661 = vector.extract_strided_slice %624 {offsets = [6, 0, 0], sizes = [4, 4, 64], strides = [1, 1, 1]} : vector<10x4x64xf32> to vector<4x4x64xf32>
    %c47_170 = arith.constant 47 : index
    %c0_171 = arith.constant 0 : index
    %662 = vector.load %arg12[%c47_170, %c0_171] : memref<49x64xf32, #tpu.memory_space<vmem>>, vector<1x64xf32>
    %663 = vector.shape_cast %662 : vector<1x64xf32> to vector<1x1x64xf32>
    %664 = vector.broadcast %663 : vector<1x1x64xf32> to vector<4x4x64xf32>
    %665 = arith.mulf %661, %664 : vector<4x4x64xf32>
    %666 = arith.addf %660, %665 : vector<4x4x64xf32>
    %667 = vector.extract_strided_slice %409 {offsets = [0, 6, 0], sizes = [10, 4, 64], strides = [1, 1, 1]} : vector<10x10x64xf32> to vector<10x4x64xf32>
    %668 = vector.extract_strided_slice %667 {offsets = [0, 0, 0], sizes = [4, 4, 64], strides = [1, 1, 1]} : vector<10x4x64xf32> to vector<4x4x64xf32>
    %c6_172 = arith.constant 6 : index
    %c0_173 = arith.constant 0 : index
    %669 = vector.load %arg12[%c6_172, %c0_173] : memref<49x64xf32, #tpu.memory_space<vmem>>, vector<1x64xf32>
    %670 = vector.shape_cast %669 : vector<1x64xf32> to vector<1x1x64xf32>
    %671 = vector.broadcast %670 : vector<1x1x64xf32> to vector<4x4x64xf32>
    %672 = arith.mulf %668, %671 : vector<4x4x64xf32>
    %673 = arith.addf %666, %672 : vector<4x4x64xf32>
    %674 = vector.extract_strided_slice %667 {offsets = [1, 0, 0], sizes = [4, 4, 64], strides = [1, 1, 1]} : vector<10x4x64xf32> to vector<4x4x64xf32>
    %c13_174 = arith.constant 13 : index
    %c0_175 = arith.constant 0 : index
    %675 = vector.load %arg12[%c13_174, %c0_175] : memref<49x64xf32, #tpu.memory_space<vmem>>, vector<1x64xf32>
    %676 = vector.shape_cast %675 : vector<1x64xf32> to vector<1x1x64xf32>
    %677 = vector.broadcast %676 : vector<1x1x64xf32> to vector<4x4x64xf32>
    %678 = arith.mulf %674, %677 : vector<4x4x64xf32>
    %679 = arith.addf %673, %678 : vector<4x4x64xf32>
    %680 = vector.extract_strided_slice %667 {offsets = [2, 0, 0], sizes = [4, 4, 64], strides = [1, 1, 1]} : vector<10x4x64xf32> to vector<4x4x64xf32>
    %c20_176 = arith.constant 20 : index
    %c0_177 = arith.constant 0 : index
    %681 = vector.load %arg12[%c20_176, %c0_177] : memref<49x64xf32, #tpu.memory_space<vmem>>, vector<1x64xf32>
    %682 = vector.shape_cast %681 : vector<1x64xf32> to vector<1x1x64xf32>
    %683 = vector.broadcast %682 : vector<1x1x64xf32> to vector<4x4x64xf32>
    %684 = arith.mulf %680, %683 : vector<4x4x64xf32>
    %685 = arith.addf %679, %684 : vector<4x4x64xf32>
    %686 = vector.extract_strided_slice %667 {offsets = [3, 0, 0], sizes = [4, 4, 64], strides = [1, 1, 1]} : vector<10x4x64xf32> to vector<4x4x64xf32>
    %c27_178 = arith.constant 27 : index
    %c0_179 = arith.constant 0 : index
    %687 = vector.load %arg12[%c27_178, %c0_179] : memref<49x64xf32, #tpu.memory_space<vmem>>, vector<1x64xf32>
    %688 = vector.shape_cast %687 : vector<1x64xf32> to vector<1x1x64xf32>
    %689 = vector.broadcast %688 : vector<1x1x64xf32> to vector<4x4x64xf32>
    %690 = arith.mulf %686, %689 : vector<4x4x64xf32>
    %691 = arith.addf %685, %690 : vector<4x4x64xf32>
    %692 = vector.extract_strided_slice %667 {offsets = [4, 0, 0], sizes = [4, 4, 64], strides = [1, 1, 1]} : vector<10x4x64xf32> to vector<4x4x64xf32>
    %c34_180 = arith.constant 34 : index
    %c0_181 = arith.constant 0 : index
    %693 = vector.load %arg12[%c34_180, %c0_181] : memref<49x64xf32, #tpu.memory_space<vmem>>, vector<1x64xf32>
    %694 = vector.shape_cast %693 : vector<1x64xf32> to vector<1x1x64xf32>
    %695 = vector.broadcast %694 : vector<1x1x64xf32> to vector<4x4x64xf32>
    %696 = arith.mulf %692, %695 : vector<4x4x64xf32>
    %697 = arith.addf %691, %696 : vector<4x4x64xf32>
    %698 = vector.extract_strided_slice %667 {offsets = [5, 0, 0], sizes = [4, 4, 64], strides = [1, 1, 1]} : vector<10x4x64xf32> to vector<4x4x64xf32>
    %c41_182 = arith.constant 41 : index
    %c0_183 = arith.constant 0 : index
    %699 = vector.load %arg12[%c41_182, %c0_183] : memref<49x64xf32, #tpu.memory_space<vmem>>, vector<1x64xf32>
    %700 = vector.shape_cast %699 : vector<1x64xf32> to vector<1x1x64xf32>
    %701 = vector.broadcast %700 : vector<1x1x64xf32> to vector<4x4x64xf32>
    %702 = arith.mulf %698, %701 : vector<4x4x64xf32>
    %703 = arith.addf %697, %702 : vector<4x4x64xf32>
    %704 = vector.extract_strided_slice %667 {offsets = [6, 0, 0], sizes = [4, 4, 64], strides = [1, 1, 1]} : vector<10x4x64xf32> to vector<4x4x64xf32>
    %c48_184 = arith.constant 48 : index
    %c0_185 = arith.constant 0 : index
    %705 = vector.load %arg12[%c48_184, %c0_185] : memref<49x64xf32, #tpu.memory_space<vmem>>, vector<1x64xf32>
    %706 = vector.shape_cast %705 : vector<1x64xf32> to vector<1x1x64xf32>
    %707 = vector.broadcast %706 : vector<1x1x64xf32> to vector<4x4x64xf32>
    %708 = arith.mulf %704, %707 : vector<4x4x64xf32>
    %709 = arith.addf %703, %708 : vector<4x4x64xf32>
    %710 = vector.shape_cast %709 : vector<4x4x64xf32> to vector<16x64xf32>
    %c0_186 = arith.constant 0 : index
    %c0_187 = arith.constant 0 : index
    %711 = vector.load %arg13[%c0_186, %c0_187] : memref<64x64xf32, #tpu.memory_space<vmem>>, vector<64x64xf32>
    %cst_188 = arith.constant dense<0.000000e+00> : vector<16x64xf32>
    %712 = tpu.matmul %710, %711, %cst_188 {dimension_numbers = #tpu.dot_dimension_numbers<[1], [0], [0], [1], [0, 0, 1, 1], [], []>} : vector<16x64xf32>, vector<64x64xf32>, vector<16x64xf32> -> vector<16x64xf32>
    %c0_189 = arith.constant 0 : index
    %c0_190 = arith.constant 0 : index
    %713 = vector.load %arg14[%c0_189, %c0_190] : memref<2x64xf32, #tpu.memory_space<vmem>>, vector<1x64xf32>
    %714 = vector.broadcast %713 : vector<1x64xf32> to vector<16x64xf32>
    %715 = arith.mulf %712, %714 : vector<16x64xf32>
    %c1_191 = arith.constant 1 : index
    %c0_192 = arith.constant 0 : index
    %716 = vector.load %arg14[%c1_191, %c0_192] : memref<2x64xf32, #tpu.memory_space<vmem>>, vector<1x64xf32>
    %717 = vector.broadcast %716 : vector<1x64xf32> to vector<16x64xf32>
    %718 = arith.addf %715, %717 : vector<16x64xf32>
    %719 = vector.extract_strided_slice %718 {offsets = [0, 0], sizes = [16, 16], strides = [1, 1]} : vector<16x64xf32> to vector<16x16xf32>
    %720 = vector.extract_strided_slice %718 {offsets = [0, 16], sizes = [16, 16], strides = [1, 1]} : vector<16x64xf32> to vector<16x16xf32>
    %721 = vector.extract_strided_slice %718 {offsets = [0, 32], sizes = [16, 16], strides = [1, 1]} : vector<16x64xf32> to vector<16x16xf32>
    %722 = vector.extract_strided_slice %718 {offsets = [0, 48], sizes = [16, 16], strides = [1, 1]} : vector<16x64xf32> to vector<16x16xf32>
    %723 = arith.addf %722, %719 : vector<16x16xf32>
    %724 = vector.shape_cast %723 : vector<16x16xf32> to vector<4x4x16xf32>
    %cst_193 = arith.constant 0.000000e+00 : f32
    %725 = vector.broadcast %cst_193 : f32 to vector<4x4x16xf32>
    %726 = arith.maximumf %724, %725 : vector<4x4x16xf32>
    %cst_194 = arith.constant 0.000000e+00 : f32
    %727 = vector.broadcast %cst_194 : f32 to vector<1x4x16xf32>
    %cst_195 = arith.constant 0.000000e+00 : f32
    %728 = vector.broadcast %cst_195 : f32 to vector<1x4x16xf32>
    %729 = tpu.concatenate %727, %726, %728 in 0 : vector<1x4x16xf32>, vector<4x4x16xf32>, vector<1x4x16xf32> -> vector<6x4x16xf32>
    %cst_196 = arith.constant 0.000000e+00 : f32
    %730 = vector.broadcast %cst_196 : f32 to vector<6x1x16xf32>
    %cst_197 = arith.constant 0.000000e+00 : f32
    %731 = vector.broadcast %cst_197 : f32 to vector<6x1x16xf32>
    %732 = tpu.concatenate %730, %729, %731 in 1 : vector<6x1x16xf32>, vector<6x4x16xf32>, vector<6x1x16xf32> -> vector<6x6x16xf32>
    %733 = vector.extract_strided_slice %732 {offsets = [0, 0, 0], sizes = [6, 4, 16], strides = [1, 1, 1]} : vector<6x6x16xf32> to vector<6x4x16xf32>
    %734 = vector.extract_strided_slice %733 {offsets = [0, 0, 0], sizes = [4, 4, 16], strides = [1, 1, 1]} : vector<6x4x16xf32> to vector<4x4x16xf32>
    %c0_198 = arith.constant 0 : index
    %c0_199 = arith.constant 0 : index
    %735 = vector.load %arg15[%c0_198, %c0_199] : memref<9x16xf32, #tpu.memory_space<vmem>>, vector<1x16xf32>
    %736 = vector.shape_cast %735 : vector<1x16xf32> to vector<1x1x16xf32>
    %737 = vector.broadcast %736 : vector<1x1x16xf32> to vector<4x4x16xf32>
    %738 = arith.mulf %734, %737 : vector<4x4x16xf32>
    %739 = vector.extract_strided_slice %733 {offsets = [1, 0, 0], sizes = [4, 4, 16], strides = [1, 1, 1]} : vector<6x4x16xf32> to vector<4x4x16xf32>
    %c3_200 = arith.constant 3 : index
    %c0_201 = arith.constant 0 : index
    %740 = vector.load %arg15[%c3_200, %c0_201] : memref<9x16xf32, #tpu.memory_space<vmem>>, vector<1x16xf32>
    %741 = vector.shape_cast %740 : vector<1x16xf32> to vector<1x1x16xf32>
    %742 = vector.broadcast %741 : vector<1x1x16xf32> to vector<4x4x16xf32>
    %743 = arith.mulf %739, %742 : vector<4x4x16xf32>
    %744 = arith.addf %738, %743 : vector<4x4x16xf32>
    %745 = vector.extract_strided_slice %733 {offsets = [2, 0, 0], sizes = [4, 4, 16], strides = [1, 1, 1]} : vector<6x4x16xf32> to vector<4x4x16xf32>
    %c6_202 = arith.constant 6 : index
    %c0_203 = arith.constant 0 : index
    %746 = vector.load %arg15[%c6_202, %c0_203] : memref<9x16xf32, #tpu.memory_space<vmem>>, vector<1x16xf32>
    %747 = vector.shape_cast %746 : vector<1x16xf32> to vector<1x1x16xf32>
    %748 = vector.broadcast %747 : vector<1x1x16xf32> to vector<4x4x16xf32>
    %749 = arith.mulf %745, %748 : vector<4x4x16xf32>
    %750 = arith.addf %744, %749 : vector<4x4x16xf32>
    %751 = vector.extract_strided_slice %732 {offsets = [0, 1, 0], sizes = [6, 4, 16], strides = [1, 1, 1]} : vector<6x6x16xf32> to vector<6x4x16xf32>
    %752 = vector.extract_strided_slice %751 {offsets = [0, 0, 0], sizes = [4, 4, 16], strides = [1, 1, 1]} : vector<6x4x16xf32> to vector<4x4x16xf32>
    %c1_204 = arith.constant 1 : index
    %c0_205 = arith.constant 0 : index
    %753 = vector.load %arg15[%c1_204, %c0_205] : memref<9x16xf32, #tpu.memory_space<vmem>>, vector<1x16xf32>
    %754 = vector.shape_cast %753 : vector<1x16xf32> to vector<1x1x16xf32>
    %755 = vector.broadcast %754 : vector<1x1x16xf32> to vector<4x4x16xf32>
    %756 = arith.mulf %752, %755 : vector<4x4x16xf32>
    %757 = arith.addf %750, %756 : vector<4x4x16xf32>
    %758 = vector.extract_strided_slice %751 {offsets = [1, 0, 0], sizes = [4, 4, 16], strides = [1, 1, 1]} : vector<6x4x16xf32> to vector<4x4x16xf32>
    %c4_206 = arith.constant 4 : index
    %c0_207 = arith.constant 0 : index
    %759 = vector.load %arg15[%c4_206, %c0_207] : memref<9x16xf32, #tpu.memory_space<vmem>>, vector<1x16xf32>
    %760 = vector.shape_cast %759 : vector<1x16xf32> to vector<1x1x16xf32>
    %761 = vector.broadcast %760 : vector<1x1x16xf32> to vector<4x4x16xf32>
    %762 = arith.mulf %758, %761 : vector<4x4x16xf32>
    %763 = arith.addf %757, %762 : vector<4x4x16xf32>
    %764 = vector.extract_strided_slice %751 {offsets = [2, 0, 0], sizes = [4, 4, 16], strides = [1, 1, 1]} : vector<6x4x16xf32> to vector<4x4x16xf32>
    %c7_208 = arith.constant 7 : index
    %c0_209 = arith.constant 0 : index
    %765 = vector.load %arg15[%c7_208, %c0_209] : memref<9x16xf32, #tpu.memory_space<vmem>>, vector<1x16xf32>
    %766 = vector.shape_cast %765 : vector<1x16xf32> to vector<1x1x16xf32>
    %767 = vector.broadcast %766 : vector<1x1x16xf32> to vector<4x4x16xf32>
    %768 = arith.mulf %764, %767 : vector<4x4x16xf32>
    %769 = arith.addf %763, %768 : vector<4x4x16xf32>
    %770 = vector.extract_strided_slice %732 {offsets = [0, 2, 0], sizes = [6, 4, 16], strides = [1, 1, 1]} : vector<6x6x16xf32> to vector<6x4x16xf32>
    %771 = vector.extract_strided_slice %770 {offsets = [0, 0, 0], sizes = [4, 4, 16], strides = [1, 1, 1]} : vector<6x4x16xf32> to vector<4x4x16xf32>
    %c2_210 = arith.constant 2 : index
    %c0_211 = arith.constant 0 : index
    %772 = vector.load %arg15[%c2_210, %c0_211] : memref<9x16xf32, #tpu.memory_space<vmem>>, vector<1x16xf32>
    %773 = vector.shape_cast %772 : vector<1x16xf32> to vector<1x1x16xf32>
    %774 = vector.broadcast %773 : vector<1x1x16xf32> to vector<4x4x16xf32>
    %775 = arith.mulf %771, %774 : vector<4x4x16xf32>
    %776 = arith.addf %769, %775 : vector<4x4x16xf32>
    %777 = vector.extract_strided_slice %770 {offsets = [1, 0, 0], sizes = [4, 4, 16], strides = [1, 1, 1]} : vector<6x4x16xf32> to vector<4x4x16xf32>
    %c5_212 = arith.constant 5 : index
    %c0_213 = arith.constant 0 : index
    %778 = vector.load %arg15[%c5_212, %c0_213] : memref<9x16xf32, #tpu.memory_space<vmem>>, vector<1x16xf32>
    %779 = vector.shape_cast %778 : vector<1x16xf32> to vector<1x1x16xf32>
    %780 = vector.broadcast %779 : vector<1x1x16xf32> to vector<4x4x16xf32>
    %781 = arith.mulf %777, %780 : vector<4x4x16xf32>
    %782 = arith.addf %776, %781 : vector<4x4x16xf32>
    %783 = vector.extract_strided_slice %770 {offsets = [2, 0, 0], sizes = [4, 4, 16], strides = [1, 1, 1]} : vector<6x4x16xf32> to vector<4x4x16xf32>
    %c8_214 = arith.constant 8 : index
    %c0_215 = arith.constant 0 : index
    %784 = vector.load %arg15[%c8_214, %c0_215] : memref<9x16xf32, #tpu.memory_space<vmem>>, vector<1x16xf32>
    %785 = vector.shape_cast %784 : vector<1x16xf32> to vector<1x1x16xf32>
    %786 = vector.broadcast %785 : vector<1x1x16xf32> to vector<4x4x16xf32>
    %787 = arith.mulf %783, %786 : vector<4x4x16xf32>
    %788 = arith.addf %782, %787 : vector<4x4x16xf32>
    %789 = vector.shape_cast %788 : vector<4x4x16xf32> to vector<16x16xf32>
    %c0_216 = arith.constant 0 : index
    %c0_217 = arith.constant 0 : index
    %790 = vector.load %arg16[%c0_216, %c0_217] : memref<16x16xf32, #tpu.memory_space<vmem>>, vector<16x16xf32>
    %cst_218 = arith.constant dense<0.000000e+00> : vector<16x16xf32>
    %791 = tpu.matmul %789, %790, %cst_218 {dimension_numbers = #tpu.dot_dimension_numbers<[1], [0], [0], [1], [0, 0, 1, 1], [], []>} : vector<16x16xf32>, vector<16x16xf32>, vector<16x16xf32> -> vector<16x16xf32>
    %c0_219 = arith.constant 0 : index
    %c0_220 = arith.constant 0 : index
    %792 = vector.load %arg17[%c0_219, %c0_220] : memref<2x16xf32, #tpu.memory_space<vmem>>, vector<1x16xf32>
    %793 = vector.broadcast %792 : vector<1x16xf32> to vector<16x16xf32>
    %794 = arith.mulf %791, %793 : vector<16x16xf32>
    %c1_221 = arith.constant 1 : index
    %c0_222 = arith.constant 0 : index
    %795 = vector.load %arg17[%c1_221, %c0_222] : memref<2x16xf32, #tpu.memory_space<vmem>>, vector<1x16xf32>
    %796 = vector.broadcast %795 : vector<1x16xf32> to vector<16x16xf32>
    %797 = arith.addf %794, %796 : vector<16x16xf32>
    %cst_223 = arith.constant 0.000000e+00 : f32
    %798 = vector.broadcast %cst_223 : f32 to vector<16x16xf32>
    %799 = arith.maximumf %797, %798 : vector<16x16xf32>
    %800 = vector.shape_cast %799 : vector<16x16xf32> to vector<4x4x16xf32>
    %cst_224 = arith.constant 0.000000e+00 : f32
    %801 = vector.broadcast %cst_224 : f32 to vector<1x4x16xf32>
    %cst_225 = arith.constant 0.000000e+00 : f32
    %802 = vector.broadcast %cst_225 : f32 to vector<1x4x16xf32>
    %803 = tpu.concatenate %801, %800, %802 in 0 : vector<1x4x16xf32>, vector<4x4x16xf32>, vector<1x4x16xf32> -> vector<6x4x16xf32>
    %cst_226 = arith.constant 0.000000e+00 : f32
    %804 = vector.broadcast %cst_226 : f32 to vector<6x1x16xf32>
    %cst_227 = arith.constant 0.000000e+00 : f32
    %805 = vector.broadcast %cst_227 : f32 to vector<6x1x16xf32>
    %806 = tpu.concatenate %804, %803, %805 in 1 : vector<6x1x16xf32>, vector<6x4x16xf32>, vector<6x1x16xf32> -> vector<6x6x16xf32>
    %807 = vector.extract_strided_slice %806 {offsets = [0, 0, 0], sizes = [6, 4, 16], strides = [1, 1, 1]} : vector<6x6x16xf32> to vector<6x4x16xf32>
    %808 = vector.extract_strided_slice %807 {offsets = [0, 0, 0], sizes = [4, 4, 16], strides = [1, 1, 1]} : vector<6x4x16xf32> to vector<4x4x16xf32>
    %c0_228 = arith.constant 0 : index
    %c0_229 = arith.constant 0 : index
    %809 = vector.load %arg18[%c0_228, %c0_229] : memref<9x16xf32, #tpu.memory_space<vmem>>, vector<1x16xf32>
    %810 = vector.shape_cast %809 : vector<1x16xf32> to vector<1x1x16xf32>
    %811 = vector.broadcast %810 : vector<1x1x16xf32> to vector<4x4x16xf32>
    %812 = arith.mulf %808, %811 : vector<4x4x16xf32>
    %813 = vector.extract_strided_slice %807 {offsets = [1, 0, 0], sizes = [4, 4, 16], strides = [1, 1, 1]} : vector<6x4x16xf32> to vector<4x4x16xf32>
    %c3_230 = arith.constant 3 : index
    %c0_231 = arith.constant 0 : index
    %814 = vector.load %arg18[%c3_230, %c0_231] : memref<9x16xf32, #tpu.memory_space<vmem>>, vector<1x16xf32>
    %815 = vector.shape_cast %814 : vector<1x16xf32> to vector<1x1x16xf32>
    %816 = vector.broadcast %815 : vector<1x1x16xf32> to vector<4x4x16xf32>
    %817 = arith.mulf %813, %816 : vector<4x4x16xf32>
    %818 = arith.addf %812, %817 : vector<4x4x16xf32>
    %819 = vector.extract_strided_slice %807 {offsets = [2, 0, 0], sizes = [4, 4, 16], strides = [1, 1, 1]} : vector<6x4x16xf32> to vector<4x4x16xf32>
    %c6_232 = arith.constant 6 : index
    %c0_233 = arith.constant 0 : index
    %820 = vector.load %arg18[%c6_232, %c0_233] : memref<9x16xf32, #tpu.memory_space<vmem>>, vector<1x16xf32>
    %821 = vector.shape_cast %820 : vector<1x16xf32> to vector<1x1x16xf32>
    %822 = vector.broadcast %821 : vector<1x1x16xf32> to vector<4x4x16xf32>
    %823 = arith.mulf %819, %822 : vector<4x4x16xf32>
    %824 = arith.addf %818, %823 : vector<4x4x16xf32>
    %825 = vector.extract_strided_slice %806 {offsets = [0, 1, 0], sizes = [6, 4, 16], strides = [1, 1, 1]} : vector<6x6x16xf32> to vector<6x4x16xf32>
    %826 = vector.extract_strided_slice %825 {offsets = [0, 0, 0], sizes = [4, 4, 16], strides = [1, 1, 1]} : vector<6x4x16xf32> to vector<4x4x16xf32>
    %c1_234 = arith.constant 1 : index
    %c0_235 = arith.constant 0 : index
    %827 = vector.load %arg18[%c1_234, %c0_235] : memref<9x16xf32, #tpu.memory_space<vmem>>, vector<1x16xf32>
    %828 = vector.shape_cast %827 : vector<1x16xf32> to vector<1x1x16xf32>
    %829 = vector.broadcast %828 : vector<1x1x16xf32> to vector<4x4x16xf32>
    %830 = arith.mulf %826, %829 : vector<4x4x16xf32>
    %831 = arith.addf %824, %830 : vector<4x4x16xf32>
    %832 = vector.extract_strided_slice %825 {offsets = [1, 0, 0], sizes = [4, 4, 16], strides = [1, 1, 1]} : vector<6x4x16xf32> to vector<4x4x16xf32>
    %c4_236 = arith.constant 4 : index
    %c0_237 = arith.constant 0 : index
    %833 = vector.load %arg18[%c4_236, %c0_237] : memref<9x16xf32, #tpu.memory_space<vmem>>, vector<1x16xf32>
    %834 = vector.shape_cast %833 : vector<1x16xf32> to vector<1x1x16xf32>
    %835 = vector.broadcast %834 : vector<1x1x16xf32> to vector<4x4x16xf32>
    %836 = arith.mulf %832, %835 : vector<4x4x16xf32>
    %837 = arith.addf %831, %836 : vector<4x4x16xf32>
    %838 = vector.extract_strided_slice %825 {offsets = [2, 0, 0], sizes = [4, 4, 16], strides = [1, 1, 1]} : vector<6x4x16xf32> to vector<4x4x16xf32>
    %c7_238 = arith.constant 7 : index
    %c0_239 = arith.constant 0 : index
    %839 = vector.load %arg18[%c7_238, %c0_239] : memref<9x16xf32, #tpu.memory_space<vmem>>, vector<1x16xf32>
    %840 = vector.shape_cast %839 : vector<1x16xf32> to vector<1x1x16xf32>
    %841 = vector.broadcast %840 : vector<1x1x16xf32> to vector<4x4x16xf32>
    %842 = arith.mulf %838, %841 : vector<4x4x16xf32>
    %843 = arith.addf %837, %842 : vector<4x4x16xf32>
    %844 = vector.extract_strided_slice %806 {offsets = [0, 2, 0], sizes = [6, 4, 16], strides = [1, 1, 1]} : vector<6x6x16xf32> to vector<6x4x16xf32>
    %845 = vector.extract_strided_slice %844 {offsets = [0, 0, 0], sizes = [4, 4, 16], strides = [1, 1, 1]} : vector<6x4x16xf32> to vector<4x4x16xf32>
    %c2_240 = arith.constant 2 : index
    %c0_241 = arith.constant 0 : index
    %846 = vector.load %arg18[%c2_240, %c0_241] : memref<9x16xf32, #tpu.memory_space<vmem>>, vector<1x16xf32>
    %847 = vector.shape_cast %846 : vector<1x16xf32> to vector<1x1x16xf32>
    %848 = vector.broadcast %847 : vector<1x1x16xf32> to vector<4x4x16xf32>
    %849 = arith.mulf %845, %848 : vector<4x4x16xf32>
    %850 = arith.addf %843, %849 : vector<4x4x16xf32>
    %851 = vector.extract_strided_slice %844 {offsets = [1, 0, 0], sizes = [4, 4, 16], strides = [1, 1, 1]} : vector<6x4x16xf32> to vector<4x4x16xf32>
    %c5_242 = arith.constant 5 : index
    %c0_243 = arith.constant 0 : index
    %852 = vector.load %arg18[%c5_242, %c0_243] : memref<9x16xf32, #tpu.memory_space<vmem>>, vector<1x16xf32>
    %853 = vector.shape_cast %852 : vector<1x16xf32> to vector<1x1x16xf32>
    %854 = vector.broadcast %853 : vector<1x1x16xf32> to vector<4x4x16xf32>
    %855 = arith.mulf %851, %854 : vector<4x4x16xf32>
    %856 = arith.addf %850, %855 : vector<4x4x16xf32>
    %857 = vector.extract_strided_slice %844 {offsets = [2, 0, 0], sizes = [4, 4, 16], strides = [1, 1, 1]} : vector<6x4x16xf32> to vector<4x4x16xf32>
    %c8_244 = arith.constant 8 : index
    %c0_245 = arith.constant 0 : index
    %858 = vector.load %arg18[%c8_244, %c0_245] : memref<9x16xf32, #tpu.memory_space<vmem>>, vector<1x16xf32>
    %859 = vector.shape_cast %858 : vector<1x16xf32> to vector<1x1x16xf32>
    %860 = vector.broadcast %859 : vector<1x1x16xf32> to vector<4x4x16xf32>
    %861 = arith.mulf %857, %860 : vector<4x4x16xf32>
    %862 = arith.addf %856, %861 : vector<4x4x16xf32>
    %863 = vector.shape_cast %862 : vector<4x4x16xf32> to vector<16x16xf32>
    %c0_246 = arith.constant 0 : index
    %c0_247 = arith.constant 0 : index
    %864 = vector.load %arg19[%c0_246, %c0_247] : memref<16x16xf32, #tpu.memory_space<vmem>>, vector<16x16xf32>
    %cst_248 = arith.constant dense<0.000000e+00> : vector<16x16xf32>
    %865 = tpu.matmul %863, %864, %cst_248 {dimension_numbers = #tpu.dot_dimension_numbers<[1], [0], [0], [1], [0, 0, 1, 1], [], []>} : vector<16x16xf32>, vector<16x16xf32>, vector<16x16xf32> -> vector<16x16xf32>
    %c0_249 = arith.constant 0 : index
    %c0_250 = arith.constant 0 : index
    %866 = vector.load %arg20[%c0_249, %c0_250] : memref<2x16xf32, #tpu.memory_space<vmem>>, vector<1x16xf32>
    %867 = vector.broadcast %866 : vector<1x16xf32> to vector<16x16xf32>
    %868 = arith.mulf %865, %867 : vector<16x16xf32>
    %c1_251 = arith.constant 1 : index
    %c0_252 = arith.constant 0 : index
    %869 = vector.load %arg20[%c1_251, %c0_252] : memref<2x16xf32, #tpu.memory_space<vmem>>, vector<1x16xf32>
    %870 = vector.broadcast %869 : vector<1x16xf32> to vector<16x16xf32>
    %871 = arith.addf %868, %870 : vector<16x16xf32>
    %872 = vector.shape_cast %11 : vector<64x16xf32> to vector<2x2x4x4x16xf32>
    %cst_253 = arith.constant -3.40282347E+38 : f32
    %873 = vector.broadcast %cst_253 : f32 to vector<2x2x1x4x16xf32>
    %874 = tpu.concatenate %872, %873 in 2 : vector<2x2x4x4x16xf32>, vector<2x2x1x4x16xf32> -> vector<2x2x5x4x16xf32>
    %cst_254 = arith.constant -3.40282347E+38 : f32
    %875 = vector.broadcast %cst_254 : f32 to vector<2x2x5x1x16xf32>
    %876 = tpu.concatenate %874, %875 in 3 : vector<2x2x5x4x16xf32>, vector<2x2x5x1x16xf32> -> vector<2x2x5x5x16xf32>
    %cst_255 = arith.constant 0.000000e+00 : f32
    %877 = vector.broadcast %cst_255 : f32 to vector<2x2x1x4x16xf32>
    %878 = tpu.concatenate %872, %877 in 2 : vector<2x2x4x4x16xf32>, vector<2x2x1x4x16xf32> -> vector<2x2x5x4x16xf32>
    %cst_256 = arith.constant 0.000000e+00 : f32
    %879 = vector.broadcast %cst_256 : f32 to vector<2x2x5x1x16xf32>
    %880 = tpu.concatenate %878, %879 in 3 : vector<2x2x5x4x16xf32>, vector<2x2x5x1x16xf32> -> vector<2x2x5x5x16xf32>
    %881 = vector.extract_strided_slice %876 {offsets = [0, 0, 0, 0, 0], sizes = [2, 1, 5, 4, 16], strides = [1, 1, 1, 1, 1]} : vector<2x2x5x5x16xf32> to vector<2x1x5x4x16xf32>
    %882 = vector.shape_cast %881 : vector<2x1x5x4x16xf32> to vector<2x5x4x16xf32>
    %883 = vector.extract_strided_slice %880 {offsets = [0, 0, 0, 0, 0], sizes = [2, 1, 5, 4, 16], strides = [1, 1, 1, 1, 1]} : vector<2x2x5x5x16xf32> to vector<2x1x5x4x16xf32>
    %884 = vector.shape_cast %883 : vector<2x1x5x4x16xf32> to vector<2x5x4x16xf32>
    %885 = vector.extract_strided_slice %882 {offsets = [0, 0, 0, 0], sizes = [1, 4, 4, 16], strides = [1, 1, 1, 1]} : vector<2x5x4x16xf32> to vector<1x4x4x16xf32>
    %886 = vector.shape_cast %885 : vector<1x4x4x16xf32> to vector<4x4x16xf32>
    %887 = vector.extract_strided_slice %884 {offsets = [0, 0, 0, 0], sizes = [1, 4, 4, 16], strides = [1, 1, 1, 1]} : vector<2x5x4x16xf32> to vector<1x4x4x16xf32>
    %888 = vector.shape_cast %887 : vector<1x4x4x16xf32> to vector<4x4x16xf32>
    %889 = vector.extract_strided_slice %882 {offsets = [1, 0, 0, 0], sizes = [1, 4, 4, 16], strides = [1, 1, 1, 1]} : vector<2x5x4x16xf32> to vector<1x4x4x16xf32>
    %890 = vector.shape_cast %889 : vector<1x4x4x16xf32> to vector<4x4x16xf32>
    %891 = vector.extract_strided_slice %884 {offsets = [1, 0, 0, 0], sizes = [1, 4, 4, 16], strides = [1, 1, 1, 1]} : vector<2x5x4x16xf32> to vector<1x4x4x16xf32>
    %892 = vector.shape_cast %891 : vector<1x4x4x16xf32> to vector<4x4x16xf32>
    %893 = arith.maximumf %886, %890 : vector<4x4x16xf32>
    %894 = arith.addf %888, %892 : vector<4x4x16xf32>
    %895 = vector.extract_strided_slice %882 {offsets = [0, 1, 0, 0], sizes = [1, 4, 4, 16], strides = [1, 1, 1, 1]} : vector<2x5x4x16xf32> to vector<1x4x4x16xf32>
    %896 = vector.shape_cast %895 : vector<1x4x4x16xf32> to vector<4x4x16xf32>
    %897 = vector.extract_strided_slice %884 {offsets = [0, 1, 0, 0], sizes = [1, 4, 4, 16], strides = [1, 1, 1, 1]} : vector<2x5x4x16xf32> to vector<1x4x4x16xf32>
    %898 = vector.shape_cast %897 : vector<1x4x4x16xf32> to vector<4x4x16xf32>
    %899 = arith.maximumf %893, %896 : vector<4x4x16xf32>
    %900 = arith.addf %894, %898 : vector<4x4x16xf32>
    %901 = vector.extract_strided_slice %876 {offsets = [0, 1, 0, 0, 0], sizes = [2, 1, 5, 4, 16], strides = [1, 1, 1, 1, 1]} : vector<2x2x5x5x16xf32> to vector<2x1x5x4x16xf32>
    %902 = vector.shape_cast %901 : vector<2x1x5x4x16xf32> to vector<2x5x4x16xf32>
    %903 = vector.extract_strided_slice %880 {offsets = [0, 1, 0, 0, 0], sizes = [2, 1, 5, 4, 16], strides = [1, 1, 1, 1, 1]} : vector<2x2x5x5x16xf32> to vector<2x1x5x4x16xf32>
    %904 = vector.shape_cast %903 : vector<2x1x5x4x16xf32> to vector<2x5x4x16xf32>
    %905 = vector.extract_strided_slice %902 {offsets = [0, 0, 0, 0], sizes = [1, 4, 4, 16], strides = [1, 1, 1, 1]} : vector<2x5x4x16xf32> to vector<1x4x4x16xf32>
    %906 = vector.shape_cast %905 : vector<1x4x4x16xf32> to vector<4x4x16xf32>
    %907 = vector.extract_strided_slice %904 {offsets = [0, 0, 0, 0], sizes = [1, 4, 4, 16], strides = [1, 1, 1, 1]} : vector<2x5x4x16xf32> to vector<1x4x4x16xf32>
    %908 = vector.shape_cast %907 : vector<1x4x4x16xf32> to vector<4x4x16xf32>
    %909 = arith.maximumf %899, %906 : vector<4x4x16xf32>
    %910 = arith.addf %900, %908 : vector<4x4x16xf32>
    %911 = vector.extract_strided_slice %902 {offsets = [1, 0, 0, 0], sizes = [1, 4, 4, 16], strides = [1, 1, 1, 1]} : vector<2x5x4x16xf32> to vector<1x4x4x16xf32>
    %912 = vector.shape_cast %911 : vector<1x4x4x16xf32> to vector<4x4x16xf32>
    %913 = vector.extract_strided_slice %904 {offsets = [1, 0, 0, 0], sizes = [1, 4, 4, 16], strides = [1, 1, 1, 1]} : vector<2x5x4x16xf32> to vector<1x4x4x16xf32>
    %914 = vector.shape_cast %913 : vector<1x4x4x16xf32> to vector<4x4x16xf32>
    %915 = arith.maximumf %909, %912 : vector<4x4x16xf32>
    %916 = arith.addf %910, %914 : vector<4x4x16xf32>
    %917 = vector.extract_strided_slice %902 {offsets = [0, 1, 0, 0], sizes = [1, 4, 4, 16], strides = [1, 1, 1, 1]} : vector<2x5x4x16xf32> to vector<1x4x4x16xf32>
    %918 = vector.shape_cast %917 : vector<1x4x4x16xf32> to vector<4x4x16xf32>
    %919 = vector.extract_strided_slice %904 {offsets = [0, 1, 0, 0], sizes = [1, 4, 4, 16], strides = [1, 1, 1, 1]} : vector<2x5x4x16xf32> to vector<1x4x4x16xf32>
    %920 = vector.shape_cast %919 : vector<1x4x4x16xf32> to vector<4x4x16xf32>
    %921 = arith.maximumf %915, %918 : vector<4x4x16xf32>
    %922 = arith.addf %916, %920 : vector<4x4x16xf32>
    %923 = vector.extract_strided_slice %876 {offsets = [0, 0, 0, 1, 0], sizes = [2, 1, 5, 4, 16], strides = [1, 1, 1, 1, 1]} : vector<2x2x5x5x16xf32> to vector<2x1x5x4x16xf32>
    %924 = vector.shape_cast %923 : vector<2x1x5x4x16xf32> to vector<2x5x4x16xf32>
    %925 = vector.extract_strided_slice %880 {offsets = [0, 0, 0, 1, 0], sizes = [2, 1, 5, 4, 16], strides = [1, 1, 1, 1, 1]} : vector<2x2x5x5x16xf32> to vector<2x1x5x4x16xf32>
    %926 = vector.shape_cast %925 : vector<2x1x5x4x16xf32> to vector<2x5x4x16xf32>
    %927 = vector.extract_strided_slice %924 {offsets = [0, 0, 0, 0], sizes = [1, 4, 4, 16], strides = [1, 1, 1, 1]} : vector<2x5x4x16xf32> to vector<1x4x4x16xf32>
    %928 = vector.shape_cast %927 : vector<1x4x4x16xf32> to vector<4x4x16xf32>
    %929 = vector.extract_strided_slice %926 {offsets = [0, 0, 0, 0], sizes = [1, 4, 4, 16], strides = [1, 1, 1, 1]} : vector<2x5x4x16xf32> to vector<1x4x4x16xf32>
    %930 = vector.shape_cast %929 : vector<1x4x4x16xf32> to vector<4x4x16xf32>
    %931 = arith.maximumf %921, %928 : vector<4x4x16xf32>
    %932 = arith.addf %922, %930 : vector<4x4x16xf32>
    %933 = vector.extract_strided_slice %924 {offsets = [1, 0, 0, 0], sizes = [1, 4, 4, 16], strides = [1, 1, 1, 1]} : vector<2x5x4x16xf32> to vector<1x4x4x16xf32>
    %934 = vector.shape_cast %933 : vector<1x4x4x16xf32> to vector<4x4x16xf32>
    %935 = vector.extract_strided_slice %926 {offsets = [1, 0, 0, 0], sizes = [1, 4, 4, 16], strides = [1, 1, 1, 1]} : vector<2x5x4x16xf32> to vector<1x4x4x16xf32>
    %936 = vector.shape_cast %935 : vector<1x4x4x16xf32> to vector<4x4x16xf32>
    %937 = arith.maximumf %931, %934 : vector<4x4x16xf32>
    %938 = arith.addf %932, %936 : vector<4x4x16xf32>
    %939 = vector.extract_strided_slice %924 {offsets = [0, 1, 0, 0], sizes = [1, 4, 4, 16], strides = [1, 1, 1, 1]} : vector<2x5x4x16xf32> to vector<1x4x4x16xf32>
    %940 = vector.shape_cast %939 : vector<1x4x4x16xf32> to vector<4x4x16xf32>
    %941 = vector.extract_strided_slice %926 {offsets = [0, 1, 0, 0], sizes = [1, 4, 4, 16], strides = [1, 1, 1, 1]} : vector<2x5x4x16xf32> to vector<1x4x4x16xf32>
    %942 = vector.shape_cast %941 : vector<1x4x4x16xf32> to vector<4x4x16xf32>
    %943 = arith.maximumf %937, %940 : vector<4x4x16xf32>
    %944 = arith.addf %938, %942 : vector<4x4x16xf32>
    %c0_257 = arith.constant 0 : index
    %c0_258 = arith.constant 0 : index
    %c0_259 = arith.constant 0 : index
    %945 = vector.load %arg3[%c0_257, %c0_258, %c0_259] : memref<4x4x16xf32, #tpu.memory_space<vmem>>, vector<4x4x16xf32>
    %946 = arith.mulf %944, %945 : vector<4x4x16xf32>
    %cst_260 = arith.constant 0.000000e+00 : f32
    %947 = vector.broadcast %cst_260 : f32 to vector<1x4x16xf32>
    %cst_261 = arith.constant 0.000000e+00 : f32
    %948 = vector.broadcast %cst_261 : f32 to vector<1x4x16xf32>
    %949 = tpu.concatenate %947, %724, %948 in 0 : vector<1x4x16xf32>, vector<4x4x16xf32>, vector<1x4x16xf32> -> vector<6x4x16xf32>
    %cst_262 = arith.constant 0.000000e+00 : f32
    %950 = vector.broadcast %cst_262 : f32 to vector<6x1x16xf32>
    %cst_263 = arith.constant 0.000000e+00 : f32
    %951 = vector.broadcast %cst_263 : f32 to vector<6x1x16xf32>
    %952 = tpu.concatenate %950, %949, %951 in 1 : vector<6x1x16xf32>, vector<6x4x16xf32>, vector<6x1x16xf32> -> vector<6x6x16xf32>
    %953 = vector.extract_strided_slice %952 {offsets = [0, 0, 0], sizes = [6, 4, 16], strides = [1, 1, 1]} : vector<6x6x16xf32> to vector<6x4x16xf32>
    %954 = vector.extract_strided_slice %953 {offsets = [0, 0, 0], sizes = [4, 4, 16], strides = [1, 1, 1]} : vector<6x4x16xf32> to vector<4x4x16xf32>
    %955 = vector.extract_strided_slice %953 {offsets = [1, 0, 0], sizes = [4, 4, 16], strides = [1, 1, 1]} : vector<6x4x16xf32> to vector<4x4x16xf32>
    %956 = arith.addf %954, %955 : vector<4x4x16xf32>
    %957 = vector.extract_strided_slice %953 {offsets = [2, 0, 0], sizes = [4, 4, 16], strides = [1, 1, 1]} : vector<6x4x16xf32> to vector<4x4x16xf32>
    %958 = arith.addf %956, %957 : vector<4x4x16xf32>
    %959 = vector.extract_strided_slice %952 {offsets = [0, 1, 0], sizes = [6, 4, 16], strides = [1, 1, 1]} : vector<6x6x16xf32> to vector<6x4x16xf32>
    %960 = vector.extract_strided_slice %959 {offsets = [0, 0, 0], sizes = [4, 4, 16], strides = [1, 1, 1]} : vector<6x4x16xf32> to vector<4x4x16xf32>
    %961 = arith.addf %958, %960 : vector<4x4x16xf32>
    %962 = vector.extract_strided_slice %959 {offsets = [1, 0, 0], sizes = [4, 4, 16], strides = [1, 1, 1]} : vector<6x4x16xf32> to vector<4x4x16xf32>
    %963 = arith.addf %961, %962 : vector<4x4x16xf32>
    %964 = vector.extract_strided_slice %959 {offsets = [2, 0, 0], sizes = [4, 4, 16], strides = [1, 1, 1]} : vector<6x4x16xf32> to vector<4x4x16xf32>
    %965 = arith.addf %963, %964 : vector<4x4x16xf32>
    %966 = vector.extract_strided_slice %952 {offsets = [0, 2, 0], sizes = [6, 4, 16], strides = [1, 1, 1]} : vector<6x6x16xf32> to vector<6x4x16xf32>
    %967 = vector.extract_strided_slice %966 {offsets = [0, 0, 0], sizes = [4, 4, 16], strides = [1, 1, 1]} : vector<6x4x16xf32> to vector<4x4x16xf32>
    %968 = arith.addf %965, %967 : vector<4x4x16xf32>
    %969 = vector.extract_strided_slice %966 {offsets = [1, 0, 0], sizes = [4, 4, 16], strides = [1, 1, 1]} : vector<6x4x16xf32> to vector<4x4x16xf32>
    %970 = arith.addf %968, %969 : vector<4x4x16xf32>
    %971 = vector.extract_strided_slice %966 {offsets = [2, 0, 0], sizes = [4, 4, 16], strides = [1, 1, 1]} : vector<6x4x16xf32> to vector<4x4x16xf32>
    %972 = arith.addf %970, %971 : vector<4x4x16xf32>
    %c0_264 = arith.constant 0 : index
    %c0_265 = arith.constant 0 : index
    %c0_266 = arith.constant 0 : index
    %973 = vector.load %arg4[%c0_264, %c0_265, %c0_266] : memref<4x4x16xf32, #tpu.memory_space<vmem>>, vector<4x4x16xf32>
    %974 = arith.mulf %972, %973 : vector<4x4x16xf32>
    %975 = vector.shape_cast %943 : vector<4x4x16xf32> to vector<16x16xf32>
    %976 = vector.shape_cast %946 : vector<4x4x16xf32> to vector<16x16xf32>
    %977 = vector.shape_cast %974 : vector<4x4x16xf32> to vector<16x16xf32>
    %978 = arith.addf %975, %720 : vector<16x16xf32>
    %979 = arith.addf %976, %721 : vector<16x16xf32>
    %980 = arith.addf %977, %978 : vector<16x16xf32>
    %981 = arith.addf %871, %975 : vector<16x16xf32>
    %982 = tpu.concatenate %978, %979, %980, %981 in 1 : vector<16x16xf32>, vector<16x16xf32>, vector<16x16xf32>, vector<16x16xf32> -> vector<16x64xf32>
    %c0_267 = arith.constant 0 : index
    %c0_268 = arith.constant 0 : index
    %c0_269 = arith.constant 0 : index
    %983 = vector.load %arg21[%c0_267, %c0_268, %c0_269] : memref<1x16x64xf32, #tpu.memory_space<vmem>>, vector<1x16x64xf32>
    %984 = vector.shape_cast %983 : vector<1x16x64xf32> to vector<16x64xf32>
    %985 = vector.shape_cast %982 : vector<16x64xf32> to vector<1x16x64xf32>
    tpu.vector_store %arg21[%c0_267, %c0_268, %c0_269], %985 {strides = array<i32>} : memref<1x16x64xf32, #tpu.memory_space<vmem>>, vector<1x16x64xf32>,
    return
  }
  func.func @transform_0(%arg0: i32) -> (i32, i32, i32) {
    %c0_i32 = arith.constant 0 : i32
    %c0_i32_0 = arith.constant 0 : i32
    %c0_i32_1 = arith.constant 0 : i32
    return %arg0, %c0_i32, %c0_i32_0 : i32, i32, i32
  }
  func.func @transform_1(%arg0: i32) -> (i32, i32, i32) {
    %c0_i32 = arith.constant 0 : i32
    %c0_i32_0 = arith.constant 0 : i32
    %c0_i32_1 = arith.constant 0 : i32
    return %arg0, %c0_i32, %c0_i32_0 : i32, i32, i32
  }
  func.func @transform_2(%arg0: i32) -> (i32, i32, i32) {
    %c0_i32 = arith.constant 0 : i32
    %c0_i32_0 = arith.constant 0 : i32
    %c0_i32_1 = arith.constant 0 : i32
    %c0_i32_2 = arith.constant 0 : i32
    return %c0_i32, %c0_i32_0, %c0_i32_1 : i32, i32, i32
  }
  func.func @transform_3(%arg0: i32) -> (i32, i32, i32) {
    %c0_i32 = arith.constant 0 : i32
    %c0_i32_0 = arith.constant 0 : i32
    %c0_i32_1 = arith.constant 0 : i32
    %c0_i32_2 = arith.constant 0 : i32
    return %c0_i32, %c0_i32_0, %c0_i32_1 : i32, i32, i32
  }
  func.func @transform_4(%arg0: i32) -> (i32, i32) {
    %c0_i32 = arith.constant 0 : i32
    %c0_i32_0 = arith.constant 0 : i32
    %c0_i32_1 = arith.constant 0 : i32
    return %c0_i32, %c0_i32_0 : i32, i32
  }
  func.func @transform_5(%arg0: i32) -> (i32, i32) {
    %c0_i32 = arith.constant 0 : i32
    %c0_i32_0 = arith.constant 0 : i32
    %c0_i32_1 = arith.constant 0 : i32
    return %c0_i32, %c0_i32_0 : i32, i32
  }
  func.func @transform_6(%arg0: i32) -> (i32, i32) {
    %c0_i32 = arith.constant 0 : i32
    %c0_i32_0 = arith.constant 0 : i32
    %c0_i32_1 = arith.constant 0 : i32
    return %c0_i32, %c0_i32_0 : i32, i32
  }
  func.func @transform_7(%arg0: i32) -> (i32, i32) {
    %c0_i32 = arith.constant 0 : i32
    %c0_i32_0 = arith.constant 0 : i32
    %c0_i32_1 = arith.constant 0 : i32
    return %c0_i32, %c0_i32_0 : i32, i32
  }
  func.func @transform_8(%arg0: i32) -> (i32, i32) {
    %c0_i32 = arith.constant 0 : i32
    %c0_i32_0 = arith.constant 0 : i32
    %c0_i32_1 = arith.constant 0 : i32
    return %c0_i32, %c0_i32_0 : i32, i32
  }
  func.func @transform_9(%arg0: i32) -> (i32, i32) {
    %c0_i32 = arith.constant 0 : i32
    %c0_i32_0 = arith.constant 0 : i32
    %c0_i32_1 = arith.constant 0 : i32
    return %c0_i32, %c0_i32_0 : i32, i32
  }
  func.func @transform_10(%arg0: i32) -> (i32, i32) {
    %c0_i32 = arith.constant 0 : i32
    %c0_i32_0 = arith.constant 0 : i32
    %c0_i32_1 = arith.constant 0 : i32
    return %c0_i32, %c0_i32_0 : i32, i32
  }
  func.func @transform_11(%arg0: i32) -> (i32, i32) {
    %c0_i32 = arith.constant 0 : i32
    %c0_i32_0 = arith.constant 0 : i32
    %c0_i32_1 = arith.constant 0 : i32
    return %c0_i32, %c0_i32_0 : i32, i32
  }
  func.func @transform_12(%arg0: i32) -> (i32, i32) {
    %c0_i32 = arith.constant 0 : i32
    %c0_i32_0 = arith.constant 0 : i32
    %c0_i32_1 = arith.constant 0 : i32
    return %c0_i32, %c0_i32_0 : i32, i32
  }
  func.func @transform_13(%arg0: i32) -> (i32, i32) {
    %c0_i32 = arith.constant 0 : i32
    %c0_i32_0 = arith.constant 0 : i32
    %c0_i32_1 = arith.constant 0 : i32
    return %c0_i32, %c0_i32_0 : i32, i32
  }
  func.func @transform_14(%arg0: i32) -> (i32, i32) {
    %c0_i32 = arith.constant 0 : i32
    %c0_i32_0 = arith.constant 0 : i32
    %c0_i32_1 = arith.constant 0 : i32
    return %c0_i32, %c0_i32_0 : i32, i32
  }
  func.func @transform_15(%arg0: i32) -> (i32, i32) {
    %c0_i32 = arith.constant 0 : i32
    %c0_i32_0 = arith.constant 0 : i32
    %c0_i32_1 = arith.constant 0 : i32
    return %c0_i32, %c0_i32_0 : i32, i32
  }
  func.func @transform_16(%arg0: i32) -> (i32, i32) {
    %c0_i32 = arith.constant 0 : i32
    %c0_i32_0 = arith.constant 0 : i32
    %c0_i32_1 = arith.constant 0 : i32
    return %c0_i32, %c0_i32_0 : i32, i32
  }
  func.func @transform_17(%arg0: i32) -> (i32, i32) {
    %c0_i32 = arith.constant 0 : i32
    %c0_i32_0 = arith.constant 0 : i32
    %c0_i32_1 = arith.constant 0 : i32
    return %c0_i32, %c0_i32_0 : i32, i32
  }
  func.func @transform_18(%arg0: i32) -> (i32, i32) {
    %c0_i32 = arith.constant 0 : i32
    %c0_i32_0 = arith.constant 0 : i32
    %c0_i32_1 = arith.constant 0 : i32
    return %c0_i32, %c0_i32_0 : i32, i32
  }
  func.func @transform_19(%arg0: i32) -> (i32, i32) {
    %c0_i32 = arith.constant 0 : i32
    %c0_i32_0 = arith.constant 0 : i32
    %c0_i32_1 = arith.constant 0 : i32
    return %c0_i32, %c0_i32_0 : i32, i32
  }
  func.func @transform_20(%arg0: i32) -> (i32, i32, i32) {
    %c0_i32 = arith.constant 0 : i32
    %c0_i32_0 = arith.constant 0 : i32
    %c0_i32_1 = arith.constant 0 : i32
    return %arg0, %c0_i32, %c0_i32_0 : i32, i32, i32
  }
}

</mosaic_0001>

<bundles_post_ra>
// kernel: cell_stem_1_forward.1
= control target key start
LH: loop header
LB: loop body
LE: loop exit
PB: predicated region body
PF: predicated region fallthrough
CT: control target
= control target key end

     0   :  { %s8132_s0 = inlined_call_operand.vmem [shape: f32[2,64,32], index: 0, kind: input, shape index: {}]   ;;  %s8133_s1 = inlined_call_operand.vmem [shape: f32[2,64,32], index: 1, kind: input, shape index: {}]   ;;  %s8134_s2 = inlined_call_operand.vmem [shape: f32[4,4,16], index: 2, kind: input, shape index: {}]   ;;  %s8135_s3 = inlined_call_operand.vmem [shape: f32[4,4,16], index: 3, kind: input, shape index: {}]   ;;  %s8136_s4 = inlined_call_operand.vmem [shape: f32[32,16], index: 4, kind: input, shape index: {}]   ;;  %s8137_s5 = inlined_call_operand.vmem [shape: f32[2,16], index: 5, kind: input, shape index: {}]   ;;  %s8138_s6 = inlined_call_operand.vmem [shape: f32[32,16], index: 6, kind: input, shape index: {}]   ;;  %s8139_s7 = inlined_call_operand.vmem [shape: f32[2,16], index: 7, kind: input, shape index: {}]   ;;  %s8140_s8 = inlined_call_operand.vmem [shape: f32[49,64], index: 8, kind: input, shape index: {}]   ;;  %s8141_s9 = inlined_call_operand.vmem [shape: f32[64,64], index: 9, kind: input, shape index: {}]   ;;  %s8142_s10 = inlined_call_operand.vmem [shape: f32[2,64], index: 10, kind: input, shape index: {}]   ;;  %s8143_s11 = inlined_call_operand.vmem [shape: f32[49,64], index: 11, kind: input, shape index: {}]   ;;  %s8144_s12 = inlined_call_operand.vmem [shape: f32[64,64], index: 12, kind: input, shape index: {}]   ;;  %s8145_s13 = inlined_call_operand.vmem [shape: f32[2,64], index: 13, kind: input, shape index: {}]   ;;  %s8146_s14 = inlined_call_operand.vmem [shape: f32[9,16], index: 14, kind: input, shape index: {}]   ;;  %s8147_s15 = inlined_call_operand.vmem [shape: f32[16,16], index: 15, kind: input, shape index: {}]   ;;  %s8148_s16 = inlined_call_operand.vmem [shape: f32[2,16], index: 16, kind: input, shape index: {}]   ;;  %s8149_s17 = inlined_call_operand.vmem [shape: f32[9,16], index: 17, kind: input, shape index: {}]   ;;  %s8150_s18 = inlined_call_operand.vmem [shape: f32[16,16], index: 18, kind: input, shape index: {}]   ;;  %s8151_s19 = inlined_call_operand.vmem [shape: f32[2,16], index: 19, kind: input, shape index: {}]   ;;  %s8152_s20 = inlined_call_operand.hbm [shape: f32[2,16,64], index: 20, kind: output, shape index: {}]  }
   0x1   :  { %8346 = sst [smem:[#allocation85_spill]] %s8132_s0 }
   0x2   :  { %8347 = sst [smem:[#allocation86_spill]] %s8133_s1 }
   0x3   :  { %8348 = sst [smem:[#allocation87_spill]] %s8134_s2 }
   0x4   :  { %8349 = sst [smem:[#allocation88_spill]] %s8135_s3 }
   0x5   :  { %8350 = sst [smem:[#allocation89_spill]] %s8136_s4 }
   0x6   :  { %8351 = sst [smem:[#allocation90_spill]] %s8137_s5 }
   0x7   :  { %25 = vsyncpa [#allocation3], 0 }
   0x8   :  { %27 = vsyncpa [#allocation3 + $0x1], 0  ;;  %s5260_s1 = smov 0   ;;  %s5262_s22 = smov 0  }
   0x9   :  { %s5264_s23 = smov 0   ;;  %s5266_s24 = smov 0  }
   0xa LB: > { %8352 = sst [smem:[#allocation5_spill]] %s5130_s1  ;;  %s5281_s2 = sadd.s32 4294967295, %s5142_s24   ;;  %s5142_s24 = sphi %s5266_s24, %s8738_s24   ;;  %s5138_s23 = sphi %s5264_s23, %s8740_s23   ;;  %s5134_s22 = sphi %s5262_s22, %s8742_s22   ;;  %s5130_s1 = sphi %s5260_s1, %s8741_s1  }
   0xb   : > { %8353 = sst [smem:[#allocation6_spill]] %s5138_s23  ;;  %s4660_s25 = sadd.s32 4294967294, %s5142_s24  }
   0xc   : > { %s5285_s3 = sadd.s32 1, %s5142_s24   ;;  %s470_s26 = sadd.s32 1, %s5138_s23 }
   0xd   : > { %8354 = sst [smem:[#allocation7_spill]] %s5285_s3  ;;  %s467_s27 = ssub.s32 %s5142_s24, %s5285_s3 }
   0xe   : > { %p480_p0 = scmp.ne.s32.totalorder %s5138_s23, %s5134_s22  ;;  %p468_p1 = scmp.eq.s32.totalorder %s467_s27, 0 }
   0xf   : > { %p481_p2 = scmp.eq.s32.totalorder %s5281_s2, 1  ;;  %p486_p3 = scmp.ne.s32.totalorder %s5134_s22, %s5130_s1 }
  0x10   : > { %p487_p4 = scmp.eq.s32.totalorder %s4660_s25, 1  ;;  %p4663_p7 = scmp.ge.s32.totalorder %s5142_s24, 1 }
  0x11   : > { %s5296_s28 = scalar_select %p468_p1, %s5138_s23, %s470_s26  }
  0x12   : > { %p5298_p5 = por %p481_p2, %p480_p0  ;;  %p5302_p6 = por %p487_p4, %p486_p3 }
  0x13   : > { %8355 = sst [smem:[#allocation8_spill]] %s5296_s28  ;;  %p575_p8 = scmp.lt.s32.totalorder %s5142_s24, 3 }
  0x14   : > { %s8357_s29 = scalar_select %p5302_p6, 1, 0 }
  0x15   : > { %p576_p9 = pnand %p4663_p7, %p575_p8 }
  0x16   : > { %8358 = sst [smem:[#allocation9_spill]] %s8357_s29 }
  0x17   : > { %579 = sbr.rel (%p576_p9) target bundleno = 2004 (0x7d4), region = 100 }
  0x1e   : > { %s8359_s21 = sld [smem:[#allocation89_spill]]  ;;  %v840_v2 = vld [vmem:[%s8138_s6] sm:$0xff]  ;;  %p638_p10 = scmp.lt.s32.totalorder %s5281_s2, 1  ;;  %v841_v4 = vld [vmem:[%s8138_s6 + $0x8] sm:$0xff]  ;;  %v842_v9 = vld [vmem:[%s8138_s6 + $0x10] sm:$0xff]  ;;  %vm668_vm0 = vcmask 261120  }
  0x1f   : > { %v4981_v7 = vpack.c.bf16 %v841_v4, %v840_v2  ;;  %v843_v10 = vld [vmem:[%s8138_s6 + $0x18] sm:$0xff]  ;;  %s8360_s30 = sld [smem:[#allocation85_spill]]  ;;  %s8361_s26 = sld [smem:[#allocation86_spill]]  ;;  %v5379_v44 = vld [vmem:[%s8139_s7] ss:$0 sm:$0xff]  ;;  %vm4229_vm1 = vcmask 1043456  }
  0x20   : > { %s639_s23 = scalar_select %p638_p10, %s5281_s2, 1  ;;  %v4985_v11 = vpack.c.bf16 %v843_v10, %v842_v9  ;;  %v5384_v47 = vld [vmem:[%s8139_s7 + $0x1] ss:$0 sm:$0xff]  ;;  %vm1180_vm2 = vcmask 1040384   ;;  %vm1198_vm3 = vcmask 1044480   ;;  %vm1103_vm4 = vcmask 130048  }
  0x21   : > { %4982 = vmatprep.subr.bf16.mxu1 %v4981_v7  ;;  %s8362_s5 = sld [smem:[#allocation90_spill]]  ;;  %s8260_s25 = smov 16   ;;  %vm1120_vm5 = vcmask 392192   ;;  %vm2261_vm6 = vcmask 523264   ;;  %vm2371_vm7 = vcmask 1042432   ;;  %vm2377_vm8 = vcmask 1046528  }
  0x22   : > { %s4826_s1 = sshll.u32 %s639_s23, 6  ;;  %4984 = vmatpush3.bf16.msra.mxu1 %v4981_v7  ;;  %vm3272_vm9 = vcmask 1041408   ;;  %s5149_s27 = smov 112  }
  0x23   : > { %4986 = vmatprep.subr.bf16.mxu1 %v4985_v11  ;;  %s5150_s23 = smov 96  }
  0x24   : > { %v664_v0 = vld [vmem:[%s8359_s21] sm:$0xff]  ;;  %v665_v1 = vld [vmem:[%s8359_s21 + $0x8] sm:$0xff]  ;;  %v666_v5 = vld [vmem:[%s8359_s21 + $0x10] sm:$0xff] }
  0x25   : > { %v4973_v3 = vpack.c.bf16 %v665_v1, %v664_v0  ;;  %v667_v6 = vld [vmem:[%s8359_s21 + $0x18] sm:$0xff]  ;;  %s5337_s0 = scalar_lea.vmem %s8360_s30, %s4826_s1  ;;  %s5342_s28 = scalar_lea.vmem %s8361_s26, %s4826_s1 }
  0x26   : > { %v4977_v8 = vpack.c.bf16 %v667_v6, %v666_v5  ;;  %v648_v12 = vld [vmem:[%s5337_s0] sm:$0xff]  ;;  %v649_v14 = vld [vmem:[%s5337_s0 + $0x8] sm:$0xff]  ;;  %v650_v19 = vld [vmem:[%s5337_s0 + $0x10] sm:$0xff]  ;;  %4988 = vmatpush3.bf16.msra.mxu1 %v4985_v11  ;;  %s8258_s26 = smov 32   ;;  %s5148_s21 = smov 80  }
  0x27   : > { %4974 = vmatprep.subr.bf16.mxu0 %v4973_v3  ;;  %v824_v13 = vld [vmem:[%s5342_s28] sm:$0xff]  ;;  %v656_v15 = vmax.f32 %v648_v12, 0.0  ;;  %v657_v17 = vmax.f32 %v649_v14, 0.0  ;;  %v825_v18 = vld [vmem:[%s5342_s28 + $0x8] sm:$0xff]  ;;  %v826_v20 = vld [vmem:[%s5342_s28 + $0x10] sm:$0xff]  ;;  %v658_v22 = vmax.f32 %v650_v19, 0.0 }
  0x28   : > { %4976 = vmatpush3.bf16.msra.mxu0 %v4973_v3  ;;  %v832_v16 = vmax.f32 %v824_v13, 0.0  ;;  %v833_v21 = vmax.f32 %v825_v18, 0.0  ;;  %v651_v23 = vld [vmem:[%s5337_s0 + $0x18] sm:$0xff]  ;;  %v834_v24 = vmax.f32 %v826_v20, 0.0  ;;  %v652_v26 = vld [vmem:[%s5337_s0 + $0x20] sm:$0xff]  ;;  %v653_v31 = vld [vmem:[%s5337_s0 + $0x28] sm:$0xff] }
  0x29   : > { %4978 = vmatprep.subr.bf16.mxu0 %v4977_v8  ;;  %4889 = vmatprep.mubr.msk.f32.mxu0 %vm668_vm0, %v656_v15  ;;  %v827_v25 = vld [vmem:[%s5342_s28 + $0x18] sm:$0xff]  ;;  %v828_v27 = vld [vmem:[%s5342_s28 + $0x20] sm:$0xff]  ;;  %v659_v28 = vmax.f32 %v651_v23, 0.0  ;;  %v660_v30 = vmax.f32 %v652_v26, 0.0  ;;  %v829_v33 = vld [vmem:[%s5342_s28 + $0x28] sm:$0xff]  ;;  %v661_v36 = vmax.f32 %v653_v31, 0.0 }
  0x2a   : > { %4909 = vmatprep.mubr.msk.f32.mxu1 %vm668_vm0, %v832_v16  ;;  %v835_v29 = vmax.f32 %v827_v25, 0.0  ;;  %v836_v32 = vmax.f32 %v828_v27, 0.0  ;;  %v654_v34 = vld [vmem:[%s5337_s0 + $0x30] sm:$0xff]  ;;  %v837_v37 = vmax.f32 %v829_v33, 0.0  ;;  %v655_v39 = vld [vmem:[%s5337_s0 + $0x38] sm:$0xff]  ;;  %s8735_s30 = smov 48  }
  0x2b   : > { %4910 = vmatmul.mubr.msk.f32.vlgmr.msra.gmra.mrb[0].mxu1 %vm668_vm0, %v833_v21  ;;  %v830_v35 = vld [vmem:[%s5342_s28 + $0x30] sm:$0xff]  ;;  %v662_v38 = vmax.f32 %v654_v34, 0.0  ;;  %v831_v41 = vld [vmem:[%s5342_s28 + $0x38] sm:$0xff]  ;;  %v663_v42 = vmax.f32 %v655_v39, 0.0  ;;  %v5389_v48 = vld [vmem:[%s8362_s5] ss:$0 sm:$0xff] }
  0x2c   : > { %4980 = vmatpush3.bf16.msra.mxu0 %v4977_v8  ;;  %4912 = vmatprep.mubr.msk.f32.mxu1 %vm668_vm0, %v834_v24  ;;  %v838_v40 = vmax.f32 %v830_v35, 0.0  ;;  %v839_v43 = vmax.f32 %v831_v41, 0.0  ;;  %v5399_v57 = vld [vmem:[%s8362_s5 + $0x1] ss:$0 sm:$0xff]  ;;  %s8344_s28 = smov 48   ;;  %s635_s0 = sand.u32 1, %s5134_s22  }
  0x2d   : > { %s8091_s29 = scalar_lea.sflag [#allocation3], %s635_s0 }
  0x2f   : > { %4890 = vmatmul.mubr.msk.f32.vlgmr.msra.gmra.mrb[0].mxu0 %vm668_vm0, %v657_v17  ;;  %4913 = vmatmul.mubr.msk.f32.gmra.mrb[2].mxu1 %vm668_vm0, %v835_v29 }
  0x30   : > { %4892 = vmatprep.mubr.msk.f32.mxu0 %vm668_vm0, %v658_v22  ;;  %4915 = vmatprep.mubr.msk.f32.mxu1 %vm668_vm0, %v836_v32 }
  0x33   : > { %4893 = vmatmul.mubr.msk.f32.gmra.mrb[2].mxu0 %vm668_vm0, %v659_v28  ;;  %4916 = vmatmul.mubr.msk.f32.gmra.mrb[4].mxu1 %vm668_vm0, %v837_v37 }
  0x34   : > { %4895 = vmatprep.mubr.msk.f32.mxu0 %vm668_vm0, %v660_v30  ;;  %4918 = vmatprep.mubr.msk.f32.mxu1 %vm668_vm0, %v838_v40 }
  0x37   : > { %4896 = vmatmul.mubr.msk.f32.gmra.mrb[4].mxu0 %vm668_vm0, %v661_v36  ;;  %4919 = vmatmul.mubr.msk.f32.gmra.mrb[6].mxu1 %vm668_vm0, %v839_v43 }
  0x38   : > { %4898 = vmatprep.mubr.msk.f32.mxu0 %vm668_vm0, %v662_v38 }
  0x3b   : > { %4899 = vmatmul.mubr.msk.f32.gmra.mrb[6].mxu0 %vm668_vm0, %v663_v42 }
  0xfe   : > { %v4911_v46 = vpop.f32.mrb[0].mxu1 }
  0xff   : > { %v979_v50 = vmul.f32 %v4911_v46, %v5379_v44  ;;  %v934_v51 = vpop.f32.mrb[1].mxu1 }
 0x100   : > { %v978_v52 = vmul.f32 %v5379_v44, %v934_v51 }
 0x101   : > { %v992_v53 = vadd.f32 %v5384_v47, %v979_v50 }
 0x102   : > { %v4891_v45 = vpop.f32.mrb[0].mxu0  ;;  %v991_v56 = vadd.f32 %v5384_v47, %v978_v52  ;;  %v4914_v58 = vpop.f32.mrb[2].mxu1 }
 0x103   : > { %v759_v49 = vpop.f32.mrb[1].mxu0  ;;  %v804_v54 = vmul.f32 %v4891_v45, %v5389_v48  ;;  %v5401_v60 = vmax.f32 %v992_v53, 0.0  ;;  %v944_v61 = vpop.f32.mrb[3].mxu1  ;;  %v981_v18 = vmul.f32 %v4914_v58, %v5379_v44 }
 0x104   : > { %v5403_v62 = vmax.f32 %v991_v56, 0.0  ;;  %v980_v63 = vmul.f32 %v5379_v44, %v944_v61  ;;  %v803_v13 = vmul.f32 %v5389_v48, %v759_v49 }
 0x105   : > { %v5407_v0 = vadd.f32 %v5399_v57, %v804_v54  ;;  %1025 = vrot.lane.b32.xlu0 %v5401_v60, %s8260_s25  ;;  %v994_v23 = vadd.f32 %v5384_v47, %v981_v18 }
 0x106   : > { %v4894_v55 = vpop.f32.mrb[2].mxu0  ;;  %v993_v2 = vadd.f32 %v5384_v47, %v980_v63  ;;  %1047 = vrot.lane.b32.xlu1 %v5403_v62, %s8258_s26  ;;  %v4917_v3 = vpop.f32.mrb[4].mxu1  ;;  %v816_v17 = vadd.f32 %v5399_v57, %v803_v13 }
 0x107   : > { %v769_v59 = vpop.f32.mrb[3].mxu0  ;;  %v954_v5 = vpop.f32.mrb[5].mxu1  ;;  %v983_v7 = vmul.f32 %v4917_v3, %v5379_v44  ;;  %v1000_v9 = vmax.f32 %v5407_v0, 0.0  ;;  %v5447_v27 = vmax.f32 %v994_v23, 0.0  ;;  %v806_v28 = vmul.f32 %v4894_v55, %v5389_v48 }
 0x108   : > { %v5414_v6 = vmax.f32 %v993_v2, 0.0  ;;  %v982_v21 = vmul.f32 %v5379_v44, %v954_v5  ;;  %v999_v22 = vmax.f32 %v816_v17, 0.0  ;;  %v805_v24 = vmul.f32 %v5389_v48, %v769_v59 }
 0x109   : > { %1049 = vrot.lane.b32.xlu0 %v5401_v60, %s8258_s26  ;;  %v996_v10 = vadd.f32 %v5384_v47, %v983_v7  ;;  %v5465_v34 = vsel %vm4229_vm1, %v816_v17, 0.0  ;;  %v5468_v35 = vadd.f32 %v5399_v57, %v806_v28  ;;  %v4213_v41 = vcombine.high %v816_v17, %v816_v17 }
 0x10a   : > { %v4897_v1 = vpop.f32.mrb[4].mxu0  ;;  %1051 = vrot.lane.b32.xlu1 %v5414_v6, %s8258_s26  ;;  %v4920_v12 = vpop.f32.mrb[6].mxu1  ;;  %v995_v26 = vadd.f32 %v5384_v47, %v982_v21  ;;  %v5451_v29 = vadd.f32 %v5399_v57, %v805_v24  ;;  %v4230_v42 = vsel %vm4229_vm1, %v816_v17, -3.4028235e+38  ;;  %v5486_v43 = vsel %vm4229_vm1, %v5407_v0, -3.4028235e+38 }
 0x10b   : > { %v779_v4 = vpop.f32.mrb[5].mxu0  ;;  %v964_v14 = vpop.f32.mrb[7].mxu1  ;;  %v808_v15 = vmul.f32 %v4897_v1, %v5389_v48  ;;  %v5425_v16 = vmax.f32 %v996_v10, 0.0  ;;  %v985_v30 = vmul.f32 %v4920_v12, %v5379_v44  ;;  %v5490_v45 = vcombine.high %v5407_v0, %v5407_v0 }
 0x10c   : > { %v807_v25 = vmul.f32 %v5389_v48, %v779_v4  ;;  %v5461_v32 = vmax.f32 %v995_v26, 0.0  ;;  %v5472_v36 = vcombine.high %v5451_v29, %v5451_v29  ;;  %v4234_v37 = vsel %vm4229_vm1, %v5451_v29, -3.4028235e+38 }
 0x10d   : > { %1081 = vrot.lane.b32.xlu0 %v1000_v9, %s8344_s28  ;;  %v5433_v19 = vadd.f32 %v5399_v57, %v808_v15  ;;  %v998_v39 = vadd.f32 %v5384_v47, %v985_v30  ;;  %v984_v40 = vmul.f32 %v5379_v44, %v964_v14  ;;  %v5503_v50 = vsel %vm4229_vm1, %v4213_v41, -3.4028235e+38 }
 0x10e   : > { %v4900_v8 = vpop.f32.mrb[6].mxu0  ;;  %1033 = vrot.lane.b32.xlu1 %v5425_v16, %s8260_s25  ;;  %v5459_v31 = vadd.f32 %v5399_v57, %v807_v25  ;;  %v5507_v52 = vsel %vm4229_vm1, %v5490_v45, -3.4028235e+38  ;;  %v1001_v55 = vmax.f32 %v5451_v29, 0.0  ;;  %v1002_v5 = vmax.f32 %v5468_v35, 0.0 }
 0x10f   : > { %v789_v11 = vpop.f32.mrb[7].mxu0  ;;  %v1004_v20 = vmax.f32 %v5433_v19, 0.0  ;;  %v810_v38 = vmul.f32 %v4900_v8, %v5389_v48  ;;  %v5511_v53 = vsel %vm4229_vm1, %v5433_v19, -3.4028235e+38  ;;  %v5523_v59 = vmax.f32 %v998_v39, 0.0 }
 0x110   : > { %v809_v33 = vmul.f32 %v5389_v48, %v789_v11  ;;  %v1003_v48 = vmax.f32 %v5459_v31, 0.0  ;;  %v4238_v44 = vsel %vm4229_vm1, %v5459_v31, -3.4028235e+38  ;;  %v5500_v49 = vcombine.high %v5459_v31, %v5459_v31 }
 0x111   : > { %1023 = vrot.lane.b32.xlu0 %v5403_v62, %s8260_s25  ;;  %v4262_v51 = vmax.f32 %v4230_v42, %v4238_v44  ;;  %v5514_v54 = vadd.f32 %v5399_v57, %v810_v38  ;;  %v4264_v58 = vmax.f32 %v5486_v43, %v5511_v53  ;;  %v997_v61 = vadd.f32 %v5384_v47, %v984_v40 }
 0x112   : > { %1057 = vrot.lane.b32.xlu1 %v5425_v16, %s8258_s26  ;;  %v5493_v46 = vadd.f32 %v5399_v57, %v809_v33  ;;  %v4239_v56 = vsel %vm4229_vm1, %v5500_v49, -3.4028235e+38  ;;  %v5538_v4 = vcombine.high %v5433_v19, %v5433_v19  ;;  %v5542_v47 = vcombine.high %v5468_v35, %v5468_v35 }
 0x113   : > { %v4270_v57 = vmax.f32 %v4262_v51, %v5503_v50  ;;  %v4263_v63 = vmax.f32 %v5503_v50, %v4239_v56  ;;  %v4272_v3 = vmax.f32 %v4264_v58, %v5507_v52  ;;  %v5548_v9 = vcombine.high %v5514_v54, %v5514_v54 }
 0x114   : > { %v5531_v1 = vcombine.high %v5493_v46, %v5493_v46  ;;  %v4242_v2 = vsel %vm4229_vm1, %v5493_v46, -3.4028235e+38  ;;  %v4244_v10 = vsel %vm4229_vm1, %v5514_v54, -3.4028235e+38  ;;  %v4235_v11 = vsel %vm4229_vm1, %v5472_v36, -3.4028235e+38 }
 0x115   : > { %1079 = vrot.lane.b32.xlu0 %v999_v22, %s8344_s28  ;;  %v4278_v7 = vmax.f32 %v4270_v57, %v4234_v37  ;;  %v4271_v8 = vmax.f32 %v4263_v63, %v5486_v43  ;;  %v4236_v12 = vsel %vm4229_vm1, %v5468_v35, -3.4028235e+38  ;;  %v5557_v13 = vmax.f32 %v997_v61, 0.0 }
 0x116   : > { %1089 = vrot.lane.b32.xlu1 %v1004_v20, %s8344_s28  ;;  %v1005_v14 = vmax.f32 %v5493_v46, 0.0  ;;  %v4306_v18 = vrot.slane %v4230_v42, 1  ;;  %v4243_v20 = vsel %vm4229_vm1, %v5531_v1, -3.4028235e+38  ;;  %v4280_v21 = vmax.f32 %v4272_v3, %v4236_v12 }
 0x117   : > { %v4286_v15 = vmax.f32 %v4278_v7, %v4242_v2  ;;  %v4279_v17 = vmax.f32 %v4271_v8, %v4235_v11  ;;  %v4241_v22 = vsel %vm4229_vm1, %v5538_v4, -3.4028235e+38  ;;  %v4307_v24 = vrot.slane %v5503_v50, 1 }
 0x118   : > { %v4308_v26 = vrot.slane %v5486_v43, 1  ;;  %v4237_v28 = vsel %vm4229_vm1, %v5542_v47, -3.4028235e+38  ;;  %v4288_v30 = vmax.f32 %v4280_v21, %v4244_v10  ;;  %v4245_v33 = vsel %vm4229_vm1, %v5548_v9, -3.4028235e+38 }
 0x119   : > { %1027 = vrot.lane.b32.xlu0 %v5414_v6, %s8260_s25  ;;  %v4294_v23 = vmax.f32 %v4286_v15, %v4235_v11  ;;  %v4287_v25 = vmax.f32 %v4279_v17, %v4243_v20  ;;  %v4265_v37 = vmax.f32 %v5507_v52, %v4241_v22  ;;  %v4338_v39 = vrot.slane %v4238_v44, 1 }
 0x11a   : > { %1053 = vrot.lane.b32.xlu1 %v5447_v27, %s8258_s26  ;;  %v4340_v42 = vrot.slane %v5511_v53, 1  ;;  %v4296_v43 = vmax.f32 %v4288_v30, %v4237_v28  ;;  %v4247_v50 = vsel %vm4229_vm1, %v4213_v41, 0.0  ;;  %v4254_v51 = vsel %vm4229_vm1, %v5459_v31, 0.0 }
 0x11b   : > { %v4314_v38 = vmax.f32 %v4294_v23, %v4306_v18  ;;  %v4295_v40 = vmax.f32 %v4287_v25, %v4236_v12  ;;  %v4339_v61 = vrot.slane %v4239_v56, 1  ;;  %v4266_v57 = vadd.f32 %v4254_v51, %v5465_v34 }
 0x11c   : > { %v4250_v63 = vsel %vm4229_vm1, %v5451_v29, 0.0  ;;  %v4316_v44 = vmax.f32 %v4296_v43, %v4308_v26  ;;  %v4258_v31 = vsel %vm4229_vm1, %v5493_v46, 0.0  ;;  %v4309_v56 = vrot.slane %v5507_v52, 1 }
 0x11d   : > { %1031 = vrot.lane.b32.xlu0 %v5461_v32, %s8260_s25  ;;  %v4315_v58 = vmax.f32 %v4295_v40, %v4307_v24  ;;  %v4274_v3 = vadd.f32 %v4266_v57, %v4247_v50  ;;  %v1006_v29 = vmax.f32 %v5514_v54, 0.0  ;;  %v4255_v11 = vsel %vm4229_vm1, %v5500_v49, 0.0 }
 0x11e   : > { %1055 = vrot.lane.b32.xlu1 %v5461_v32, %s8258_s26  ;;  %v4341_v15 = vrot.slane %v4241_v22, 1  ;;  %v4267_v46 = vadd.f32 %v4255_v11, %v4247_v50  ;;  %v4251_v52 = vsel %vm4229_vm1, %v5472_v36, 0.0  ;;  %v4248_v18 = vsel %vm4229_vm1, %v5407_v0, 0.0 }
 0x11f   : > { %v4347_v41 = vmax.f32 %v4315_v58, %v4339_v61  ;;  %v4282_v10 = vadd.f32 %v4274_v3, %v4250_v63  ;;  %v4259_v49 = vsel %vm4229_vm1, %v5531_v1, 0.0  ;;  %v4252_v36 = vsel %vm4229_vm1, %v5468_v35, 0.0 }
 0x120   : > { %v4275_v21 = vadd.f32 %v4267_v46, %v4248_v18  ;;  %v4249_v0 = vsel %vm4229_vm1, %v5490_v45, 0.0  ;;  %v4256_v1 = vsel %vm4229_vm1, %v5433_v19, 0.0  ;;  %v4253_v40 = vsel %vm4229_vm1, %v5542_v47, 0.0 }
 0x121   : > { %1029 = vrot.lane.b32.xlu0 %v5447_v27, %s8260_s25  ;;  %v5592_v8 = vmax.f32 %v4347_v41, %v4308_v26  ;;  %v4290_v17 = vadd.f32 %v4282_v10, %v4258_v31  ;;  %v4355_v43 = vrot.slane %v4255_v11, 1  ;;  %v4260_v45 = vsel %vm4229_vm1, %v5514_v54, 0.0 }
 0x122   : > { %1087 = vrot.lane.b32.xlu1 %v1003_v48, %s8344_s28  ;;  %v4273_v48 = vmax.f32 %v4265_v37, -3.4028235e+38  ;;  %v4283_v22 = vadd.f32 %v4275_v21, %v4251_v52  ;;  %v4261_v19 = vsel %vm4229_vm1, %v5548_v9, 0.0  ;;  %v4325_v57 = vrot.slane %v4249_v0, 1 }
 0x123   : > { %8364 = vst [vmem:[#allocation11_spill] sm:$0xff] %v5592_v8  ;;  %v4298_v23 = vadd.f32 %v4290_v17, %v4251_v52  ;;  %v4356_v41 = vrot.slane %v4256_v1, 1  ;;  %v5844_v8 = vld [vmem:[%s8140_s8 + $0x2c] ss:$0 sm:$0xff] }
 0x124   : > { %v4281_v53 = vmax.f32 %v4273_v48, %v4237_v28  ;;  %v4354_v28 = vrot.slane %v4254_v51, 1  ;;  %v4291_v30 = vadd.f32 %v4283_v22, %v4259_v49  ;;  %v4324_v51 = vrot.slane %v4248_v18, 1  ;;  %v5646_v49 = vld [vmem:[%s8140_s8 + $0x7] ss:$0 sm:$0xff]  ;;  %v5655_v22 = vld [vmem:[%s8140_s8] ss:$0 sm:$0xff] }
 0x125   : > { %1083 = vrot.lane.b32.xlu0 %v1001_v55, %s8344_s28  ;;  %v4346_v55 = vmax.f32 %v4314_v38, %v4338_v39  ;;  %v4268_v39 = vadd.f32 %v4256_v1, %v4248_v18  ;;  %v5680_v1 = vld [vmem:[%s8140_s8 + $0x3] ss:$0 sm:$0xff] }
 0x126   : > { %1037 = vrot.lane.b32.xlu1 %v5523_v59, %s8260_s25  ;;  %v4289_v7 = vmax.f32 %v4281_v53, %v4245_v33  ;;  %v4323_v33 = vrot.slane %v4247_v50, 1  ;;  %v4299_v38 = vadd.f32 %v4291_v30, %v4252_v36 }
 0x127   : > { %v5586_v2 = vmax.f32 %v4346_v55, %v4307_v24  ;;  %v4322_v24 = vrot.slane %v5465_v34, 1  ;;  %v4276_v48 = vadd.f32 %v4268_v39, %v4249_v0 }
 0x128   : > { %v4331_v35 = vadd.f32 %v4323_v33, %v4299_v38  ;;  %v5685_v38 = vld [vmem:[%s8140_s8 + $0x5] ss:$0 sm:$0xff] }
 0x129   : > { %1085 = vrot.lane.b32.xlu0 %v1002_v5, %s8344_s28  ;;  %8363 = vst [vmem:[#allocation10_spill] sm:$0xff] %v5586_v2  ;;  %v4348_v5 = vmax.f32 %v4316_v44, %v4340_v42  ;;  %v4330_v26 = vadd.f32 %v4322_v24, %v4298_v23  ;;  %v4257_v42 = vsel %vm4229_vm1, %v5538_v4, 0.0  ;;  %v4284_v58 = vadd.f32 %v4276_v48, %v4252_v36 }
 0x12a   : > { %1035 = vrot.lane.b32.xlu1 %v5557_v13, %s8260_s25  ;;  %v4269_v50 = vadd.f32 %v4257_v42, %v4249_v0  ;;  %v4363_v55 = vadd.f32 %v4355_v43, %v4331_v35  ;;  %v4357_v4 = vrot.slane %v4257_v42, 1  ;;  %v5675_v0 = vld [vmem:[%s8140_s8 + $0x4] ss:$0 sm:$0xff]  ;;  %8374 = vst [vmem:[#allocation21_spill] sm:$0xff] %v5685_v38  ;;  %v5697_v42 = vld [vmem:[%s8140_s8 + $0x9] ss:$0 sm:$0xff] }
 0x12b   : > { %v5598_v12 = vmax.f32 %v4348_v5, %v4309_v56  ;;  %v4362_v37 = vadd.f32 %v4354_v28, %v4330_v26  ;;  %v4292_v47 = vadd.f32 %v4284_v58, %v4260_v45  ;;  %8373 = vst [vmem:[#allocation20_spill] sm:$0xff] %v5675_v0  ;;  %v5702_v35 = vld [vmem:[%s8140_s8 + $0xb] ss:$0 sm:$0xff]  ;;  %s8734_s25 = smov 32  }
 0x12c   : > { %v4285_v61 = vadd.f32 %v4269_v50, %v4253_v40  ;;  %v5626_v63 = vadd.f32 %v4363_v55, %v4324_v51  ;;  %8375 = vst [vmem:[#allocation22_spill] sm:$0xff] %v5702_v35  ;;  %v5721_v55 = vld [vmem:[%s8140_s8 + $0x8] ss:$0 sm:$0xff] }
 0x12d   : > { %1059 = vrot.lane.b32.xlu0 %v5557_v13, %s8258_s26  ;;  %8365 = vst [vmem:[#allocation12_spill] sm:$0xff] %v5598_v12  ;;  %v5616_v34 = vadd.f32 %v4362_v37, %v4323_v33  ;;  %v4300_v53 = vadd.f32 %v4292_v47, %v4253_v40  ;;  %v5692_v40 = vld [vmem:[%s8140_s8 + $0x1c] ss:$0 sm:$0xff]  ;;  %8378 = vst [vmem:[#allocation25_spill] sm:$0xff] %v5721_v55 }
 0x12e   : > { %1091 = vrot.lane.b32.xlu1 %v1005_v14, %s8344_s28  ;;  %v4297_v14 = vmax.f32 %v4289_v7, -3.4028235e+38  ;;  %8368 = vst [vmem:[#allocation15_spill] sm:$0xff] %v5626_v63  ;;  %v4293_v44 = vadd.f32 %v4285_v61, %v4261_v19  ;;  %v5730_v61 = vld [vmem:[%s8140_s8 + $0xa] ss:$0 sm:$0xff] }
 0x12f   : > { %8367 = vst [vmem:[#allocation14_spill] sm:$0xff] %v5616_v34  ;;  %v4332_v31 = vadd.f32 %v4324_v51, %v4300_v53  ;;  %8380 = vst [vmem:[#allocation27_spill] sm:$0xff] %v5730_v61 }
 0x130   : > { %v4317_v20 = vmax.f32 %v4297_v14, %v4309_v56  ;;  %v4333_v3 = vadd.f32 %v4325_v57, %v4293_v44  ;;  %v5744_v44 = vld [vmem:[%s8140_s8 + $0x2a] ss:$0 sm:$0xff] }
 0x131   : > { %1061 = vrot.lane.b32.xlu0 %v5523_v59, %s8258_s26  ;;  %v4364_v54 = vadd.f32 %v4356_v41, %v4332_v31 }
 0x132   : > { %1093 = vrot.lane.b32.xlu1 %v1006_v29, %s8344_s28  ;;  %v5608_v25 = vmax.f32 %v4317_v20, %v4341_v15  ;;  %v5628_v56 = vadd.f32 %v4357_v4, %v4333_v3  ;;  %v8162_v15 = vmov 0.0   ;;  %v5749_v4 = vld [vmem:[%s8140_s8 + $0x1] ss:$0 sm:$0xff]  ;;  %v5762_v3 = vld [vmem:[%s8140_s8 + $0xc] ss:$0 sm:$0xff] }
 0x133   : > { %v5630_v5 = vadd.f32 %v4364_v54, %v4325_v57  ;;  %v1146_v46 = vrot.slane %v8162_v15, 7  ;;  %8384 = vst [vmem:[#allocation31_spill] sm:$0xff] %v5762_v3 }
 0x134   : > { %8366 = vst [vmem:[#allocation13_spill] sm:$0xff] %v5608_v25  ;;  %8369 = vst [vmem:[#allocation16_spill] sm:$0xff] %v5628_v56  ;;  %v5867_v25 = vld [vmem:[%s8140_s8 + $0x2d] ss:$0 sm:$0xff]  ;;  %v5872_v56 = vld [vmem:[%s8140_s8 + $0x26] ss:$0 sm:$0xff] }
 0x135   : > { %8370 = vst [vmem:[#allocation17_spill] sm:$0xff] %v5630_v5  ;;  %v1181_v18 = vsel %vm1180_vm2, 0.0, %v1146_v46  ;;  %v5782_v46 = vld [vmem:[%s8140_s8 + $0x23] ss:$0 sm:$0xff]  ;;  %8395 = vst [vmem:[#allocation42_spill] sm:$0xff] %v5867_v25 }
 0x136   : > { %v5641_v21 = vsel %vm1198_vm3, %v1181_v18, 0.0  ;;  %8396 = vst [vmem:[#allocation43_spill] sm:$0xff] %v5872_v56 }
 0x137   : > { %8371 = vst [vmem:[#allocation18_spill] sm:$0xff] %v5641_v21  ;;  %v1221_v26 = vmul.f32 %v5655_v22, %v5641_v21  ;;  %v1230_v28 = vmul.f32 %v5646_v49, %v5641_v21  ;;  %v5706_v43 = vmul.f32 %v5680_v1, %v5641_v21  ;;  %v5710_v48 = vmul.f32 %v5685_v38, %v5641_v21 }
 0x138   : > { %v5725_v58 = vmul.f32 %v5697_v42, %v5641_v21  ;;  %v5734_v57 = vmul.f32 %v5675_v0, %v5641_v21  ;;  %v5739_v47 = vmul.f32 %v5692_v40, %v5641_v21  ;;  %v5753_v53 = vmul.f32 %v5730_v61, %v5641_v21 }
 0x139   : > { %v5687_v39 = vadd.f32 %v1230_v28, %v1221_v26  ;;  %8376 = vst [vmem:[#allocation23_spill] sm:$0xff] %v5706_v43  ;;  %8377 = vst [vmem:[#allocation24_spill] sm:$0xff] %v5710_v48  ;;  %v5757_v41 = vmul.f32 %v5702_v35, %v5641_v21  ;;  %v5795_v28 = vld [vmem:[%s8140_s8 + $0x25] ss:$0 sm:$0xff]  ;;  %v5890_v48 = vmul.f32 %v5872_v56, %v5641_v21 }
 0x13a   : > { %8379 = vst [vmem:[#allocation26_spill] sm:$0xff] %v5725_v58  ;;  %8381 = vst [vmem:[#allocation28_spill] sm:$0xff] %v5734_v57  ;;  %v5894_v61 = vmul.f32 %v5867_v25, %v5641_v21  ;;  %v5929_v25 = vld [vmem:[%s8140_s8 + $0x21] ss:$0 sm:$0xff] }
 0x13b   : > { %8382 = vst [vmem:[#allocation29_spill] sm:$0xff] %v5753_v53  ;;  %8383 = vst [vmem:[#allocation30_spill] sm:$0xff] %v5757_v41 }
 0x13c   : > { %8399 = vst [vmem:[#allocation46_spill] sm:$0xff] %v5890_v48  ;;  %8400 = vst [vmem:[#allocation47_spill] sm:$0xff] %v5894_v61 }
 0x13d   : > { %8405 = vst [vmem:[#allocation52_spill] sm:$0xff] %v5929_v25 }
 0x177   : > { %v1026_v9 = vpop.permute.xlu0 %1025 }
 0x178   : > { %v1048_v7 = vpop.permute.xlu1 %1047  ;;  %v1105_v45 = vsel %vm1103_vm4, %v5401_v60, %v1026_v9  ;;  %v5769_v9 = vmul.f32 %v5744_v44, %v5641_v21 }
 0x17a   : > { %8385 = vst [vmem:[#allocation32_spill] sm:$0xff] %v5769_v9 }
 0x17b   : > { %v1050_v29 = vpop.permute.xlu0 %1049 }
 0x17c   : > { %v5632_v10 = vpop.permute.xlu1 %1051  ;;  %v1113_v60 = vsel %vm668_vm0, %v1105_v45, %v1050_v29  ;;  %v5777_v29 = vmul.f32 %v5762_v3, %v5641_v21  ;;  %v5876_v3 = vmul.f32 %v5844_v8, %v5641_v21 }
 0x17e   : > { %8386 = vst [vmem:[#allocation33_spill] sm:$0xff] %v5777_v29  ;;  %8397 = vst [vmem:[#allocation44_spill] sm:$0xff] %v5876_v3 }
 0x17f   : > { %v1082_v11 = vpop.permute.xlu0 %1081 }
 0x180   : > { %v5634_v14 = vpop.permute.xlu1 %1033  ;;  %v5765_v31 = vsel %vm1120_vm5, %v1113_v60, %v1082_v11  ;;  %v5786_v11 = vmul.f32 %v5721_v55, %v5641_v21 }
 0x181   : > { %v1138_v60 = vcombine.high %v5765_v31, %v5765_v31  ;;  %v1149_v41 = vrot.slane %v5765_v31, 7 }
 0x183   : > { %v1024_v52 = vpop.permute.xlu0 %1023 }
 0x184   : > { %v5637_v17 = vpop.permute.xlu1 %1057  ;;  %v1104_v24 = vsel %vm1103_vm4, %v5403_v62, %v1024_v52  ;;  %v5669_v62 = vld [vmem:[%s8140_s8 + $0x2] ss:$0 sm:$0xff] }
 0x185   : > { %v1112_v36 = vsel %vm668_vm0, %v1104_v24, %v1048_v7  ;;  %8372 = vst [vmem:[#allocation19_spill] sm:$0xff] %v5669_v62  ;;  %v5714_v50 = vmul.f32 %v5669_v62, %v5641_v21  ;;  %v5773_v7 = vmul.f32 %v5749_v4, %v5641_v21 }
 0x187   : > { %v1080_v20 = vpop.permute.xlu0 %1079 }
 0x188   : > { %v5648_v23 = vpop.permute.xlu1 %1089  ;;  %v1121_v37 = vsel %vm1120_vm5, %v1112_v36, %v1080_v20  ;;  %v5818_v36 = vld [vmem:[%s8140_s8 + $0x2b] ss:$0 sm:$0xff]  ;;  %v5828_v20 = vmul.f32 %v5782_v46, %v5641_v21 }
 0x189   : > { %v1147_v19 = vrot.slane %v1121_v37, 7  ;;  %v1137_v24 = vcombine.high %v1121_v37, %v1121_v37  ;;  %v5806_v37 = vld [vmem:[%s8140_s8 + $0x1d] ss:$0 sm:$0xff]  ;;  %v5853_v2 = vmul.f32 %v5818_v36, %v5641_v21 }
 0x18a   : > { %8387 = vst [vmem:[#allocation34_spill] sm:$0xff] %v5828_v20  ;;  %v5832_v45 = vmul.f32 %v5806_v37, %v5641_v21 }
 0x18b   : > { %v5662_v30 = vpop.permute.xlu0 %1027  ;;  %v1182_v26 = vsel %vm1180_vm2, 0.0, %v1147_v19  ;;  %v5811_v19 = vld [vmem:[%s8140_s8 + $0x24] ss:$0 sm:$0xff]  ;;  %8392 = vst [vmem:[#allocation39_spill] sm:$0xff] %v5853_v2  ;;  %v1148_v63 = vrot.slane %v1137_v24, 7  ;;  %v1150_v24 = vrot.slane %v1138_v60, 7 }
 0x18c   : > { %v5664_v33 = vpop.permute.xlu1 %1053  ;;  %8388 = vst [vmem:[#allocation35_spill] sm:$0xff] %v5832_v45  ;;  %v5836_v18 = vmul.f32 %v5811_v19, %v5641_v21  ;;  %v5839_v12 = vsel %vm1198_vm3, %v1182_v26, 0.0  ;;  %v5861_v26 = vmul.f32 %v5795_v28, %v5641_v21  ;;  %v5912_v2 = vld [vmem:[%s8140_s8 + $0x2e] ss:$0 sm:$0xff]  ;;  %v1184_v45 = vsel %vm1180_vm2, 0.0, %v1149_v41 }
 0x18d   : > { %8390 = vst [vmem:[#allocation37_spill] sm:$0xff] %v5839_v12  ;;  %8402 = vst [vmem:[#allocation49_spill] sm:$0xff] %v5912_v2  ;;  %v1183_v53 = vsel %vm1180_vm2, 0.0, %v1148_v63  ;;  %v1185_v31 = vsel %vm1180_vm2, 0.0, %v1150_v24  ;;  %v5954_v24 = vld [vmem:[%s8140_s8 + $0x28] ss:$0 sm:$0xff] }
 0x18e   : > { %8389 = vst [vmem:[#allocation36_spill] sm:$0xff] %v5836_v18  ;;  %8394 = vst [vmem:[#allocation41_spill] sm:$0xff] %v5861_v26  ;;  %v5902_v18 = vld [vmem:[%s8140_s8 + $0x27] ss:$0 sm:$0xff]  ;;  %v5936_v26 = vld [vmem:[%s8140_s8 + $0x15] ss:$0 sm:$0xff] }
 0x18f   : > { %v1032_v54 = vpop.permute.xlu0 %1031  ;;  %8401 = vst [vmem:[#allocation48_spill] sm:$0xff] %v5902_v18  ;;  %8409 = vst [vmem:[#allocation56_spill] sm:$0xff] %v5954_v24  ;;  %v5970_v20 = vsel %vm1198_vm3, %v1183_v53, 0.0  ;;  %v5984_v58 = vsel %vm1198_vm3, %v1184_v45, 0.0  ;;  %v1106_v45 = vsel %vm1103_vm4, %v5414_v6, %v5662_v30  ;;  %v6073_v30 = vmul.f32 %v5669_v62, %v5839_v12 }
 0x190   : > { %v1056_v51 = vpop.permute.xlu1 %1055  ;;  %v1108_v15 = vsel %vm1103_vm4, %v5461_v32, %v1032_v54  ;;  %v5823_v32 = vld [vmem:[%s8140_s8 + $0x1e] ss:$0 sm:$0xff]  ;;  %v5849_v54 = vld [vmem:[%s8140_s8 + $0x1f] ss:$0 sm:$0xff]  ;;  %v6035_v55 = vmul.f32 %v5692_v40, %v5984_v58  ;;  %v6053_v6 = vmul.f32 %v5844_v8, %v5984_v58 }
 0x191   : > { %8391 = vst [vmem:[#allocation38_spill] sm:$0xff] %v5849_v54  ;;  %v5857_v5 = vmul.f32 %v5823_v32, %v5641_v21  ;;  %v1116_v34 = vsel %vm668_vm0, %v1108_v15, %v1056_v51  ;;  %v5880_v29 = vmul.f32 %v5849_v54, %v5641_v21  ;;  %v5885_v15 = vld [vmem:[%s8140_s8 + $0xe] ss:$0 sm:$0xff] }
 0x192   : > { %v1243_v60 = vmul.f32 %v5885_v15, %v5839_v12 }
 0x193   : > { %8393 = vst [vmem:[#allocation40_spill] sm:$0xff] %v5857_v5  ;;  %8398 = vst [vmem:[#allocation45_spill] sm:$0xff] %v5880_v29  ;;  %v5938_v5 = vpop.permute.xlu0 %1029 }
 0x194   : > { %v1088_v52 = vpop.permute.xlu1 %1087  ;;  %v1247_v3 = vadd.f32 %v1243_v60, %v5687_v39  ;;  %v5979_v60 = vsel %vm1198_vm3, %v1185_v31, 0.0  ;;  %v6018_v31 = vmul.f32 %v5655_v22, %v5984_v58 }
 0x195   : > { %v1125_v51 = vsel %vm1120_vm5, %v1116_v34, %v1088_v52  ;;  %v5907_v52 = vld [vmem:[%s8140_s8 + $0x20] ss:$0 sm:$0xff]  ;;  %8413 = vst [vmem:[#allocation60_spill] sm:$0xff] %v5979_v60 }
 0x196   : > { %v1141_v57 = vcombine.high %v1125_v51, %v1125_v51  ;;  %v1155_v34 = vrot.slane %v1125_v51, 7  ;;  %v5918_v56 = vmul.f32 %v5907_v52, %v5641_v21  ;;  %v5922_v51 = vmul.f32 %v5902_v18, %v5641_v21 }
 0x197   : > { %v1084_v41 = vpop.permute.xlu0 %1083 }
 0x198   : > { %8403 = vst [vmem:[#allocation50_spill] sm:$0xff] %v5918_v56  ;;  %8404 = vst [vmem:[#allocation51_spill] sm:$0xff] %v5922_v51  ;;  %v1156_v43 = vrot.slane %v1141_v57, 7  ;;  %v1190_v54 = vsel %vm1180_vm2, 0.0, %v1155_v34  ;;  %v5945_v57 = vmul.f32 %v5912_v2, %v5641_v21  ;;  %v5949_v34 = vmul.f32 %v5929_v25, %v5641_v21  ;;  %v5967_v25 = vld [vmem:[%s8140_s8 + $0x2f] ss:$0 sm:$0xff] }
 0x199   : > { %v5941_v63 = vsel %vm1198_vm3, %v1190_v54, 0.0  ;;  %v5962_v2 = vmul.f32 %v5954_v24, %v5641_v21  ;;  %8411 = vst [vmem:[#allocation58_spill] sm:$0xff] %v5967_v25  ;;  %v5976_v39 = vmul.f32 %v5967_v25, %v5641_v21  ;;  %v1109_v21 = vsel %vm1103_vm4, %v5425_v16, %v5634_v14  ;;  %v6010_v16 = vld [vmem:[%s8140_s8 + $0x12] ss:$0 sm:$0xff] }
 0x19a   : > { %8406 = vst [vmem:[#allocation53_spill] sm:$0xff] %v5941_v63  ;;  %8407 = vst [vmem:[#allocation54_spill] sm:$0xff] %v5945_v57  ;;  %v1256_v54 = vmul.f32 %v5936_v26, %v5941_v63  ;;  %v1191_v24 = vsel %vm1180_vm2, 0.0, %v1156_v43  ;;  %v5995_v43 = vld [vmem:[%s8140_s8 + $0x10] ss:$0 sm:$0xff]  ;;  %v6066_v51 = vmul.f32 %v5844_v8, %v5979_v60  ;;  %v1114_v25 = vsel %vm668_vm0, %v1106_v45, %v5632_v10 }
 0x19b   : > { %8408 = vst [vmem:[#allocation55_spill] sm:$0xff] %v5949_v34  ;;  %8410 = vst [vmem:[#allocation57_spill] sm:$0xff] %v5962_v2  ;;  %v6005_v9 = vmul.f32 %v5995_v43, %v5979_v60  ;;  %v6013_v14 = vsel %vm1198_vm3, %v1191_v24, 0.0  ;;  %v1295_v2 = vmul.f32 %v5744_v44, %v5984_v58  ;;  %v6062_v34 = vmul.f32 %v5744_v44, %v5979_v60  ;;  %v1086_v29 = vpop.permute.xlu0 %1085 }
 0x19c   : > { %8412 = vst [vmem:[#allocation59_spill] sm:$0xff] %v5976_v39  ;;  %v1260_v38 = vadd.f32 %v1256_v54, %v1247_v3  ;;  %v1269_v3 = vmul.f32 %v5692_v40, %v5970_v20  ;;  %v1117_v54 = vsel %vm668_vm0, %v1109_v21, %v5637_v17  ;;  %8415 = vst [vmem:[#allocation62_spill] sm:$0xff] %v6010_v16 }
 0x19d   : > { %8414 = vst [vmem:[#allocation61_spill] sm:$0xff] %v6005_v9  ;;  %v6022_v17 = vmul.f32 %v5885_v15, %v5984_v58  ;;  %v6026_v21 = vmul.f32 %v6010_v16, %v5979_v60  ;;  %v1126_v24 = vsel %vm1120_vm5, %v1117_v54, %v5648_v23  ;;  %v6041_v39 = vmul.f32 %v5885_v15, %v5979_v60 }
 0x19e   : > { %v1273_v53 = vadd.f32 %v1269_v3, %v1260_v38  ;;  %v1282_v38 = vmul.f32 %v5782_v46, %v6013_v14  ;;  %v6045_v3 = vpop.permute.xlu1 %1037  ;;  %v6049_v23 = vmul.f32 %v5823_v32, %v5984_v58  ;;  %v6058_v54 = vmul.f32 %v5692_v40, %v5979_v60  ;;  %8418 = vst [vmem:[#allocation65_spill] sm:$0xff] %v6066_v51 }
 0x19f   : > { %8416 = vst [vmem:[#allocation63_spill] sm:$0xff] %v6026_v21  ;;  %v1142_v56 = vcombine.high %v1126_v24, %v1126_v24  ;;  %v1157_v40 = vrot.slane %v1126_v24, 7  ;;  %v1231_v44 = vmul.f32 %v5646_v49, %v5941_v63  ;;  %v1123_v61 = vsel %vm1120_vm5, %v1114_v25, %v1084_v41  ;;  %v6106_v25 = vld [vmem:[%s8140_s8 + $0x6] ss:$0 sm:$0xff] }
 0x1a0   : > { %8417 = vst [vmem:[#allocation64_spill] sm:$0xff] %v6049_v23  ;;  %v1286_v48 = vadd.f32 %v1282_v38, %v1273_v53  ;;  %v6080_v8 = vmul.f32 %v5995_v43, %v5839_v12  ;;  %v6084_v57 = vmul.f32 %v5675_v0, %v5839_v12  ;;  %v1222_v45 = vmul.f32 %v5655_v22, %v5839_v12 }
 0x1a1   : > { %v6092_v24 = vmul.f32 %v6010_v16, %v5839_v12  ;;  %v6097_v41 = vmul.f32 %v5907_v52, %v5984_v58  ;;  %v1223_v38 = vmul.f32 %v5655_v22, %v5970_v20  ;;  %v1158_v21 = vrot.slane %v1142_v56, 7  ;;  %8421 = vst [vmem:[#allocation68_spill] sm:$0xff] %v6106_v25 }
 0x1a2   : > { %8419 = vst [vmem:[#allocation66_spill] sm:$0xff] %v6084_v57  ;;  %v1151_v10 = vrot.slane %v1123_v61, 7  ;;  %v1298_v0 = vadd.f32 %v1295_v2, %v1286_v48  ;;  %v1036_v53 = vpop.permute.xlu1 %1035  ;;  %v1192_v23 = vsel %vm1180_vm2, 0.0, %v1157_v40  ;;  %v1235_v60 = vadd.f32 %v1231_v44, %v1222_v45  ;;  %v1060_v45 = vpop.permute.xlu0 %1059 }
 0x1a3   : > { %8420 = vst [vmem:[#allocation67_spill] sm:$0xff] %v6092_v24  ;;  %v1139_v62 = vcombine.high %v1123_v61, %v1123_v61  ;;  %v6110_v51 = vmul.f32 %v5995_v43, %v5970_v20  ;;  %v6116_v22 = vmul.f32 %v6010_v16, %v5970_v20  ;;  %v6121_v61 = vmul.f32 %v6106_v25, %v5839_v12 }
 0x1a4   : > { %v1107_v40 = vsel %vm1103_vm4, %v5447_v27, %v5938_v5  ;;  %v1244_v44 = vmul.f32 %v5885_v15, %v5970_v20  ;;  %v1193_v2 = vsel %vm1180_vm2, 0.0, %v1158_v21  ;;  %v6130_v9 = vsel %vm1198_vm3, %v1192_v23, 0.0 }
 0x1a5   : > { %8422 = vst [vmem:[#allocation69_spill] sm:$0xff] %v6116_v22  ;;  %8423 = vst [vmem:[#allocation70_spill] sm:$0xff] %v6121_v61  ;;  %v1186_v56 = vsel %vm1180_vm2, 0.0, %v1151_v10  ;;  %v1311_v48 = vadd.f32 %v5773_v7, %v1298_v0  ;;  %v1152_v12 = vrot.slane %v1139_v62, 7  ;;  %v1232_v25 = vmul.f32 %v5646_v49, %v6013_v14  ;;  %v6148_v62 = vld [vmem:[%s8140_s8 + $0xf] ss:$0 sm:$0xff] }
 0x1a6   : > { %v1248_v16 = vadd.f32 %v1244_v44, %v1235_v60  ;;  %v1110_v27 = vsel %vm1103_vm4, %v5557_v13, %v1036_v53  ;;  %v1115_v21 = vsel %vm668_vm0, %v1107_v40, %v5664_v33  ;;  %v1092_v10 = vpop.permute.xlu1 %1091  ;;  %v1233_v0 = vmul.f32 %v5646_v49, %v6130_v9 }
 0x1a7   : > { %v1118_v23 = vsel %vm668_vm0, %v1110_v27, %v1060_v45  ;;  %v6151_v13 = vsel %vm1198_vm3, %v1186_v56, 0.0  ;;  %v1257_v7 = vmul.f32 %v5936_v26, %v6013_v14  ;;  %v6156_v60 = vsel %vm1120_vm5, %v1115_v21, %v1086_v29  ;;  %v6170_v29 = vld [vmem:[%s8140_s8 + $0x17] ss:$0 sm:$0xff] }
 0x1a8   : > { %v6160_v53 = vsel %vm1198_vm3, %v1193_v2, 0.0  ;;  %v1258_v49 = vmul.f32 %v5936_v26, %v6130_v9  ;;  %v1324_v40 = vadd.f32 %v5786_v11, %v1311_v48  ;;  %v1187_v44 = vsel %vm1180_vm2, 0.0, %v1152_v12 }
 0x1a9   : > { %8424 = vst [vmem:[#allocation71_spill] sm:$0xff] %v6160_v53  ;;  %v1236_v56 = vadd.f32 %v1232_v25, %v1223_v38  ;;  %v1261_v45 = vadd.f32 %v1257_v7, %v1248_v16  ;;  %v1127_v27 = vsel %vm1120_vm5, %v1118_v23, %v1092_v10  ;;  %v1333_v2 = vmul.f32 %v6148_v62, %v6151_v13  ;;  %v6191_v38 = vld [vmem:[%s8140_s8 + $0x16] ss:$0 sm:$0xff] }
 0x1aa   : > { %v1153_v21 = vrot.slane %v6156_v60, 7  ;;  %v1143_v33 = vcombine.high %v1127_v27, %v1127_v27  ;;  %v1159_v15 = vrot.slane %v1127_v27, 7  ;;  %v1237_v11 = vadd.f32 %v1233_v0, %v6018_v31  ;;  %v6201_v0 = vld [vmem:[%s8140_s8 + $0x19] ss:$0 sm:$0xff] }
 0x1ab   : > { %v6178_v12 = vmul.f32 %v6170_v29, %v6160_v53  ;;  %v6182_v16 = vmul.f32 %v5795_v28, %v6130_v9  ;;  %v6186_v25 = vmul.f32 %v5902_v18, %v6130_v9  ;;  %v6195_v31 = vmul.f32 %v5795_v28, %v6160_v53  ;;  %8426 = vst [vmem:[#allocation73_spill] sm:$0xff] %v6201_v0 }
 0x1ac   : > { %v1337_v48 = vadd.f32 %v1333_v2, %v1324_v40  ;;  %v1160_v23 = vrot.slane %v1143_v33, 7  ;;  %v1194_v10 = vsel %vm1180_vm2, 0.0, %v1159_v15  ;;  %v6204_v7 = vsel %vm1198_vm3, %v1187_v44, 0.0 }
 0x1ad   : > { %8425 = vst [vmem:[#allocation72_spill] sm:$0xff] %v6186_v25  ;;  %v1249_v27 = vadd.f32 %v6022_v17, %v1236_v56  ;;  %v1274_v5 = vadd.f32 %v6035_v55, %v1261_v45  ;;  %v6209_v61 = vsel %vm1198_vm3, %v1194_v10, 0.0  ;;  %v6213_v33 = vmul.f32 %v6201_v0, %v6160_v53 }
 0x1ae   : > { %v1188_v15 = vsel %vm1180_vm2, 0.0, %v1153_v21  ;;  %v1195_v40 = vsel %vm1180_vm2, 0.0, %v1160_v23  ;;  %v1346_v2 = vmul.f32 %v6191_v38, %v6209_v61  ;;  %v1250_v44 = vadd.f32 %v6041_v39, %v1237_v11 }
 0x1af   : > { %8427 = vst [vmem:[#allocation74_spill] sm:$0xff] %v6213_v33  ;;  %v6222_v17 = vmul.f32 %v5902_v18, %v6160_v53  ;;  %v1283_v55 = vmul.f32 %v5782_v46, %v6130_v9  ;;  %v6227_v56 = vsel %vm1198_vm3, %v1195_v40, 0.0  ;;  %v1259_v45 = vmul.f32 %v5936_v26, %v6160_v53 }
 0x1b0   : > { %v1284_v21 = vmul.f32 %v5782_v46, %v6160_v53  ;;  %v1359_v23 = vmul.f32 %v5806_v37, %v6204_v7  ;;  %v1350_v39 = vadd.f32 %v1346_v2, %v1337_v48  ;;  %v1262_v10 = vadd.f32 %v1258_v49, %v1249_v27 }
 0x1b1   : > { %8428 = vst [vmem:[#allocation75_spill] sm:$0xff] %v6222_v17  ;;  %v1287_v22 = vadd.f32 %v1283_v55, %v1274_v5  ;;  %v6237_v57 = vsel %vm1198_vm3, %v1188_v15, 0.0  ;;  %v1372_v26 = vmul.f32 %v5811_v19, %v6227_v56  ;;  %v1263_v46 = vadd.f32 %v1259_v45, %v1250_v44  ;;  %v6249_v5 = vld [vmem:[%s8140_s8 + $0xd] ss:$0 sm:$0xff] }
 0x1b2   : > { %v1363_v18 = vadd.f32 %v1359_v23, %v1350_v39  ;;  %8429 = vst [vmem:[#allocation76_spill] sm:$0xff] %v6249_v5  ;;  %v6253_v49 = vmul.f32 %v5697_v42, %v5941_v63  ;;  %v1472_v27 = vmul.f32 %v6170_v29, %v5941_v63  ;;  %v1385_v15 = vmul.f32 %v5818_v36, %v6237_v57 }
 0x1b3   : > { %v6261_v55 = vmul.f32 %v5702_v35, %v5941_v63  ;;  %v1275_v45 = vadd.f32 %v6058_v54, %v1262_v10  ;;  %v1299_v23 = vadd.f32 %v6062_v34, %v1287_v22  ;;  %v1140_v39 = vcombine.high %v6156_v60, %v6156_v60 }
 0x1b4   : > { %v1376_v44 = vadd.f32 %v1372_v26, %v1363_v18  ;;  %v6269_v2 = vmul.f32 %v5702_v35, %v6130_v9  ;;  %v6273_v48 = vmul.f32 %v6249_v5, %v6130_v9  ;;  %v6277_v18 = vmul.f32 %v6201_v0, %v5941_v63 }
 0x1b5   : > { %8430 = vst [vmem:[#allocation77_spill] sm:$0xff] %v6261_v55  ;;  %v1276_v54 = vadd.f32 %v5739_v47, %v1263_v46  ;;  %v1308_v34 = vmul.f32 %v5749_v4, %v6151_v13  ;;  %v1111_v22 = vsel %vm1103_vm4, %v5523_v59, %v6045_v3  ;;  %v1497_v60 = vmul.f32 %v5823_v32, %v5970_v20  ;;  %v6295_v47 = vld [vmem:[%s8140_s8 + $0x11] ss:$0 sm:$0xff]  ;;  %v8442_v59 = vld [vmem:[#allocation21_spill] sm:$0xff] }
 0x1b6   : > { %8431 = vst [vmem:[#allocation78_spill] sm:$0xff] %v6269_v2  ;;  %8432 = vst [vmem:[#allocation79_spill] sm:$0xff] %v6273_v48  ;;  %v1388_v26 = vadd.f32 %v1385_v15, %v1376_v44  ;;  %v1480_v24 = vrot.slane %v1472_v27, 1  ;;  %v6290_v53 = vmul.f32 %v6249_v5, %v5941_v63  ;;  %v8435_v46 = vrot.slane %v5714_v50, 1  ;;  %v6304_v27 = vld [vmem:[%s8140_s8 + $0x13] ss:$0 sm:$0xff] }
 0x1b7   : > { %8434 = vst [vmem:[#allocation81_spill] sm:$0xff] %v6295_v47  ;;  %v1288_v3 = vadd.f32 %v1284_v21, %v1275_v45  ;;  %v1312_v44 = vadd.f32 %v1308_v34, %v1299_v23  ;;  %v1154_v40 = vrot.slane %v1140_v39, 7  ;;  %8436 = vst [vmem:[#allocation82_spill] sm:$0xff] %v6304_v27  ;;  %v1309_v10 = vmul.f32 %v5749_v4, %v6204_v7  ;;  %v8437_v50 = vld [vmem:[#allocation26_spill] sm:$0xff]  ;;  %v8441_v39 = vld [vmem:[#allocation25_spill] sm:$0xff] }
 0x1b8   : > { %8433 = vst [vmem:[#allocation80_spill] sm:$0xff] %v6290_v53  ;;  %v1413_v15 = vadd.f32 %v8435_v46, %v1388_v26  ;;  %v6310_v53 = vmul.f32 %v5680_v1, %v6151_v13  ;;  %v8438_v26 = vrot.slane %v8437_v50, 1  ;;  %v6316_v21 = vmul.f32 %v5680_v1, %v6204_v7  ;;  %v8446_v48 = vld [vmem:[#allocation32_spill] sm:$0xff] }
 0x1b9   : > { %v6320_v45 = vmul.f32 %v6295_v47, %v6151_v13  ;;  %v6324_v23 = vmul.f32 %v6295_v47, %v6204_v7  ;;  %v1321_v34 = vmul.f32 %v8441_v39, %v6209_v61  ;;  %v6330_v11 = vmul.f32 %v8442_v59, %v6151_v13 }
 0x1ba   : > { %v1438_v46 = vadd.f32 %v8438_v26, %v1413_v15  ;;  %8439 = vst [vmem:[#allocation26_spill] sm:$0xff] %v6316_v21  ;;  %v6334_v15 = vmul.f32 %v8442_v59, %v6204_v7  ;;  %v1522_v50 = vmul.f32 %v5795_v28, %v6013_v14  ;;  %v8445_v26 = vrot.slane %v6080_v8, 1  ;;  %v2250_v8 = vld [vmem:[%s8141_s9 + $0x18] sm:$0xff] }
 0x1bb   : > { %8440 = vst [vmem:[#allocation83_spill] sm:$0xff] %v6324_v23  ;;  %8443 = vst [vmem:[#allocation25_spill] sm:$0xff] %v6330_v11  ;;  %v1300_v17 = vadd.f32 %v8446_v48, %v1288_v3  ;;  %v6343_v33 = vmul.f32 %v6304_v27, %v6151_v13  ;;  %v1189_v5 = vsel %vm1180_vm2, 0.0, %v1154_v40  ;;  %v1325_v25 = vadd.f32 %v1321_v34, %v1312_v44  ;;  %v2247_v3 = vld [vmem:[%s8141_s9] sm:$0xff]  ;;  %v8453_v11 = vld [vmem:[#allocation23_spill] sm:$0xff] }
 0x1bc   : > { %8444 = vst [vmem:[#allocation21_spill] sm:$0xff] %v6334_v15  ;;  %v1463_v63 = vadd.f32 %v8445_v26, %v1438_v46  ;;  %v6349_v59 = vmul.f32 %v6304_v27, %v6204_v7  ;;  %v1505_v55 = vrot.slane %v1497_v60, 1  ;;  %v1626_v46 = vrot.slane %v6320_v45, 1  ;;  %v1062_v26 = vpop.permute.xlu0 %1061  ;;  %v6365_v60 = vld [vmem:[%s8140_s8 + $0x18] ss:$0 sm:$0xff] }
 0x1bd   : > { %8447 = vst [vmem:[#allocation32_spill] sm:$0xff] %v6343_v33  ;;  %v1334_v13 = vmul.f32 %v6148_v62, %v6204_v7  ;;  %v6358_v44 = vsel %vm1198_vm3, %v1189_v5, 0.0  ;;  %v1530_v34 = vrot.slane %v1522_v50, 1  ;;  %v1313_v27 = vadd.f32 %v1309_v10, %v1300_v17 }
 0x1be   : > { %8448 = vst [vmem:[#allocation84_spill] sm:$0xff] %v6349_v59  ;;  %v1488_v28 = vadd.f32 %v1480_v24, %v1463_v63  ;;  %v1360_v40 = vmul.f32 %v5806_v37, %v6237_v57  ;;  %v1119_v50 = vsel %vm668_vm0, %v1111_v22, %v1062_v26  ;;  %v6373_v17 = vmul.f32 %v5818_v36, %v6358_v44  ;;  %v8451_v26 = vld [vmem:[#allocation38_spill] sm:$0xff] }
 0x1bf   : > { %v1338_v45 = vadd.f32 %v1334_v13, %v1325_v25  ;;  %v1322_v10 = vmul.f32 %v8441_v39, %v6227_v56  ;;  %v8449_v25 = vld [vmem:[#allocation34_spill] sm:$0xff]  ;;  %v1668_v36 = vmul.f32 %v8451_v26, %v6204_v7  ;;  %v1643_v24 = vmul.f32 %v6365_v60, %v6209_v61 }
 0x1c0   : > { %v1513_v2 = vadd.f32 %v1505_v55, %v1488_v28  ;;  %v1094_v55 = vpop.permute.xlu1 %1093  ;;  %v1347_v28 = vmul.f32 %v6191_v38, %v6227_v56  ;;  %v1289_v13 = vadd.f32 %v8449_v25, %v1276_v54  ;;  %v2248_v54 = vld [vmem:[%s8141_s9 + $0x8] sm:$0xff]  ;;  %v2249_v25 = vld [vmem:[%s8141_s9 + $0x10] sm:$0xff]  ;;  %v8454_v0 = vrot.slane %v8453_v11, 1 }
 0x1c1   : > { %v1335_v33 = vmul.f32 %v6148_v62, %v6237_v57 }
 0x1c2   : > { %v1538_v5 = vadd.f32 %v1530_v34, %v1513_v2  ;;  %v8450_v2 = vld [vmem:[#allocation42_spill] sm:$0xff]  ;;  %v8452_v34 = vrot.slane %v6053_v6, 1  ;;  %v1351_v59 = vadd.f32 %v1347_v28, %v1338_v45  ;;  %v1310_v6 = vmul.f32 %v5749_v4, %v6237_v57 }
 0x1c3   : > { %v6385_v22 = vmul.f32 %v8450_v2, %v6358_v44  ;;  %v1718_v15 = vmul.f32 %v8450_v2, %v6237_v57  ;;  %v1301_v21 = vadd.f32 %v8446_v48, %v1289_v13  ;;  %v4989_v45 = vpack.c.bf16 %v2248_v54, %v2247_v3  ;;  %v2251_v4 = vld [vmem:[%s8141_s9 + $0x20] sm:$0xff] }
 0x1c4   : > { %v1559_v63 = vadd.f32 %v8452_v34, %v1538_v5  ;;  %v1326_v5 = vadd.f32 %v1322_v10, %v1313_v27  ;;  %v1128_v34 = vsel %vm1120_vm5, %v1119_v50, %v1094_v55  ;;  %v4993_v28 = vpack.c.bf16 %v2250_v8, %v2249_v25  ;;  %v2252_v27 = vld [vmem:[%s8141_s9 + $0x28] sm:$0xff]  ;;  %v8455_v50 = vld [vmem:[#allocation29_spill] sm:$0xff] }
 0x1c5   : > { %v1144_v23 = vcombine.high %v1128_v34, %v1128_v34  ;;  %v1161_v47 = vrot.slane %v1128_v34, 7  ;;  %v8456_v11 = vrot.slane %v8455_v50, 1  ;;  %v8457_v55 = vld [vmem:[#allocation43_spill] sm:$0xff]  ;;  %v1364_v48 = vadd.f32 %v1360_v40, %v1351_v59  ;;  %4990 = vmatprep.subr.bf16.mxu0 %v4989_v45  ;;  %v2254_v59 = vld [vmem:[%s8141_s9 + $0x38] sm:$0xff] }
 0x1c6   : > { %v1584_v35 = vadd.f32 %v8454_v0, %v1559_v63  ;;  %v1651_v63 = vrot.slane %v1643_v24, 1  ;;  %v1693_v10 = vmul.f32 %v8457_v55, %v6227_v56  ;;  %v1314_v13 = vadd.f32 %v1310_v6, %v1301_v21  ;;  %4992 = vmatpush3.bf16.msra.mxu0 %v4989_v45  ;;  %v2253_v21 = vld [vmem:[%s8141_s9 + $0x30] sm:$0xff]  ;;  %v8458_v6 = vld [vmem:[#allocation19_spill] sm:$0xff] }
 0x1c7   : > { %v1162_v2 = vrot.slane %v1144_v23, 7  ;;  %v1339_v3 = vadd.f32 %v1335_v33, %v1326_v5  ;;  %v1196_v8 = vsel %vm1180_vm2, 0.0, %v1161_v47  ;;  %v4997_v50 = vpack.c.bf16 %v2252_v27, %v2251_v4  ;;  %4994 = vmatprep.subr.bf16.mxu0 %v4993_v28 }
 0x1c8   : > { %v1609_v0 = vadd.f32 %v8456_v11, %v1584_v35  ;;  %v6425_v34 = vsel %vm1198_vm3, %v1196_v8, 0.0  ;;  %v1361_v24 = vmul.f32 %v5806_v37, %v6358_v44  ;;  %v1399_v5 = vmul.f32 %v8458_v6, %v5970_v20 }
 0x1c9   : > { %v1197_v25 = vsel %vm1180_vm2, 0.0, %v1162_v2  ;;  %v1323_v23 = vmul.f32 %v8441_v39, %v6425_v34  ;;  %v1348_v33 = vmul.f32 %v6191_v38, %v6425_v34  ;;  %v1373_v47 = vmul.f32 %v5811_v19, %v6425_v34 }
 0x1ca   : > { %v1634_v54 = vadd.f32 %v1626_v46, %v1609_v0  ;;  %v6428_v35 = vsel %vm1198_vm3, %v1197_v25, 0.0  ;;  %v1676_v46 = vrot.slane %v1668_v36, 1  ;;  %v1336_v39 = vmul.f32 %v6148_v62, %v6358_v44  ;;  %4996 = vmatpush3.bf16.msra.mxu0 %v4993_v28 }
 0x1cb   : > { %v1327_v45 = vadd.f32 %v1323_v23, %v1314_v13  ;;  %v1352_v4 = vadd.f32 %v1348_v33, %v1339_v3  ;;  %v1377_v27 = vadd.f32 %v1373_v47, %v1364_v48  ;;  %v1701_v0 = vrot.slane %v1693_v10, 1  ;;  %4998 = vmatprep.subr.bf16.mxu0 %v4997_v50 }
 0x1cc   : > { %v1659_v40 = vadd.f32 %v1651_v63, %v1634_v54  ;;  %v1349_v2 = vmul.f32 %v6191_v38, %v6428_v35  ;;  %v5001_v36 = vpack.c.bf16 %v2254_v59, %v2253_v21  ;;  %v1374_v62 = vmul.f32 %v5811_v19, %v6428_v35  ;;  %v8460_v21 = vld [vmem:[#allocation35_spill] sm:$0xff] }
 0x1cd   : > { %v1340_v63 = vadd.f32 %v1336_v39, %v1327_v45  ;;  %v1365_v8 = vadd.f32 %v1361_v24, %v1352_v4  ;;  %v1389_v37 = vadd.f32 %v6373_v17, %v1377_v27  ;;  %v6455_v13 = vmul.f32 %v8451_v26, %v6237_v57 }
 0x1ce   : > { %v1684_v11 = vadd.f32 %v1676_v46, %v1659_v40  ;;  %v1724_v48 = vrot.slane %v1718_v15, 1  ;;  %v1424_v10 = vmul.f32 %v5697_v42, %v6013_v14  ;;  %v1473_v38 = vmul.f32 %v6170_v29, %v6013_v14  ;;  %5000 = vmatpush3.bf16.msra.mxu0 %v4997_v50  ;;  %v8461_v46 = vld [vmem:[#allocation39_spill] sm:$0xff] }
 0x1cf   : > { %v1353_v28 = vadd.f32 %v1349_v2, %v1340_v63  ;;  %v1378_v54 = vadd.f32 %v1374_v62, %v1365_v8  ;;  %v8459_v25 = vrot.slane %v6073_v30, 1  ;;  %v1725_v17 = vrot.slane %v6385_v22, 1  ;;  %5002 = vmatprep.subr.bf16.mxu0 %v5001_v36  ;;  %v8463_v30 = vld [vmem:[#allocation28_spill] sm:$0xff]  ;;  %v8467_v8 = vld [vmem:[#allocation30_spill] sm:$0xff] }
 0x1d0   : > { %v1709_v3 = vadd.f32 %v1701_v0, %v1684_v11  ;;  %v1400_v33 = vmul.f32 %v8458_v6, %v5984_v58  ;;  %v1407_v47 = vrot.slane %v1399_v5, 1  ;;  %v1449_v15 = vmul.f32 %v5995_v43, %v5984_v58  ;;  %v8465_v43 = vld [vmem:[#allocation36_spill] sm:$0xff] }
 0x1d1   : > { %v1414_v19 = vadd.f32 %v8459_v25, %v1389_v37  ;;  %v1366_v59 = vadd.f32 %v8460_v21, %v1353_v28  ;;  %v1390_v40 = vadd.f32 %v8461_v46, %v1378_v54  ;;  %v8462_v39 = vrot.slane %v6253_v49, 1 }
 0x1d2   : > { %v1730_v23 = vadd.f32 %v1724_v48, %v1709_v3  ;;  %v8464_v45 = vrot.slane %v8463_v30, 2  ;;  %v1425_v27 = vmul.f32 %v5697_v42, %v6130_v9  ;;  %v1432_v6 = vrot.slane %v1424_v10, 1  ;;  %v8469_v3 = vld [vmem:[#allocation60_spill] sm:$0xff]  ;;  %5004 = vmatpush3.bf16.msra.mxu0 %v5001_v36  ;;  %v8476_v30 = vld [vmem:[#allocation27_spill] sm:$0xff] }
 0x1d3   : > { %v1439_v24 = vadd.f32 %v8462_v39, %v1414_v19  ;;  %v1474_v50 = vmul.f32 %v6170_v29, %v6130_v9  ;;  %v1481_v5 = vrot.slane %v1473_v38, 1  ;;  %v1379_v11 = vadd.f32 %v8465_v43, %v1366_v59  ;;  %v8471_v19 = vld [vmem:[#allocation67_spill] sm:$0xff]  ;;  %v8473_v39 = vld [vmem:[#allocation64_spill] sm:$0xff] }
 0x1d4   : > { %v1755_v4 = vadd.f32 %v8464_v45, %v1730_v23  ;;  %v1415_v0 = vadd.f32 %v1407_v47, %v1390_v40  ;;  %v8466_v2 = vrot.slane %v6110_v51, 1  ;;  %v1839_v49 = vmul.f32 %v5907_v52, %v5970_v20  ;;  %v8470_v51 = vld [vmem:[#allocation48_spill] sm:$0xff] }
 0x1d5   : > { %v8468_v62 = vrot.slane %v8467_v8, 2  ;;  %v1408_v48 = vrot.slane %v1400_v33, 1  ;;  %v1499_v42 = vmul.f32 %v5823_v32, %v8469_v3  ;;  %v1457_v10 = vrot.slane %v1449_v15, 1  ;;  %v6511_v8 = vld [vmem:[%s8140_s8 + $0x1a] ss:$0 sm:$0xff] }
 0x1d6   : > { %v1464_v63 = vadd.f32 %v8466_v2, %v1439_v24  ;;  %v1391_v29 = vadd.f32 %v8461_v46, %v1379_v11  ;;  %v1440_v38 = vadd.f32 %v1432_v6, %v1415_v0  ;;  %v1848_v54 = vrot.slane %v6097_v41, 2  ;;  %v8475_v46 = vld [vmem:[#allocation49_spill] sm:$0xff] }
 0x1d7   : > { %v1780_v37 = vadd.f32 %v8468_v62, %v1755_v4  ;;  %v1864_v25 = vmul.f32 %v8470_v51, %v6013_v14  ;;  %v8472_v23 = vrot.slane %v8471_v19, 2  ;;  %v1433_v21 = vrot.slane %v1425_v27, 1  ;;  %v8479_v62 = vld [vmem:[#allocation61_spill] sm:$0xff] }
 0x1d8   : > { %v1489_v28 = vadd.f32 %v1481_v5, %v1464_v63  ;;  %v1482_v59 = vrot.slane %v1474_v50, 1  ;;  %v1416_v33 = vadd.f32 %v1408_v48, %v1391_v29  ;;  %v1465_v40 = vadd.f32 %v1457_v10, %v1440_v38  ;;  %v8483_v38 = vld [vmem:[#allocation52_spill] sm:$0xff] }
 0x1d9   : > { %v1805_v47 = vadd.f32 %v8472_v23, %v1780_v37  ;;  %v8474_v32 = vrot.slane %v8473_v39, 1  ;;  %v1847_v15 = vrot.slane %v1839_v49, 2  ;;  %v1889_v24 = vmul.f32 %v8475_v46, %v5984_v58 }
 0x1da   : > { %v1594_v45 = vmul.f32 %v8476_v30, %v6209_v61  ;;  %v8477_v4 = vrot.slane %v6277_v18, 2  ;;  %v1507_v5 = vrot.slane %v1499_v42, 1  ;;  %v1441_v43 = vadd.f32 %v1433_v21, %v1416_v33  ;;  %v8481_v42 = vld [vmem:[#allocation65_spill] sm:$0xff] }
 0x1db   : > { %v1514_v36 = vadd.f32 %v8474_v32, %v1489_v28  ;;  %v1490_v11 = vadd.f32 %v1482_v59, %v1465_v40  ;;  %v8478_v27 = vrot.slane %v6182_v16, 1  ;;  %v1677_v0 = vrot.slane %v6455_v13, 1 }
 0x1dc   : > { %v1830_v6 = vadd.f32 %v8477_v4, %v1805_v47  ;;  %v1872_v2 = vrot.slane %v1864_v25, 2  ;;  %v6506_v63 = vmul.f32 %v8475_v46, %v8469_v3  ;;  %v1595_v18 = vmul.f32 %v8476_v30, %v6227_v56  ;;  %v8490_v4 = vld [vmem:[#allocation44_spill] sm:$0xff] }
 0x1dd   : > { %v1539_v50 = vadd.f32 %v8478_v27, %v1514_v36  ;;  %v8480_v37 = vrot.slane %v8479_v62, 1  ;;  %v1515_v48 = vadd.f32 %v1507_v5, %v1490_v11  ;;  %v8482_v13 = vrot.slane %v8481_v42, 1  ;;  %v8487_v36 = vld [vmem:[#allocation81_spill] sm:$0xff]  ;;  %v8496_v62 = vld [vmem:[#allocation26_spill] sm:$0xff] }
 0x1de   : > { %v1855_v49 = vadd.f32 %v1847_v15, %v1830_v6  ;;  %v1895_v29 = vrot.slane %v1889_v24, 2  ;;  %v6521_v28 = vmul.f32 %v8483_v38, %v6204_v7  ;;  %v1644_v51 = vmul.f32 %v6365_v60, %v6227_v56  ;;  %v8488_v24 = vld [vmem:[#allocation40_spill] sm:$0xff] }
 0x1df   : > { %v1466_v16 = vadd.f32 %v8480_v37, %v1441_v43  ;;  %v1560_v10 = vadd.f32 %v8482_v13, %v1539_v50  ;;  %v1602_v19 = vrot.slane %v1594_v45, 1  ;;  %v8484_v23 = vrot.slane %v6178_v12, 1  ;;  %v8492_v43 = vld [vmem:[#allocation24_spill] sm:$0xff] }
 0x1e0   : > { %v1880_v25 = vadd.f32 %v1872_v2, %v1855_v49  ;;  %v8485_v21 = vrot.slane %v6195_v31, 1  ;;  %v8486_v33 = vrot.slane %v6310_v53, 1  ;;  %v1985_v32 = vmul.f32 %v6511_v8, %v6209_v61  ;;  %v8494_v2 = vld [vmem:[#allocation41_spill] sm:$0xff] }
 0x1e1   : > { %v1491_v47 = vadd.f32 %v8484_v23, %v1466_v16  ;;  %v1571_v7 = vmul.f32 %v5680_v1, %v6237_v57  ;;  %v1620_v15 = vmul.f32 %v8487_v36, %v6237_v57  ;;  %v1603_v46 = vrot.slane %v1595_v18, 1 }
 0x1e2   : > { %v1540_v59 = vadd.f32 %v8485_v21, %v1515_v48  ;;  %v1585_v40 = vadd.f32 %v8486_v33, %v1560_v10  ;;  %v1901_v39 = vadd.f32 %v1895_v29, %v1880_v25  ;;  %v8489_v12 = vrot.slane %v8488_v24, 1  ;;  %v8498_v48 = vld [vmem:[#allocation83_spill] sm:$0xff] }
 0x1e3   : > { %v8491_v31 = vrot.slane %v8490_v4, 1  ;;  %v1652_v53 = vrot.slane %v1644_v51, 1  ;;  %v8493_v11 = vrot.slane %v8492_v43, 2  ;;  %v1596_v50 = vmul.f32 %v8476_v30, %v6425_v34 }
 0x1e4   : > { %v1516_v45 = vadd.f32 %v8489_v12, %v1491_v47  ;;  %v1610_v5 = vadd.f32 %v1602_v19, %v1585_v40  ;;  %v1645_v1 = vmul.f32 %v6365_v60, %v6425_v34  ;;  %v8495_v49 = vrot.slane %v8494_v2, 1  ;;  %v8500_v19 = vld [vmem:[#allocation33_spill] sm:$0xff] }
 0x1e5   : > { %v1561_v6 = vadd.f32 %v8491_v31, %v1540_v59  ;;  %v1926_v27 = vadd.f32 %v8493_v11, %v1901_v39  ;;  %v8497_v37 = vrot.slane %v8496_v62, 1  ;;  %v8499_v42 = vrot.slane %v8498_v48, 1 }
 0x1e6   : > { %v1541_v18 = vadd.f32 %v8495_v49, %v1516_v45  ;;  %v1694_v10 = vmul.f32 %v8457_v55, %v6425_v34  ;;  %v1579_v29 = vrot.slane %v1571_v7, 1  ;;  %v1621_v51 = vmul.f32 %v8487_v36, %v6358_v44 }
 0x1e7   : > { %v1586_v16 = vadd.f32 %v8497_v37, %v1561_v6  ;;  %v1635_v13 = vadd.f32 %v8499_v42, %v1610_v5  ;;  %v1628_v30 = vrot.slane %v1620_v15, 1  ;;  %v1670_v25 = vmul.f32 %v8451_v26, %v6358_v44  ;;  %v8503_v5 = vld [vmem:[#allocation32_spill] sm:$0xff] }
 0x1e8   : > { %v8501_v23 = vrot.slane %v8500_v19, 2  ;;  %v8502_v21 = vmov %v8491_v31  ;;  %v1604_v39 = vrot.slane %v1596_v50, 1  ;;  %v1646_v24 = vmul.f32 %v6365_v60, %v6428_v35 }
 0x1e9   : > { %v1562_v59 = vadd.f32 %v8502_v21, %v1541_v18  ;;  %v1611_v33 = vadd.f32 %v1603_v46, %v1586_v16  ;;  %v1660_v40 = vadd.f32 %v1652_v53, %v1635_v13  ;;  %v1653_v7 = vrot.slane %v1645_v1, 1  ;;  %v8506_v1 = vld [vmem:[#allocation20_spill] sm:$0xff] }
 0x1ea   : > { %v1951_v47 = vadd.f32 %v8501_v23, %v1926_v27  ;;  %v1695_v36 = vmul.f32 %v8457_v55, %v6428_v35  ;;  %v1702_v26 = vrot.slane %v1694_v10, 1  ;;  %v1896_v31 = vrot.slane %v6506_v63, 2  ;;  %v8505_v55 = vld [vmem:[#allocation31_spill] sm:$0xff]  ;;  %v8512_v21 = vld [vmem:[#allocation56_spill] sm:$0xff] }
 0x1eb   : > { %v1587_v15 = vadd.f32 %v1579_v29, %v1562_v59  ;;  %v1636_v12 = vadd.f32 %v1628_v30, %v1611_v33  ;;  %v1685_v45 = vadd.f32 %v1677_v0, %v1660_v40  ;;  %v6570_v4 = vmul.f32 %v8483_v38, %v6237_v57  ;;  %v8513_v40 = vld [vmem:[#allocation45_spill] sm:$0xff]  ;;  %v8536_v63 = vld [vmem:[#allocation75_spill] sm:$0xff] }
 0x1ec   : > { %v1629_v46 = vrot.slane %v1621_v51, 1  ;;  %v1678_v6 = vrot.slane %v1670_v25, 1  ;;  %v8504_v53 = vrot.slane %v8503_v5, 2  ;;  %v6576_v50 = vmul.f32 %v8505_v55, %v6209_v61  ;;  %v8507_v61 = vld [vmem:[#allocation22_spill] sm:$0xff] }
 0x1ed   : > { %v1612_v60 = vadd.f32 %v1604_v39, %v1587_v15  ;;  %v1661_v11 = vadd.f32 %v1653_v7, %v1636_v12  ;;  %v1710_v27 = vadd.f32 %v1702_v26, %v1685_v45  ;;  %v1993_v0 = vrot.slane %v1985_v32, 2  ;;  %v8508_v32 = vld [vmem:[#allocation73_spill] sm:$0xff]  ;;  %v8509_v25 = vld [vmem:[#allocation66_spill] sm:$0xff]  ;;  %v8515_v7 = vld [vmem:[#allocation47_spill] sm:$0xff] }
 0x1ee   : > { %v1976_v43 = vadd.f32 %v8504_v53, %v1951_v47  ;;  %v1741_v2 = vmul.f32 %v8506_v1, %v5970_v20  ;;  %v1654_v49 = vrot.slane %v1646_v24, 1  ;;  %v1703_v37 = vrot.slane %v1695_v36, 1  ;;  %v8517_v12 = vld [vmem:[#allocation77_spill] sm:$0xff] }
 0x1ef   : > { %v1637_v18 = vadd.f32 %v1629_v46, %v1612_v60  ;;  %v1686_v62 = vadd.f32 %v1678_v6, %v1661_v11  ;;  %v1731_v16 = vadd.f32 %v1725_v17, %v1710_v27  ;;  %v2018_v48 = vrot.slane %v6521_v28, 2  ;;  %v8511_v28 = vld [vmem:[#allocation62_spill] sm:$0xff] }
 0x1f0   : > { %v6585_v42 = vmul.f32 %v8505_v55, %v6227_v56  ;;  %v1766_v13 = vmul.f32 %v8507_v61, %v6013_v14  ;;  %v1815_v10 = vmul.f32 %v8508_v32, %v6013_v14  ;;  %v2001_v29 = vadd.f32 %v1993_v0, %v1976_v43  ;;  %v8519_v60 = vld [vmem:[#allocation46_spill] sm:$0xff]  ;;  %v8521_v0 = vld [vmem:[#allocation69_spill] sm:$0xff] }
 0x1f1   : > { %v1662_v51 = vadd.f32 %v1654_v49, %v1637_v18  ;;  %v1711_v30 = vadd.f32 %v1703_v37, %v1686_v62  ;;  %v8510_v19 = vrot.slane %v8509_v25, 2  ;;  %v1944_v22 = vrot.slane %v6576_v50, 2 }
 0x1f2   : > { %v1742_v17 = vmul.f32 %v8506_v1, %v5984_v58  ;;  %v1791_v47 = vmul.f32 %v8511_v28, %v5984_v58  ;;  %v2035_v59 = vmul.f32 %v8512_v21, %v6227_v56  ;;  %v1749_v33 = vrot.slane %v1741_v2, 2 }
 0x1f3   : > { %v1756_v23 = vadd.f32 %v8510_v19, %v1731_v16  ;;  %v8514_v39 = vrot.slane %v8513_v40, 1  ;;  %v8516_v36 = vrot.slane %v8515_v7, 1  ;;  %v8518_v45 = vrot.slane %v8517_v12, 2  ;;  %v8526_v19 = vld [vmem:[#allocation18_spill] sm:$0xff]  ;;  %v8529_v12 = vld [vmem:[#allocation72_spill] sm:$0xff] }
 0x1f4   : > { %v6608_v46 = vmul.f32 %v6511_v8, %v6227_v56  ;;  %v1774_v6 = vrot.slane %v1766_v13, 2  ;;  %v1816_v5 = vmul.f32 %v8508_v32, %v6130_v9  ;;  %v1823_v53 = vrot.slane %v1815_v10, 2  ;;  %v8525_v10 = vld [vmem:[#allocation78_spill] sm:$0xff] }
 0x1f5   : > { %v1687_v24 = vadd.f32 %v8514_v39, %v1662_v51  ;;  %v1732_v15 = vadd.f32 %v8516_v36, %v1711_v30  ;;  %v1781_v26 = vadd.f32 %v8518_v45, %v1756_v23  ;;  %v2026_v43 = vadd.f32 %v2018_v48, %v2001_v29  ;;  %v8524_v48 = vld [vmem:[#allocation58_spill] sm:$0xff] }
 0x1f6   : > { %v8520_v11 = vrot.slane %v8519_v60, 1  ;;  %v8522_v1 = vrot.slane %v8521_v0, 2  ;;  %v1750_v49 = vrot.slane %v1742_v17, 2  ;;  %v1799_v18 = vrot.slane %v1791_v47, 2  ;;  %v5078_v30 = vld [vmem:[%s8140_s8 + $0x5] ss:$0 sm:$0xff] }
 0x1f7   : > { %v1757_v55 = vadd.f32 %v1749_v33, %v1732_v15  ;;  %v1841_v62 = vmul.f32 %v5907_v52, %v8469_v3  ;;  %v2043_v56 = vrot.slane %v2035_v59, 2  ;;  %v8523_v37 = vmov %v8516_v36  ;;  %v8527_v52 = vld [vmem:[#allocation68_spill] sm:$0xff]  ;;  %v8528_v39 = vld [vmem:[#allocation82_spill] sm:$0xff] }
 0x1f8   : > { %v1712_v27 = vadd.f32 %v8520_v11, %v1687_v24  ;;  %v1806_v2 = vadd.f32 %v8522_v1, %v1781_v26  ;;  %v2060_v32 = vmul.f32 %v8524_v48, %v6237_v57  ;;  %v1775_v29 = vrot.slane %v8525_v10, 2 }
 0x1f9   : > { %v1782_v61 = vadd.f32 %v1774_v6, %v1757_v55  ;;  %v1824_v51 = vrot.slane %v1816_v5, 2  ;;  %v1913_v25 = vmul.f32 %v5078_v30, %v6237_v57  ;;  %v2081_v23 = vmul.f32 %v8527_v52, %v8526_v19 }
 0x1fa   : > { %v1733_v16 = vadd.f32 %v8523_v37, %v1712_v27  ;;  %v1831_v13 = vadd.f32 %v1823_v53, %v1806_v2  ;;  %v2051_v59 = vadd.f32 %v2043_v56, %v2026_v43  ;;  %v1945_v33 = vrot.slane %v6585_v42, 2  ;;  %v8531_v42 = vld [vmem:[#allocation76_spill] sm:$0xff]  ;;  %v8532_v43 = vld [vmem:[#allocation63_spill] sm:$0xff] }
 0x1fb   : > { %v1807_v28 = vadd.f32 %v1799_v18, %v1782_v61  ;;  %v1849_v40 = vrot.slane %v1841_v62, 2  ;;  %v1962_v24 = vmul.f32 %v8528_v39, %v6237_v57  ;;  %v6636_v7 = vmul.f32 %v8528_v39, %v6358_v44  ;;  %v8534_v18 = vld [vmem:[#allocation74_spill] sm:$0xff] }
 0x1fc   : > { %v1758_v17 = vadd.f32 %v1750_v49, %v1733_v16  ;;  %v1856_v47 = vadd.f32 %v1848_v54, %v1831_v13  ;;  %v8530_v45 = vrot.slane %v8529_v12, 2  ;;  %v2066_v6 = vrot.slane %v2060_v32, 2  ;;  %v8538_v16 = vld [vmem:[#allocation25_spill] sm:$0xff]  ;;  %v8540_v32 = vld [vmem:[#allocation79_spill] sm:$0xff] }
 0x1fd   : > { %v1832_v15 = vadd.f32 %v1824_v51, %v1807_v28  ;;  %v1994_v41 = vrot.slane %v6608_v46, 2  ;;  %v1921_v54 = vrot.slane %v1913_v25, 2  ;;  %v2089_v5 = vrot.slane %v2081_v23, 3  ;;  %v8541_v25 = vld [vmem:[#allocation50_spill] sm:$0xff]  ;;  %v8545_v12 = vld [vmem:[#allocation51_spill] sm:$0xff] }
 0x1fe   : > { %v1783_v36 = vadd.f32 %v1775_v29, %v1758_v17  ;;  %v1881_v26 = vadd.f32 %v8530_v45, %v1856_v47  ;;  %v2106_v53 = vmul.f32 %v8531_v42, %v8526_v19  ;;  %v8533_v60 = vrot.slane %v8532_v43, 2  ;;  %v5079_v29 = vld [vmem:[%s8140_s8 + $0xc] ss:$0 sm:$0xff]  ;;  %v8543_v17 = vld [vmem:[#allocation54_spill] sm:$0xff]  ;;  %v8551_v43 = vld [vmem:[#allocation37_spill] sm:$0xff] }
 0x1ff   : > { %v1857_v11 = vadd.f32 %v1849_v40, %v1832_v15  ;;  %v2072_v55 = vadd.f32 %v2066_v6, %v2051_v59  ;;  %v1970_v0 = vrot.slane %v1962_v24, 2  ;;  %v1971_v1 = vrot.slane %v6636_v7, 2  ;;  %v4733_v15 = vld [vmem:[%s8140_s8 + $0x14] ss:$0 sm:$0xff]  ;;  %v8547_v6 = vld [vmem:[#allocation21_spill] sm:$0xff] }
 0x200   : > { %v1808_v57 = vadd.f32 %v8533_v60, %v1783_v36  ;;  %v1902_v27 = vadd.f32 %v1896_v31, %v1881_v26  ;;  %v2012_v2 = vmul.f32 %v8483_v38, %v6358_v44  ;;  %v6652_v46 = vmul.f32 %v8527_v52, %v5970_v20 }
 0x201   : > { %v6656_v49 = vmul.f32 %v8527_v52, %v5984_v58  ;;  %v8535_v62 = vrot.slane %v8534_v18, 2  ;;  %v8537_v31 = vrot.slane %v8536_v63, 2  ;;  %v8539_v61 = vrot.slane %v8538_v16, 2  ;;  %v4734_v63 = vld [vmem:[%s8140_s8 + $0x1b] ss:$0 sm:$0xff] }
 0x202   : > { %v6666_v38 = vmul.f32 %v8531_v42, %v6013_v14  ;;  %v2117_v10 = vrot.slane %v8540_v32, 3  ;;  %v1938_v51 = vmul.f32 %v5079_v29, %v6425_v34  ;;  %v2114_v30 = vrot.slane %v2106_v53, 3  ;;  %v8553_v16 = vld [vmem:[#allocation53_spill] sm:$0xff] }
 0x203   : > { %v1833_v56 = vadd.f32 %v8535_v62, %v1808_v57  ;;  %v1882_v37 = vadd.f32 %v8537_v31, %v1857_v11  ;;  %v1927_v13 = vadd.f32 %v8539_v61, %v1902_v27  ;;  %v8542_v52 = vrot.slane %v8541_v25, 2 }
 0x204   : > { %v8544_v28 = vrot.slane %v8543_v17, 2  ;;  %v2097_v40 = vadd.f32 %v2089_v5, %v2072_v55  ;;  %v2020_v39 = vrot.slane %v2012_v2, 2  ;;  %v2091_v24 = vrot.slane %v6652_v46, 3  ;;  %v8549_v5 = vld [vmem:[#allocation84_spill] sm:$0xff] }
 0x205   : > { %v1858_v23 = vadd.f32 %v8542_v52, %v1833_v56  ;;  %v1952_v59 = vadd.f32 %v1944_v22, %v1927_v13  ;;  %v1987_v7 = vmul.f32 %v6511_v8, %v6425_v34  ;;  %v2036_v36 = vmul.f32 %v8512_v21, %v6425_v34 }
 0x206   : > { %v1903_v47 = vadd.f32 %v8544_v28, %v1882_v37  ;;  %v8546_v45 = vrot.slane %v8545_v12, 2  ;;  %v8548_v50 = vrot.slane %v8547_v6, 2  ;;  %v8550_v42 = vrot.slane %v8549_v5, 2 }
 0x207   : > { %v2131_v60 = vmul.f32 %v4733_v15, %v8551_v43  ;;  %v1946_v57 = vrot.slane %v1938_v51, 2  ;;  %v1988_v11 = vmul.f32 %v6511_v8, %v6428_v35  ;;  %v2019_v34 = vrot.slane %v6570_v4, 2 }
 0x208   : > { %v1883_v26 = vadd.f32 %v8546_v45, %v1858_v23  ;;  %v1928_v22 = vadd.f32 %v8548_v50, %v1903_v47  ;;  %v1977_v53 = vadd.f32 %v8550_v42, %v1952_v59  ;;  %v2061_v27 = vmul.f32 %v8524_v48, %v6358_v44 }
 0x209   : > { %v8552_v55 = vmov %v8544_v28  ;;  %v2122_v56 = vadd.f32 %v2114_v30, %v2097_v40  ;;  %v1995_v31 = vrot.slane %v1987_v7, 2  ;;  %v2037_v37 = vmul.f32 %v8512_v21, %v6428_v35  ;;  %v8554_v7 = vld [vmem:[#allocation80_spill] sm:$0xff] }
 0x20a   : > { %v1904_v2 = vadd.f32 %v8552_v55, %v1883_v26  ;;  %v1953_v18 = vadd.f32 %v1945_v33, %v1928_v22  ;;  %v2002_v62 = vadd.f32 %v1994_v41, %v1977_v53  ;;  %v2044_v8 = vrot.slane %v2036_v36, 2  ;;  %v8557_v53 = vld [vmem:[#allocation55_spill] sm:$0xff] }
 0x20b   : > { %v2156_v4 = vmul.f32 %v4734_v63, %v8553_v16  ;;  %v2139_v48 = vrot.slane %v2131_v60, 3  ;;  %v2092_v29 = vrot.slane %v6656_v49, 3  ;;  %v1996_v33 = vrot.slane %v1988_v11, 2 }
 0x20c   : > { %v1929_v61 = vadd.f32 %v1921_v54, %v1904_v2  ;;  %v1978_v13 = vadd.f32 %v1970_v0, %v1953_v18  ;;  %v2027_v44 = vadd.f32 %v2019_v34, %v2002_v62  ;;  %v2067_v41 = vrot.slane %v2061_v27, 2  ;;  %v4735_v54 = vld [vmem:[%s8140_s8 + $0x22] ss:$0 sm:$0xff]  ;;  %v4737_v2 = vld [vmem:[%s8140_s8 + $0x30] ss:$0 sm:$0xff]  ;;  %v8561_v62 = vld [vmem:[#allocation71_spill] sm:$0xff] }
 0x20d   : > { %v2132_v51 = vmul.f32 %v4733_v15, %v5970_v20  ;;  %v2147_v23 = vadd.f32 %v2139_v48, %v2122_v56  ;;  %v2045_v17 = vrot.slane %v2037_v37, 2  ;;  %v2133_v35 = vmul.f32 %v4733_v15, %v5984_v58 }
 0x20e   : > { %v1954_v30 = vadd.f32 %v1946_v57, %v1929_v61  ;;  %v2003_v25 = vadd.f32 %v1995_v31, %v1978_v13  ;;  %v2052_v52 = vadd.f32 %v2044_v8, %v2027_v44  ;;  %v2134_v21 = vmul.f32 %v4733_v15, %v8469_v3  ;;  %v8555_v15 = vld [vmem:[#allocation70_spill] sm:$0xff]  ;;  %v8559_v57 = vld [vmem:[#allocation59_spill] sm:$0xff] }
 0x20f   : > { %v2164_v28 = vrot.slane %v2156_v4, 3  ;;  %v2181_v59 = vmul.f32 %v4735_v54, %v5970_v20  ;;  %v2116_v40 = vrot.slane %v6666_v38, 3  ;;  %v2115_v36 = vrot.slane %v8554_v7, 3 }
 0x210   : > { %v1979_v0 = vadd.f32 %v1971_v1, %v1954_v30  ;;  %v2028_v49 = vadd.f32 %v2020_v39, %v2003_v25  ;;  %v2073_v47 = vadd.f32 %v2067_v41, %v2052_v52  ;;  %v2140_v12 = vrot.slane %v2132_v51, 3  ;;  %v4736_v1 = vld [vmem:[%s8140_s8 + $0x29] ss:$0 sm:$0xff] }
 0x211   : > { %v2157_v45 = vmul.f32 %v4734_v63, %v6013_v14  ;;  %v8556_v50 = vrot.slane %v8555_v15, 3  ;;  %v2172_v5 = vadd.f32 %v2164_v28, %v2147_v23  ;;  %v2141_v39 = vrot.slane %v2133_v35, 3 }
 0x212   : > { %v2004_v26 = vadd.f32 %v1996_v33, %v1979_v0  ;;  %v2053_v6 = vadd.f32 %v2045_v17, %v2028_v49  ;;  %v2142_v42 = vrot.slane %v2134_v21, 3  ;;  %v2182_v20 = vmul.f32 %v4735_v54, %v5984_v58 }
 0x213   : > { %v2098_v22 = vadd.f32 %v8556_v50, %v2073_v47  ;;  %v2206_v38 = vmul.f32 %v4736_v1, %v6013_v14  ;;  %v8558_v43 = vrot.slane %v8557_v53, 2  ;;  %v8560_v11 = vrot.slane %v8559_v57, 2  ;;  %v8562_v14 = vld [vmem:[#allocation57_spill] sm:$0xff]  ;;  %v3457_v53 = vld [vmem:[%s8144_s12 + $0x8] sm:$0xff] }
 0x214   : > { %v2189_v55 = vrot.slane %v2181_v59, 3  ;;  %v2158_v18 = vmul.f32 %v4734_v63, %v6130_v9  ;;  %v2159_v56 = vmul.f32 %v4734_v63, %v8561_v62  ;;  %v2165_v31 = vrot.slane %v2157_v45, 3  ;;  %v3459_v57 = vld [vmem:[%s8144_s12 + $0x18] sm:$0xff] }
 0x215   : > { %v2029_v60 = vadd.f32 %v8558_v43, %v2004_v26  ;;  %v2074_v34 = vadd.f32 %v8560_v11, %v2053_v6  ;;  %v2123_v27 = vadd.f32 %v2115_v36, %v2098_v22  ;;  %v2207_v37 = vmul.f32 %v4736_v1, %v6130_v9  ;;  %v3458_v43 = vld [vmem:[%s8144_s12 + $0x10] sm:$0xff] }
 0x216   : > { %v8563_v8 = vrot.slane %v8562_v14, 2  ;;  %v2197_v13 = vadd.f32 %v2189_v55, %v2172_v5  ;;  %v2183_v44 = vmul.f32 %v4735_v54, %v8469_v3  ;;  %v2190_v48 = vrot.slane %v2182_v20, 3 }
 0x217   : > { %v2099_v4 = vadd.f32 %v2091_v24, %v2074_v34  ;;  %v2148_v61 = vadd.f32 %v2140_v12, %v2123_v27  ;;  %v2214_v33 = vrot.slane %v2206_v38, 3  ;;  %v2231_v41 = vmul.f32 %v4737_v2, %v5984_v58  ;;  %v3460_v34 = vld [vmem:[%s8144_s12 + $0x20] sm:$0xff]  ;;  %v3461_v27 = vld [vmem:[%s8144_s12 + $0x28] sm:$0xff] }
 0x218   : > { %v2054_v16 = vadd.f32 %v8563_v8, %v2029_v60  ;;  %v8564_v51 = vmov %v8560_v11  ;;  %v2232_v9 = vmul.f32 %v4737_v2, %v8469_v3  ;;  %v2166_v52 = vrot.slane %v2158_v18, 3  ;;  %v3463_v18 = vld [vmem:[%s8144_s12 + $0x38] sm:$0xff]  ;;  %v6784_v8 = vld [vmem:[%s8143_s11] ss:$0 sm:$0xff] }
 0x219   : > { %v2124_v30 = vadd.f32 %v2116_v40, %v2099_v4  ;;  %v2173_v25 = vadd.f32 %v2165_v31, %v2148_v61  ;;  %v2184_v23 = vmul.f32 %v4735_v54, %v8526_v19  ;;  %v2208_v46 = vmul.f32 %v4736_v1, %v8561_v62  ;;  %v6794_v4 = vld [vmem:[%s8143_s11 + $0xe] ss:$0 sm:$0xff]  ;;  %v6799_v61 = vld [vmem:[%s8143_s11 + $0x1] ss:$0 sm:$0xff] }
 0x21a   : > { %v2075_v63 = vadd.f32 %v8564_v51, %v2054_v16  ;;  %v2215_v24 = vrot.slane %v2207_v37, 3  ;;  %v2222_v28 = vadd.f32 %v2214_v33, %v2197_v13  ;;  %v2191_v0 = vrot.slane %v2183_v44, 3  ;;  %v6789_v16 = vld [vmem:[%s8143_s11 + $0x7] ss:$0 sm:$0xff]  ;;  %v6804_v13 = vld [vmem:[%s8143_s11 + $0x8] ss:$0 sm:$0xff] }
 0x21b   : > { %v2149_v35 = vadd.f32 %v2141_v39, %v2124_v30  ;;  %v2198_v21 = vadd.f32 %v2190_v48, %v2173_v25  ;;  %v2209_v58 = vmul.f32 %v4736_v1, %v8526_v19  ;;  %v2233_v49 = vmul.f32 %v4737_v2, %v8526_v19  ;;  %v3462_v2 = vld [vmem:[%s8144_s12 + $0x30] sm:$0xff]  ;;  %v6822_v51 = vld [vmem:[%s8143_s11 + $0x1d] ss:$0 sm:$0xff] }
 0x21c   : > { %v2100_v17 = vadd.f32 %v2092_v29, %v2075_v63  ;;  %v2237_v47 = vrot.slane %v2231_v41, 3  ;;  %v2238_v7 = vrot.slane %v2232_v9, 3  ;;  %v2167_v54 = vrot.slane %v2159_v56, 3  ;;  %v6817_v41 = vld [vmem:[%s8143_s11 + $0xf] ss:$0 sm:$0xff] }
 0x21d   : > { %v2174_v3 = vadd.f32 %v2166_v52, %v2149_v35  ;;  %v2223_v40 = vadd.f32 %v2215_v24, %v2198_v21  ;;  %v2192_v36 = vrot.slane %v2184_v23, 3  ;;  %v2216_v12 = vrot.slane %v2208_v46, 3  ;;  %v6827_v63 = vld [vmem:[%s8143_s11 + $0x24] ss:$0 sm:$0xff]  ;;  %v6842_v52 = vld [vmem:[%s8143_s11 + $0x2b] ss:$0 sm:$0xff] }
 0x21e   : > { %v2125_v59 = vadd.f32 %v2117_v10, %v2100_v17  ;;  %v2243_v26 = vadd.f32 %v2237_v47, %v2222_v28  ;;  %v2217_v15 = vrot.slane %v2209_v58, 3  ;;  %v2239_v5 = vrot.slane %v2233_v49, 3  ;;  %v6847_v23 = vld [vmem:[%s8143_s11 + $0x2] ss:$0 sm:$0xff]  ;;  %v6852_v46 = vld [vmem:[%s8143_s11 + $0x9] ss:$0 sm:$0xff] }
 0x21f   : > { %v2199_v29 = vadd.f32 %v2191_v0, %v2174_v3  ;;  %v2244_v6 = vadd.f32 %v2238_v7, %v2223_v40  ;;  %v5009_v11 = vpack.c.bf16 %v3459_v57, %v3458_v43  ;;  %v5013_v55 = vpack.c.bf16 %v3461_v27, %v3460_v34  ;;  %v6869_v28 = vld [vmem:[%s8143_s11 + $0x10] ss:$0 sm:$0xff]  ;;  %v6874_v0 = vld [vmem:[%s8143_s11 + $0x1e] ss:$0 sm:$0xff]  ;;  %v6879_v58 = vld [vmem:[%s8143_s11 + $0x25] ss:$0 sm:$0xff] }
 0x220   : > { %v2150_v45 = vadd.f32 %v2142_v42, %v2125_v59  ;;  %v3456_v42 = vld [vmem:[%s8144_s12] sm:$0xff]  ;;  %v5017_v62 = vpack.c.bf16 %v3463_v18, %v3462_v2  ;;  %v8565_v56 = vmov 0.0   ;;  %v6900_v40 = vld [vmem:[%s8143_s11 + $0x2c] ss:$0 sm:$0xff]  ;;  %v6967_v34 = vld [vmem:[%s8143_s11 + $0x2d] ss:$0 sm:$0xff] }
 0x221   : > { %v2224_v22 = vadd.f32 %v2216_v12, %v2199_v29  ;;  %v2259_v1 = vcombine.low %v2243_v26, %v2244_v6  ;;  %v5005_v60 = vpack.c.bf16 %v3457_v53, %v3456_v42  ;;  %v2361_v31 = vrot.slane %v8565_v56, 5  ;;  %v6905_v7 = vld [vmem:[%s8143_s11 + $0x3] ss:$0 sm:$0xff]  ;;  %v6919_v29 = vld [vmem:[%s8143_s11 + $0xa] ss:$0 sm:$0xff]  ;;  %8576 = vst [vmem:[#allocation36_spill] sm:$0xff] %v6967_v34 }
 0x222   : > { %v2175_v50 = vadd.f32 %v2167_v54, %v2150_v45  ;;  %v6924_v26 = vld [vmem:[%s8143_s11 + $0x11] ss:$0 sm:$0xff]  ;;  %v6949_v53 = vld [vmem:[%s8143_s11 + $0x1f] ss:$0 sm:$0xff]  ;;  %v6972_v27 = vld [vmem:[%s8143_s11 + $0x1c] ss:$0 sm:$0xff] }
 0x223   : > { %4937 = vmatprep.mubr.msk.f32.mxu0 %vm2261_vm6, %v2259_v1  ;;  %v2245_v10 = vadd.f32 %v2239_v5, %v2224_v22  ;;  %5006 = vmatprep.subr.bf16.mxu1 %v5005_v60  ;;  %v2372_v37 = vsel %vm2371_vm7, 0.0, %v2361_v31  ;;  %8568 = vst [vmem:[#allocation38_spill] sm:$0xff] %v6924_v26  ;;  %8571 = vst [vmem:[#allocation43_spill] sm:$0xff] %v6949_v53  ;;  %v7022_v18 = vld [vmem:[%s8143_s11 + $0x20] ss:$0 sm:$0xff] }
 0x224   : > { %v2200_v39 = vadd.f32 %v2192_v36, %v2175_v50  ;;  %5008 = vmatpush3.bf16.msra.mxu1 %v5005_v60  ;;  %v6779_v14 = vsel %vm2377_vm8, %v2372_v37, 0.0  ;;  %8582 = vst [vmem:[#allocation49_spill] sm:$0xff] %v7022_v18  ;;  %v7027_v2 = vld [vmem:[%s8143_s11 + $0x5] ss:$0 sm:$0xff]  ;;  %v7032_v42 = vld [vmem:[%s8143_s11 + $0xc] ss:$0 sm:$0xff] }
 0x225   : > { %5010 = vmatprep.subr.bf16.mxu1 %v5009_v11  ;;  %v6808_v44 = vmul.f32 %v6784_v8, %v6779_v14  ;;  %v2395_v48 = vmul.f32 %v6789_v16, %v6779_v14  ;;  %v2468_v33 = vmul.f32 %v6799_v61, %v6779_v14  ;;  %v2406_v30 = vmul.f32 %v6794_v4, %v6779_v14  ;;  %v7046_v1 = vld [vmem:[%s8143_s11 + $0x27] ss:$0 sm:$0xff] }
 0x226   : > { %v2225_v32 = vadd.f32 %v2217_v15, %v2200_v39  ;;  %v6833_v25 = vmul.f32 %v6804_v13, %v6779_v14  ;;  %v6837_v9 = vmul.f32 %v6817_v41, %v6779_v14  ;;  %v6856_v24 = vmul.f32 %v6822_v51, %v6779_v14  ;;  %8583 = vst [vmem:[#allocation27_spill] sm:$0xff] %v7027_v2 }
 0x227   : > { %v6860_v17 = vmul.f32 %v6827_v63, %v6779_v14  ;;  %v2603_v35 = vmul.f32 %v6842_v52, %v6779_v14  ;;  %v2619_v21 = vmul.f32 %v6847_v23, %v6779_v14  ;;  %v6883_v49 = vmul.f32 %v6852_v46, %v6779_v14  ;;  %8584 = vst [vmem:[#allocation61_spill] sm:$0xff] %v7032_v42 }
 0x228   : > { %v2246_v20 = vadd.f32 %v2239_v5, %v2225_v32  ;;  %5012 = vmatpush3.bf16.msra.mxu1 %v5009_v11  ;;  %v6887_v47 = vmul.f32 %v6869_v28, %v6779_v14  ;;  %v6891_v59 = vmul.f32 %v6874_v0, %v6779_v14  ;;  %v6895_v3 = vmul.f32 %v6879_v58, %v6779_v14  ;;  %v6962_v11 = vld [vmem:[%s8143_s11 + $0x26] ss:$0 sm:$0xff] }
 0x229   : > { %5014 = vmatprep.subr.bf16.mxu1 %v5013_v55  ;;  %v6908_v54 = vadd.f32 %v2395_v48, %v6808_v44  ;;  %v6910_v36 = vrot.slane %v2468_v33, 1  ;;  %v2754_v12 = vmul.f32 %v6900_v40, %v6779_v14  ;;  %v2770_v45 = vmul.f32 %v6905_v7, %v6779_v14  ;;  %8575 = vst [vmem:[#allocation28_spill] sm:$0xff] %v6962_v11  ;;  %v6993_v48 = vld [vmem:[%s8143_s11 + $0x4] ss:$0 sm:$0xff]  ;;  %v6998_v33 = vld [vmem:[%s8143_s11 + $0xb] ss:$0 sm:$0xff] }
 0x22a   : > { %v2260_v38 = vcombine.low %v2245_v10, %v2246_v20  ;;  %8566 = vst [vmem:[#allocation34_spill] sm:$0xff] %v6891_v59  ;;  %8567 = vst [vmem:[#allocation42_spill] sm:$0xff] %v6895_v3  ;;  %v6930_v50 = vmul.f32 %v6919_v29, %v6779_v14  ;;  %v6934_v22 = vmul.f32 %v6924_v26, %v6779_v14  ;;  %v6938_v39 = vrot.slane %v2603_v35, 1  ;;  %v7003_v35 = vld [vmem:[%s8143_s11 + $0x12] ss:$0 sm:$0xff] }
 0x22b   : > { %v6940_v32 = vrot.slane %v2619_v21, 2  ;;  %v6951_v43 = vrot.slane %v2754_v12, 2  ;;  %v6953_v60 = vrot.slane %v2770_v45, 3  ;;  %v6957_v57 = vmul.f32 %v6949_v53, %v6779_v14  ;;  %8578 = vst [vmem:[#allocation60_spill] sm:$0xff] %v6993_v48  ;;  %8579 = vst [vmem:[#allocation48_spill] sm:$0xff] %v6998_v33 }
 0x22c   : > { %4938 = vmatmul.mubr.msk.f32.vlgmr.msra.gmra.mrb[8].mxu0 %vm2261_vm6, %v2260_v38  ;;  %5016 = vmatpush3.bf16.msra.mxu1 %v5013_v55  ;;  %8569 = vst [vmem:[#allocation23_spill] sm:$0xff] %v6930_v50  ;;  %8570 = vst [vmem:[#allocation29_spill] sm:$0xff] %v6934_v22  ;;  %v6977_v55 = vld [vmem:[%s8143_s11 + $0x23] ss:$0 sm:$0xff]  ;;  %v2905_v31 = vmul.f32 %v6967_v34, %v6779_v14  ;;  %v6988_v37 = vadd.f32 %v2406_v30, %v6908_v54  ;;  %v7053_v38 = vld [vmem:[%s8143_s11 + $0x2a] ss:$0 sm:$0xff] }
 0x22d   : > { %5018 = vmatprep.subr.bf16.mxu1 %v5017_v62  ;;  %8572 = vst [vmem:[#allocation19_spill] sm:$0xff] %v6951_v43  ;;  %8573 = vst [vmem:[#allocation35_spill] sm:$0xff] %v6953_v60  ;;  %v7007_v21 = vmul.f32 %v6972_v27, %v6779_v14  ;;  %v7011_v30 = vmul.f32 %v6977_v55, %v6779_v14  ;;  %v2921_v12 = vmul.f32 %v6993_v48, %v6779_v14 }
 0x22e   : > { %8574 = vst [vmem:[#allocation39_spill] sm:$0xff] %v6957_v57  ;;  %8580 = vst [vmem:[#allocation67_spill] sm:$0xff] %v7003_v35  ;;  %v7017_v45 = vmul.f32 %v6998_v33, %v6779_v14  ;;  %v7037_v20 = vmul.f32 %v7003_v35, %v6779_v14  ;;  %v7041_v10 = vmul.f32 %v7022_v18, %v6779_v14  ;;  %v7056_v6 = vrot.slane %v2905_v31, 3  ;;  %v7067_v18 = vld [vmem:[%s8143_s11 + $0x13] ss:$0 sm:$0xff] }
 0x22f   : > { %8587 = vst [vmem:[#allocation81_spill] sm:$0xff] %v7046_v1  ;;  %v3072_v5 = vmul.f32 %v7027_v2, %v6779_v14  ;;  %v7060_v19 = vmul.f32 %v7046_v1, %v6779_v14  ;;  %v3094_v56 = vmul.f32 %v7032_v42, %v6779_v14  ;;  %8590 = vst [vmem:[#allocation24_spill] sm:$0xff] %v7067_v18  ;;  %v7076_v31 = vld [vmem:[%s8143_s11 + $0x2e] ss:$0 sm:$0xff]  ;;  %v7079_v15 = vmul.f32 0.0, %v7027_v2 }
 0x230   : > { %5020 = vmatpush3.bf16.msra.mxu1 %v5017_v62  ;;  %v6983_v62 = vmul.f32 %v6962_v11, %v6779_v14  ;;  %8581 = vst [vmem:[#allocation64_spill] sm:$0xff] %v7017_v45  ;;  %8585 = vst [vmem:[#allocation65_spill] sm:$0xff] %v7037_v20  ;;  %v7071_v35 = vmul.f32 %v7053_v38, %v6779_v14  ;;  %v3095_v1 = vmul.f32 0.0, %v7032_v42  ;;  %v7089_v33 = vrot.slane %v2921_v12, 4  ;;  %v7097_v2 = vld [vmem:[%s8143_s11 + $0x1a] ss:$0 sm:$0xff] }
 0x231   : > { %8586 = vst [vmem:[#allocation52_spill] sm:$0xff] %v7041_v10  ;;  %8588 = vst [vmem:[#allocation40_spill] sm:$0xff] %v7056_v6  ;;  %v3121_v6 = vmul.f32 %v7067_v18, %v6779_v14  ;;  %v3056_v48 = vmul.f32 %v7076_v31, %v6779_v14  ;;  %v3078_v53 = vrot.slane %v3072_v5, 5  ;;  %v3122_v12 = vmul.f32 0.0, %v7067_v18  ;;  %v7107_v57 = vld [vmem:[%s8143_s11 + $0x28] ss:$0 sm:$0xff] }
 0x232   : > { %8577 = vst [vmem:[#allocation30_spill] sm:$0xff] %v6983_v62  ;;  %8589 = vst [vmem:[#allocation44_spill] sm:$0xff] %v7060_v19  ;;  %v7087_v62 = vld [vmem:[%s8143_s11 + $0x21] ss:$0 sm:$0xff]  ;;  %v3102_v45 = vrot.slane %v3094_v56, 5  ;;  %v3220_v22 = vmul.f32 %v7107_v57, %v6779_v14  ;;  %v8305_v5 = vrot.slane %v7079_v15, 5 }
 0x233   : > { %8591 = vst [vmem:[#allocation41_spill] sm:$0xff] %v7076_v31  ;;  %8592 = vst [vmem:[#allocation26_spill] sm:$0xff] %v7079_v15  ;;  %v3189_v42 = vmul.f32 %v7087_v62, %v6779_v14  ;;  %v7116_v11 = vld [vmem:[%s8143_s11 + $0x2f] ss:$0 sm:$0xff]  ;;  %v7119_v34 = vrot.slane %v3095_v1, 5  ;;  %v3131_v18 = vrot.slane %v3121_v6, 5 }
 0x234   : > { %8593 = vst [vmem:[#allocation83_spill] sm:$0xff] %v7087_v62  ;;  %8594 = vst [vmem:[#allocation33_spill] sm:$0xff] %v7089_v33  ;;  %v3186_v33 = vmul.f32 0.0, %v7087_v62  ;;  %v3154_v10 = vmul.f32 0.0, %v7097_v2  ;;  %v7125_v56 = vld [vmem:[%s8143_s11 + $0x6] ss:$0 sm:$0xff]  ;;  %v3246_v20 = vmul.f32 %v7116_v11, %v6779_v14  ;;  %v7140_v6 = vsel %vm2371_vm7, %v3078_v53, %v8305_v5 }
 0x235   : > { %8595 = vst [vmem:[#allocation32_spill] sm:$0xff] %v7097_v2  ;;  %8596 = vst [vmem:[#allocation31_spill] sm:$0xff] %v7107_v57  ;;  %v7127_v31 = vrot.slane %v3056_v48, 4  ;;  %v3202_v62 = vrot.slane %v3189_v42, 5  ;;  %v3218_v19 = vmul.f32 0.0, %v7107_v57  ;;  %v7142_v2 = vrot.slane %v3122_v12, 5 }
 0x236   : > { %8597 = vst [vmem:[#allocation20_spill] sm:$0xff] %v7116_v11  ;;  %8598 = vst [vmem:[#allocation22_spill] sm:$0xff] %v7119_v34  ;;  %v7135_v1 = vld [vmem:[%s8143_s11 + $0xd] ss:$0 sm:$0xff]  ;;  %v7145_v48 = vmul.f32 0.0, %v7116_v11  ;;  %v3266_v42 = vmul.f32 %v7125_v56, %v6779_v14  ;;  %v7151_v57 = vsel %vm2371_vm7, %v3102_v45, %v7119_v34  ;;  %v3230_v50 = vrot.slane %v3220_v22, 5 }
 0x237   : > { %8599 = vst [vmem:[#allocation73_spill] sm:$0xff] %v7125_v56  ;;  %8600 = vst [vmem:[#allocation66_spill] sm:$0xff] %v7127_v31  ;;  %v7153_v31 = vrot.slane %v3186_v33, 5  ;;  %v7156_v15 = vmul.f32 0.0, %v7125_v56  ;;  %v4740_v53 = vld [vmem:[%s8142_s10] ss:$0 sm:$0xff]  ;;  %v7163_v12 = vsel %vm2371_vm7, %v3131_v18, %v7142_v2  ;;  %v3289_v45 = vmul.f32 %v7135_v1, %v6779_v14 }
 0x238   : > { %8601 = vst [vmem:[#allocation62_spill] sm:$0xff] %v7135_v1  ;;  %8602 = vst [vmem:[#allocation56_spill] sm:$0xff] %v7140_v6  ;;  %v7165_v5 = vrot.slane %v3154_v10, 5  ;;  %v3290_v33 = vmul.f32 0.0, %v7135_v1  ;;  %v7173_v22 = vld [vmem:[%s8143_s11 + $0x14] ss:$0 sm:$0xff] }
 0x239   : > { %8603 = vst [vmem:[#allocation45_spill] sm:$0xff] %v7142_v2  ;;  %8604 = vst [vmem:[#allocation47_spill] sm:$0xff] %v7151_v57  ;;  %v4741_v56 = vld [vmem:[%s8142_s10 + $0x1] ss:$0 sm:$0xff]  ;;  %v7180_v18 = vsel %vm2371_vm7, %v3202_v62, %v7153_v31  ;;  %v7182_v10 = vrot.slane %v3218_v19, 5  ;;  %v3253_v11 = vrot.slane %v3246_v20, 5 }
 0x23a   : > { %8605 = vst [vmem:[#allocation77_spill] sm:$0xff] %v7153_v31  ;;  %8606 = vst [vmem:[#allocation46_spill] sm:$0xff] %v7163_v12  ;;  %v7189_v1 = vld [vmem:[%s8143_s11 + $0x22] ss:$0 sm:$0xff]  ;;  %v3273_v57 = vrot.slane %v3266_v42, 6  ;;  %v3317_v2 = vmul.f32 0.0, %v7173_v22 }
 0x23b   : > { %8607 = vst [vmem:[#allocation69_spill] sm:$0xff] %v7165_v5  ;;  %8608 = vst [vmem:[#allocation58_spill] sm:$0xff] %v7173_v22  ;;  %v3316_v5 = vmul.f32 %v7173_v22, %v6779_v14  ;;  %v7195_v62 = vld [vmem:[%s8143_s11 + $0x1b] ss:$0 sm:$0xff]  ;;  %v3384_v19 = vmul.f32 %v7189_v1, %v6779_v14  ;;  %v7201_v31 = vsel %vm2371_vm7, %v3230_v50, %v7182_v10  ;;  %v7208_v42 = vld [vmem:[%s8143_s11 + $0x29] ss:$0 sm:$0xff] }
 0x23c   : > { %8609 = vst [vmem:[#allocation78_spill] sm:$0xff] %v7180_v18  ;;  %8610 = vst [vmem:[#allocation68_spill] sm:$0xff] %v7182_v10  ;;  %v3297_v60 = vrot.slane %v3289_v45, 6  ;;  %v7210_v43 = vrot.slane %v3290_v33, 6  ;;  %v7216_v50 = vld [vmem:[%s8143_s11 + $0x30] ss:$0 sm:$0xff] }
 0x23d   : > { %8611 = vst [vmem:[#allocation82_spill] sm:$0xff] %v7189_v1  ;;  %8612 = vst [vmem:[#allocation72_spill] sm:$0xff] %v7201_v31  ;;  %v8615_v6 = vrot.slane %v7145_v48, 5  ;;  %v3326_v10 = vrot.slane %v3316_v5, 6  ;;  %v3349_v26 = vmul.f32 0.0, %v7195_v62  ;;  %v8616_v45 = vrot.slane %v7156_v15, 6 }
 0x23e   : > { %8613 = vst [vmem:[#allocation76_spill] sm:$0xff] %v7208_v42  ;;  %8614 = vst [vmem:[#allocation63_spill] sm:$0xff] %v7216_v50  ;;  %v7230_v59 = vrot.slane %v3317_v2, 6 }
 0x23f   : > { %v7221_v22 = vsel %vm2371_vm7, %v3253_v11, %v8615_v6  ;;  %v7227_v33 = vsel %vm3272_vm9, %v3273_v57, %v8616_v45  ;;  %v7237_v11 = vmul.f32 0.0, %v7216_v50 }
 0x240   : > { %v7251_v6 = vsel %vm3272_vm9, %v3326_v10, %v7230_v59 }
 0x241   : > { %8618 = vst [vmem:[#allocation75_spill] sm:$0xff] %v7237_v11  ;;  %8621 = vst [vmem:[#allocation50_spill] sm:$0xff] %v7251_v6 }
 0x2ff   : > { %v4939_v12 = vpop.f32.mrb[8].mxu0 }
 0x300   : > { %v2347_v20 = vmul.f32 %v4939_v12, %v4740_v53  ;;  %v2332_v18 = vpop.f32.mrb[9].mxu0  ;;  %v3381_v12 = vmul.f32 0.0, %v7189_v1  ;;  %v3413_v1 = vmul.f32 0.0, %v7208_v42 }
 0x301   : > { %v2346_v34 = vmul.f32 %v4740_v53, %v2332_v18  ;;  %v3397_v18 = vrot.slane %v3384_v19, 6  ;;  %v7253_v19 = vrot.slane %v3349_v26, 6 }
 0x302   : > { %v2354_v31 = vadd.f32 %v4741_v56, %v2347_v20  ;;  %v7234_v20 = vmul.f32 %v7208_v42, %v6779_v14  ;;  %v7243_v57 = vrot.slane %v3381_v12, 6 }
 0x303   : > { %v2353_v53 = vadd.f32 %v4741_v56, %v2346_v34  ;;  %v7241_v34 = vsel %vm3272_vm9, %v3297_v60, %v7210_v43  ;;  %v7247_v56 = vmul.f32 %v7216_v50, %v6779_v14  ;;  %8622 = vst [vmem:[#allocation54_spill] sm:$0xff] %v7253_v19  ;;  %v4745_v60 = vld [vmem:[%s8143_s11 + $0x15] ss:$0 sm:$0xff]  ;;  %v7262_v14 = vrot.slane %v3413_v1, 6 }
 0x304   : > { %v2356_v3 = vmax.f32 %v2354_v31, 0.0  ;;  %8617 = vst [vmem:[#allocation74_spill] sm:$0xff] %v7234_v20  ;;  %8619 = vst [vmem:[#allocation25_spill] sm:$0xff] %v7243_v57  ;;  %v7260_v12 = vsel %vm3272_vm9, %v3397_v18, %v7243_v57 }
 0x305   : > { %v2355_v5 = vmax.f32 %v2353_v53, 0.0  ;;  %8620 = vst [vmem:[#allocation79_spill] sm:$0xff] %v7247_v56  ;;  %8623 = vst [vmem:[#allocation51_spill] sm:$0xff] %v7260_v12 }
 0x306   : > { %v2360_v2 = vcombine.high %v2356_v3, %v2356_v3  ;;  %v2364_v31 = vrot.slane %v2356_v3, 5  ;;  %8624 = vst [vmem:[#allocation21_spill] sm:$0xff] %v7262_v14 }
 0x307   : > { %v2359_v45 = vcombine.high %v2355_v5, %v2355_v5  ;;  %v2362_v53 = vrot.slane %v2355_v5, 5 }
 0x308   : > { %v2365_v50 = vrot.slane %v2360_v2, 5  ;;  %v2375_v3 = vsel %vm2371_vm7, 0.0, %v2364_v31 }
 0x309   : > { %v7268_v42 = vsel %vm2377_vm8, %v2375_v3, 0.0  ;;  %v2363_v5 = vrot.slane %v2359_v45, 5  ;;  %v2373_v19 = vsel %vm2371_vm7, 0.0, %v2362_v53 }
 0x30a   : > { %v2376_v18 = vsel %vm2371_vm7, 0.0, %v2365_v50  ;;  %v7274_v1 = vsel %vm2377_vm8, %v2373_v19, 0.0  ;;  %v2409_v2 = vmul.f32 %v6794_v4, %v7268_v42  ;;  %v2421_v31 = vmul.f32 %v4745_v60, %v7268_v42 }
 0x30b   : > { %v7280_v26 = vsel %vm2377_vm8, %v2376_v18, 0.0  ;;  %v2374_v3 = vsel %vm2371_vm7, 0.0, %v2363_v5  ;;  %v2389_v45 = vmul.f32 %v6784_v8, %v7274_v1  ;;  %v2396_v53 = vmul.f32 %v6789_v16, %v7274_v1 }
 0x30c   : > { %v7288_v50 = vsel %vm2377_vm8, %v2374_v3, 0.0  ;;  %v2407_v19 = vmul.f32 %v6794_v4, %v7274_v1  ;;  %v2419_v6 = vmul.f32 %v4745_v60, %v7274_v1  ;;  %v2422_v10 = vmul.f32 %v4745_v60, %v7280_v26 }
 0x30d   : > { %v2397_v18 = vmul.f32 %v6789_v16, %v7288_v50  ;;  %v2399_v5 = vadd.f32 %v2396_v53, %v6808_v44  ;;  %v2408_v8 = vmul.f32 %v6794_v4, %v7288_v50  ;;  %v2420_v56 = vmul.f32 %v4745_v60, %v7288_v50 }
 0x30e   : > { %v2411_v3 = vadd.f32 %v2407_v19, %v6908_v54  ;;  %v2423_v11 = vadd.f32 %v2419_v6, %v6988_v37  ;;  %v2432_v20 = vmul.f32 %v6972_v27, %v7288_v50  ;;  %v2433_v14 = vmul.f32 %v6972_v27, %v7268_v42 }
 0x30f   : > { %v2400_v12 = vadd.f32 %v2397_v18, %v2389_v45  ;;  %v2412_v57 = vadd.f32 %v2408_v8, %v2399_v5  ;;  %v2434_v16 = vmul.f32 %v6972_v27, %v7280_v26  ;;  %v2445_v4 = vmul.f32 %v6977_v55, %v7268_v42 }
 0x310   : > { %v2424_v44 = vadd.f32 %v2420_v56, %v2411_v3  ;;  %v2436_v60 = vadd.f32 %v2432_v20, %v2423_v11  ;;  %v2446_v54 = vmul.f32 %v6977_v55, %v7280_v26  ;;  %v2457_v37 = vmul.f32 %v7053_v38, %v7280_v26 }
 0x311   : > { %v2413_v6 = vadd.f32 %v2409_v2, %v2400_v12  ;;  %v2425_v53 = vadd.f32 %v2421_v31, %v2412_v57  ;;  %v2469_v45 = vmul.f32 %v6799_v61, %v7274_v1  ;;  %v2486_v19 = vmul.f32 %v6804_v13, %v7274_v1  ;;  %v4752_v57 = vld [vmem:[%s8143_s11 + $0x16] ss:$0 sm:$0xff] }
 0x312   : > { %v2437_v27 = vadd.f32 %v2433_v14, %v2424_v44  ;;  %v2448_v18 = vadd.f32 %v2445_v4, %v2436_v60  ;;  %v2487_v56 = vmul.f32 %v6804_v13, %v7288_v50  ;;  %v2507_v20 = vmul.f32 %v6817_v41, %v7274_v1 }
 0x313   : > { %v2426_v55 = vadd.f32 %v2422_v10, %v2413_v6  ;;  %v2438_v11 = vadd.f32 %v2434_v16, %v2425_v53  ;;  %v2473_v5 = vrot.slane %v2469_v45, 1  ;;  %v2492_v38 = vrot.slane %v2486_v19, 1 }
 0x314   : > { %v2449_v61 = vadd.f32 %v2446_v54, %v2437_v27  ;;  %v2459_v12 = vadd.f32 %v2457_v37, %v2448_v18  ;;  %v2493_v2 = vrot.slane %v2487_v56, 1  ;;  %v2508_v14 = vmul.f32 %v6817_v41, %v7288_v50 }
 0x315   : > { %v2439_v31 = vadd.f32 %v7007_v21, %v2426_v55  ;;  %v2450_v13 = vadd.f32 %v7011_v30, %v2438_v11  ;;  %v2509_v10 = vmul.f32 %v6817_v41, %v7268_v42  ;;  %v2515_v8 = vrot.slane %v2507_v20, 1 }
 0x316   : > { %v2460_v3 = vadd.f32 %v7071_v35, %v2449_v61  ;;  %v2476_v16 = vadd.f32 %v6910_v36, %v2459_v12  ;;  %v2516_v4 = vrot.slane %v2508_v14, 1  ;;  %v2531_v44 = vmul.f32 %v4752_v57, %v7274_v1 }
 0x317   : > { %v2451_v60 = vadd.f32 %v7011_v30, %v2439_v31  ;;  %v2461_v54 = vadd.f32 %v7071_v35, %v2450_v13  ;;  %v2517_v37 = vrot.slane %v2509_v10, 1  ;;  %v2532_v21 = vmul.f32 %v4752_v57, %v7288_v50 }
 0x318   : > { %v2477_v6 = vadd.f32 %v6910_v36, %v2460_v3  ;;  %v8625_v53 = vrot.slane %v6833_v25, 1  ;;  %v2533_v45 = vmul.f32 %v4752_v57, %v7268_v42  ;;  %v2534_v19 = vmul.f32 %v4752_v57, %v7280_v26 }
 0x319   : > { %v2462_v27 = vadd.f32 %v7071_v35, %v2451_v60  ;;  %v2478_v18 = vadd.f32 %v6910_v36, %v2461_v54  ;;  %v2539_v56 = vrot.slane %v2531_v44, 1  ;;  %v2540_v30 = vrot.slane %v2532_v21, 1 }
 0x31a   : > { %v2497_v41 = vadd.f32 %v8625_v53, %v2476_v16  ;;  %v8626_v20 = vmov %v8625_v53  ;;  %v8627_v11 = vrot.slane %v6837_v9, 1  ;;  %v2541_v12 = vrot.slane %v2533_v45, 1 }
 0x31b   : > { %v2498_v55 = vadd.f32 %v8626_v20, %v2477_v6  ;;  %v2542_v14 = vrot.slane %v2534_v19, 1  ;;  %v2479_v31 = vadd.f32 %v2473_v5, %v2462_v27  ;;  %v2499_v13 = vadd.f32 %v2492_v38, %v2478_v18 }
 0x31c   : > { %v2522_v61 = vadd.f32 %v8627_v11, %v2497_v41  ;;  %v2556_v10 = vmul.f32 %v6822_v51, %v7288_v50  ;;  %v2557_v35 = vmul.f32 %v6822_v51, %v7268_v42  ;;  %v2558_v3 = vmul.f32 %v6822_v51, %v7280_v26 }
 0x31d   : > { %v2523_v57 = vadd.f32 %v2515_v8, %v2498_v55  ;;  %v2581_v25 = vmul.f32 %v6827_v63, %v7268_v42  ;;  %v2500_v9 = vadd.f32 %v2493_v2, %v2479_v31  ;;  %v2524_v16 = vadd.f32 %v2516_v4, %v2499_v13 }
 0x31e   : > { %v2547_v36 = vadd.f32 %v2539_v56, %v2522_v61  ;;  %v2564_v44 = vrot.slane %v2556_v10, 1  ;;  %v2565_v60 = vrot.slane %v2557_v35, 1  ;;  %v2566_v38 = vrot.slane %v2558_v3, 1 }
 0x31f   : > { %v2548_v5 = vadd.f32 %v2540_v30, %v2523_v57  ;;  %v2582_v54 = vmul.f32 %v6827_v63, %v7280_v26  ;;  %v2587_v21 = vrot.slane %v2581_v25, 1  ;;  %v2525_v6 = vadd.f32 %v2517_v37, %v2500_v9 }
 0x320   : > { %v2549_v53 = vadd.f32 %v2541_v12, %v2524_v16  ;;  %v2572_v8 = vadd.f32 %v2564_v44, %v2547_v36  ;;  %v2602_v41 = vmul.f32 %v6842_v52, %v7280_v26  ;;  %v2620_v2 = vmul.f32 %v6847_v23, %v7274_v1 }
 0x321   : > { %v2573_v51 = vadd.f32 %v2565_v60, %v2548_v5  ;;  %v2588_v45 = vrot.slane %v2582_v54, 1  ;;  %v2637_v4 = vmul.f32 %v6852_v46, %v7274_v1  ;;  %v2550_v19 = vadd.f32 %v2542_v14, %v2525_v6  ;;  %v4759_v14 = vld [vmem:[%s8143_s11 + $0x17] ss:$0 sm:$0xff] }
 0x322   : > { %v2574_v27 = vadd.f32 %v2566_v38, %v2549_v53  ;;  %v2593_v18 = vadd.f32 %v2587_v21, %v2572_v8  ;;  %v2606_v56 = vrot.slane %v2602_v41, 1  ;;  %v2624_v30 = vrot.slane %v2620_v2, 2 }
 0x323   : > { %v2594_v63 = vadd.f32 %v2588_v45, %v2573_v51  ;;  %v2638_v37 = vmul.f32 %v6852_v46, %v7288_v50  ;;  %v2643_v20 = vrot.slane %v2637_v4, 2  ;;  %v8628_v52 = vrot.slane %v6856_v24, 1 }
 0x324   : > { %v8629_v11 = vrot.slane %v6860_v17, 1  ;;  %v2610_v23 = vadd.f32 %v2606_v56, %v2593_v18  ;;  %v2658_v12 = vmul.f32 %v6869_v28, %v7274_v1  ;;  %v2659_v46 = vmul.f32 %v6869_v28, %v7288_v50 }
 0x325   : > { %v2575_v55 = vadd.f32 %v8628_v52, %v2550_v19  ;;  %v2611_v31 = vadd.f32 %v6938_v39, %v2594_v63  ;;  %v2644_v13 = vrot.slane %v2638_v37, 2  ;;  %v2660_v24 = vmul.f32 %v6869_v28, %v7268_v42 }
 0x326   : > { %v2595_v61 = vadd.f32 %v8629_v11, %v2574_v27  ;;  %v8630_v10 = vmov %v8629_v11  ;;  %v2627_v36 = vadd.f32 %v6940_v32, %v2610_v23  ;;  %v2666_v3 = vrot.slane %v2658_v12, 2 }
 0x327   : > { %v2596_v35 = vadd.f32 %v8630_v10, %v2575_v55  ;;  %v2628_v25 = vadd.f32 %v6940_v32, %v2611_v31  ;;  %v2667_v9 = vrot.slane %v2659_v46, 2  ;;  %v2668_v16 = vrot.slane %v2660_v24, 2 }
 0x328   : > { %v2612_v57 = vadd.f32 %v6938_v39, %v2595_v61  ;;  %v2682_v44 = vmul.f32 %v4759_v14, %v7274_v1  ;;  %v8631_v28 = vrot.slane %v6883_v49, 2  ;;  %v2683_v17 = vmul.f32 %v4759_v14, %v7288_v50 }
 0x329   : > { %v2613_v60 = vadd.f32 %v6938_v39, %v2596_v35  ;;  %v2684_v6 = vmul.f32 %v4759_v14, %v7268_v42  ;;  %v2685_v53 = vmul.f32 %v4759_v14, %v7280_v26  ;;  %v8633_v45 = vrot.slane %v6887_v47, 2 }
 0x32a   : > { %v2629_v5 = vadd.f32 %v6940_v32, %v2612_v57  ;;  %v2648_v38 = vadd.f32 %v8631_v28, %v2627_v36  ;;  %v8632_v54 = vmov %v8631_v28  ;;  %v2690_v8 = vrot.slane %v2682_v44, 2  ;;  %v8636_v44 = vld [vmem:[#allocation42_spill] sm:$0xff] }
 0x32b   : > { %v2649_v21 = vadd.f32 %v8632_v54, %v2628_v25  ;;  %v2630_v41 = vadd.f32 %v2624_v30, %v2613_v60  ;;  %v2691_v2 = vrot.slane %v2683_v17, 2  ;;  %v2692_v4 = vrot.slane %v2684_v6, 2  ;;  %v4766_v54 = vld [vmem:[%s8143_s11 + $0x18] ss:$0 sm:$0xff] }
 0x32c   : > { %v2650_v51 = vadd.f32 %v2643_v20, %v2629_v5  ;;  %v2673_v39 = vadd.f32 %v8633_v45, %v2648_v38  ;;  %v2693_v19 = vrot.slane %v2685_v53, 2  ;;  %v2707_v27 = vmul.f32 %v6874_v0, %v7288_v50  ;;  %v8640_v53 = vld [vmem:[#allocation19_spill] sm:$0xff] }
 0x32d   : > { %v2674_v32 = vadd.f32 %v2666_v3, %v2649_v21  ;;  %v2651_v18 = vadd.f32 %v2644_v13, %v2630_v41  ;;  %v2708_v63 = vmul.f32 %v6874_v0, %v7268_v42  ;;  %v2709_v30 = vmul.f32 %v6874_v0, %v7280_v26  ;;  %v8634_v3 = vld [vmem:[#allocation34_spill] sm:$0xff]  ;;  %v8641_v45 = vld [vmem:[#allocation35_spill] sm:$0xff] }
 0x32e   : > { %v2675_v49 = vadd.f32 %v2667_v9, %v2650_v51  ;;  %v2698_v56 = vadd.f32 %v2690_v8, %v2673_v39  ;;  %v2715_v20 = vrot.slane %v2707_v27, 2  ;;  %v2732_v47 = vmul.f32 %v6879_v58, %v7268_v42 }
 0x32f   : > { %v2699_v37 = vadd.f32 %v2691_v2, %v2674_v32  ;;  %v2676_v52 = vadd.f32 %v2668_v16, %v2651_v18  ;;  %v2716_v11 = vrot.slane %v2708_v63, 2  ;;  %v2733_v61 = vmul.f32 %v6879_v58, %v7280_v26 }
 0x330   : > { %v2700_v55 = vadd.f32 %v2692_v4, %v2675_v49  ;;  %v2717_v23 = vrot.slane %v2709_v30, 2  ;;  %v2723_v12 = vadd.f32 %v2715_v20, %v2698_v56  ;;  %v2738_v14 = vrot.slane %v2732_v47, 2  ;;  %v8642_v56 = vld [vmem:[#allocation23_spill] sm:$0xff] }
 0x331   : > { %v2753_v31 = vmul.f32 %v6900_v40, %v7280_v26  ;;  %v2701_v13 = vadd.f32 %v2693_v19, %v2676_v52  ;;  %v2724_v46 = vadd.f32 %v2716_v11, %v2699_v37  ;;  %v2739_v24 = vrot.slane %v2733_v61, 2 }
 0x332   : > { %v2771_v0 = vmul.f32 %v6905_v7, %v7274_v1  ;;  %v2725_v10 = vadd.f32 %v2717_v23, %v2700_v55  ;;  %v2744_v35 = vadd.f32 %v2738_v14, %v2723_v12  ;;  %v2788_v36 = vmul.f32 %v6919_v29, %v7274_v1  ;;  %v8638_v7 = vld [vmem:[#allocation38_spill] sm:$0xff]  ;;  %v8645_v12 = vld [vmem:[#allocation29_spill] sm:$0xff] }
 0x333   : > { %v2757_v57 = vrot.slane %v2753_v31, 2  ;;  %v8635_v58 = vrot.slane %v8634_v3, 2  ;;  %v2745_v9 = vadd.f32 %v2739_v24, %v2724_v46  ;;  %v2789_v40 = vmul.f32 %v6919_v29, %v7288_v50  ;;  %v8647_v3 = vld [vmem:[#allocation43_spill] sm:$0xff] }
 0x334   : > { %v2775_v16 = vrot.slane %v2771_v0, 3  ;;  %v8637_v60 = vrot.slane %v8636_v44, 2  ;;  %v2794_v38 = vrot.slane %v2788_v36, 3  ;;  %v2809_v17 = vmul.f32 %v8638_v7, %v7274_v1  ;;  %v8648_v44 = vld [vmem:[#allocation28_spill] sm:$0xff] }
 0x335   : > { %v2726_v25 = vadd.f32 %v8635_v58, %v2701_v13  ;;  %v2761_v28 = vadd.f32 %v2757_v57, %v2744_v35  ;;  %v2762_v8 = vadd.f32 %v8640_v53, %v2745_v9  ;;  %v2795_v41 = vrot.slane %v2789_v40, 3 }
 0x336   : > { %v2746_v5 = vadd.f32 %v8637_v60, %v2725_v10  ;;  %v8639_v21 = vmov %v8637_v60  ;;  %v2810_v29 = vmul.f32 %v8638_v7, %v7288_v50  ;;  %v2811_v2 = vmul.f32 %v8638_v7, %v7268_v42 }
 0x337   : > { %v2747_v6 = vadd.f32 %v8639_v21, %v2726_v25  ;;  %v2778_v39 = vadd.f32 %v8641_v45, %v2761_v28  ;;  %v2817_v32 = vrot.slane %v2809_v17, 3  ;;  %v2779_v19 = vadd.f32 %v8641_v45, %v2762_v8 }
 0x338   : > { %v2763_v51 = vadd.f32 %v8640_v53, %v2746_v5  ;;  %v2818_v27 = vrot.slane %v2810_v29, 3  ;;  %v2833_v18 = vmul.f32 %v4766_v54, %v7274_v1  ;;  %v8643_v63 = vrot.slane %v8642_v56, 3 }
 0x339   : > { %v2764_v4 = vadd.f32 %v8640_v53, %v2747_v6  ;;  %v2819_v30 = vrot.slane %v2811_v2, 3  ;;  %v2834_v20 = vmul.f32 %v4766_v54, %v7288_v50  ;;  %v2835_v11 = vmul.f32 %v4766_v54, %v7268_v42  ;;  %v8649_v6 = vld [vmem:[#allocation36_spill] sm:$0xff]  ;;  %v8651_v2 = vld [vmem:[#allocation39_spill] sm:$0xff] }
 0x33a   : > { %v2780_v49 = vadd.f32 %v8641_v45, %v2763_v51  ;;  %v2799_v37 = vadd.f32 %v8643_v63, %v2778_v39  ;;  %v8644_v52 = vmov %v8643_v63  ;;  %v2836_v61 = vmul.f32 %v4766_v54, %v7280_v26  ;;  %v8650_v51 = vld [vmem:[#allocation60_spill] sm:$0xff] }
 0x33b   : > { %v2781_v47 = vadd.f32 %v2775_v16, %v2764_v4  ;;  %v2800_v55 = vadd.f32 %v8644_v52, %v2779_v19  ;;  %v8646_v14 = vrot.slane %v8645_v12, 3  ;;  %v2841_v13 = vrot.slane %v2833_v18, 3  ;;  %v4773_v12 = vld [vmem:[%s8143_s11 + $0x19] ss:$0 sm:$0xff] }
 0x33c   : > { %v2801_v23 = vadd.f32 %v2794_v38, %v2780_v49  ;;  %v2842_v46 = vrot.slane %v2834_v20, 3  ;;  %v2843_v10 = vrot.slane %v2835_v11, 3  ;;  %v2844_v35 = vrot.slane %v2836_v61, 3  ;;  %v8657_v61 = vld [vmem:[#allocation67_spill] sm:$0xff] }
 0x33d   : > { %v2824_v31 = vadd.f32 %v8646_v14, %v2799_v37  ;;  %v2802_v24 = vadd.f32 %v2795_v41, %v2781_v47  ;;  %v2825_v0 = vadd.f32 %v2817_v32, %v2800_v55  ;;  %v2858_v58 = vmul.f32 %v8647_v3, %v7288_v50 }
 0x33e   : > { %v2826_v57 = vadd.f32 %v2818_v27, %v2801_v23  ;;  %v2859_v25 = vmul.f32 %v8647_v3, %v7268_v42  ;;  %v2860_v40 = vmul.f32 %v8647_v3, %v7280_v26  ;;  %v2883_v60 = vmul.f32 %v8648_v44, %v7268_v42  ;;  %v8653_v27 = vld [vmem:[#allocation48_spill] sm:$0xff] }
 0x33f   : > { %v2849_v36 = vadd.f32 %v2841_v13, %v2824_v31  ;;  %v2827_v9 = vadd.f32 %v2819_v30, %v2802_v24  ;;  %v2850_v16 = vadd.f32 %v2842_v46, %v2825_v0  ;;  %v2866_v28 = vrot.slane %v2858_v58, 3  ;;  %v8654_v30 = vld [vmem:[#allocation30_spill] sm:$0xff]  ;;  %v8658_v31 = vld [vmem:[#allocation40_spill] sm:$0xff] }
 0x340   : > { %v2851_v5 = vadd.f32 %v2843_v10, %v2826_v57  ;;  %v2867_v38 = vrot.slane %v2859_v25, 3  ;;  %v2884_v7 = vmul.f32 %v8648_v44, %v7280_v26  ;;  %v2868_v54 = vrot.slane %v2860_v40, 3 }
 0x341   : > { %v2852_v17 = vadd.f32 %v2844_v35, %v2827_v9  ;;  %v2889_v21 = vrot.slane %v2883_v60, 3  ;;  %v2904_v53 = vmul.f32 %v8649_v6, %v7280_v26  ;;  %v2874_v8 = vadd.f32 %v2866_v28, %v2849_v36  ;;  %v8659_v36 = vld [vmem:[#allocation33_spill] sm:$0xff] }
 0x342   : > { %v2875_v41 = vadd.f32 %v2867_v38, %v2850_v16  ;;  %v2890_v29 = vrot.slane %v2884_v7, 3  ;;  %v2922_v45 = vmul.f32 %v8650_v51, %v7274_v1  ;;  %v2876_v39 = vadd.f32 %v2868_v54, %v2851_v5  ;;  %v8660_v5 = vld [vmem:[#allocation64_spill] sm:$0xff] }
 0x343   : > { %v8652_v32 = vrot.slane %v8651_v2, 3  ;;  %v2908_v19 = vrot.slane %v2904_v53, 3  ;;  %v2939_v18 = vmul.f32 %v8653_v27, %v7274_v1  ;;  %v2895_v49 = vadd.f32 %v2889_v21, %v2874_v8 }
 0x344   : > { %v2896_v56 = vadd.f32 %v2890_v29, %v2875_v41  ;;  %v2926_v63 = vrot.slane %v2922_v45, 4  ;;  %v2940_v37 = vmul.f32 %v8653_v27, %v7288_v50  ;;  %v8655_v20 = vrot.slane %v8654_v30, 3  ;;  %v8663_v29 = vld [vmem:[#allocation65_spill] sm:$0xff] }
 0x345   : > { %v2877_v4 = vadd.f32 %v8652_v32, %v2852_v17  ;;  %v2945_v11 = vrot.slane %v2939_v18, 4  ;;  %v2960_v23 = vmul.f32 %v8657_v61, %v7274_v1  ;;  %v2912_v14 = vadd.f32 %v2908_v19, %v2895_v49  ;;  %v8665_v27 = vld [vmem:[#allocation49_spill] sm:$0xff] }
 0x346   : > { %v2897_v47 = vadd.f32 %v8655_v20, %v2876_v39  ;;  %v8656_v52 = vmov %v8655_v20  ;;  %v2913_v13 = vadd.f32 %v8658_v31, %v2896_v56  ;;  %v2946_v46 = vrot.slane %v2940_v37, 4  ;;  %v8666_v30 = vld [vmem:[#allocation81_spill] sm:$0xff] }
 0x347   : > { %v2898_v55 = vadd.f32 %v8656_v52, %v2877_v4  ;;  %v2961_v24 = vmul.f32 %v8657_v61, %v7288_v50  ;;  %v2962_v35 = vmul.f32 %v8657_v61, %v7268_v42  ;;  %v2968_v57 = vrot.slane %v2960_v23, 4 }
 0x348   : > { %v2914_v0 = vadd.f32 %v8658_v31, %v2897_v47  ;;  %v2929_v3 = vadd.f32 %v8659_v36, %v2912_v14  ;;  %v2930_v58 = vadd.f32 %v8659_v36, %v2913_v13  ;;  %v2984_v9 = vmul.f32 %v4773_v12, %v7274_v1  ;;  %v8667_v14 = vld [vmem:[#allocation41_spill] sm:$0xff] }
 0x349   : > { %v2915_v10 = vadd.f32 %v8658_v31, %v2898_v55  ;;  %v2969_v25 = vrot.slane %v2961_v24, 4  ;;  %v2970_v44 = vrot.slane %v2962_v35, 4  ;;  %v2985_v60 = vmul.f32 %v4773_v12, %v7288_v50  ;;  %v8668_v24 = vld [vmem:[#allocation52_spill] sm:$0xff]  ;;  %v8670_v35 = vld [vmem:[#allocation27_spill] sm:$0xff] }
 0x34a   : > { %v2931_v16 = vadd.f32 %v8659_v36, %v2914_v0  ;;  %v8661_v28 = vrot.slane %v8660_v5, 4  ;;  %v2986_v54 = vmul.f32 %v4773_v12, %v7268_v42  ;;  %v2987_v21 = vmul.f32 %v4773_v12, %v7280_v26 }
 0x34b   : > { %v2932_v40 = vadd.f32 %v2926_v63, %v2915_v10  ;;  %v2992_v8 = vrot.slane %v2984_v9, 4  ;;  %v2993_v41 = vrot.slane %v2985_v60, 4  ;;  %v8664_v51 = vrot.slane %v8663_v29, 4  ;;  %v8677_v29 = vld [vmem:[#allocation26_spill] sm:$0xff] }
 0x34c   : > { %v2950_v38 = vadd.f32 %v8661_v28, %v2929_v3  ;;  %v8662_v7 = vmov %v8661_v28  ;;  %v2952_v6 = vadd.f32 %v2945_v11, %v2931_v16  ;;  %v2994_v2 = vrot.slane %v2986_v54, 4 }
 0x34d   : > { %v2951_v17 = vadd.f32 %v8662_v7, %v2930_v58  ;;  %v2953_v53 = vadd.f32 %v2946_v46, %v2932_v40  ;;  %v2995_v32 = vrot.slane %v2987_v21, 4  ;;  %v3009_v18 = vmul.f32 %v8665_v27, %v7288_v50  ;;  %v8672_v40 = vld [vmem:[#allocation44_spill] sm:$0xff] }
 0x34e   : > { %v2975_v45 = vadd.f32 %v8664_v51, %v2950_v38  ;;  %v2977_v4 = vadd.f32 %v2969_v25, %v2952_v6  ;;  %v3010_v49 = vmul.f32 %v8665_v27, %v7268_v42  ;;  %v3011_v37 = vmul.f32 %v8665_v27, %v7280_v26  ;;  %v8671_v25 = vld [vmem:[#allocation61_spill] sm:$0xff]  ;;  %v8675_v21 = vld [vmem:[#allocation24_spill] sm:$0xff] }
 0x34f   : > { %v2976_v39 = vadd.f32 %v2968_v57, %v2951_v17  ;;  %v2978_v19 = vadd.f32 %v2970_v44, %v2953_v53  ;;  %v3034_v20 = vmul.f32 %v8666_v30, %v7268_v42  ;;  %v3017_v55 = vrot.slane %v3009_v18, 4  ;;  %v8680_v18 = vld [vmem:[#allocation56_spill] sm:$0xff] }
 0x350   : > { %v3000_v56 = vadd.f32 %v2992_v8, %v2975_v45  ;;  %v3002_v47 = vadd.f32 %v2994_v2, %v2977_v4  ;;  %v3018_v11 = vrot.slane %v3010_v49, 4  ;;  %v3019_v61 = vrot.slane %v3011_v37, 4  ;;  %v8676_v8 = vld [vmem:[#allocation66_spill] sm:$0xff] }
 0x351   : > { %v3001_v63 = vadd.f32 %v2993_v41, %v2976_v39  ;;  %v3003_v52 = vadd.f32 %v2995_v32, %v2978_v19  ;;  %v3035_v23 = vmul.f32 %v8666_v30, %v7280_v26  ;;  %v3040_v12 = vrot.slane %v3034_v20, 4  ;;  %v8679_v4 = vld [vmem:[#allocation22_spill] sm:$0xff] }
 0x352   : > { %v3055_v31 = vmul.f32 %v8667_v14, %v7280_v26  ;;  %v3025_v13 = vadd.f32 %v3017_v55, %v3000_v56  ;;  %v8669_v0 = vrot.slane %v8668_v24, 4  ;;  %v3074_v57 = vmul.f32 %v8670_v35, %v7274_v1  ;;  %v8681_v55 = vld [vmem:[#allocation47_spill] sm:$0xff]  ;;  %v8684_v35 = vld [vmem:[#allocation46_spill] sm:$0xff] }
 0x353   : > { %v3026_v46 = vadd.f32 %v3018_v11, %v3001_v63  ;;  %v3027_v36 = vadd.f32 %v3019_v61, %v3002_v47  ;;  %v3041_v3 = vrot.slane %v3035_v23, 4  ;;  %v3096_v9 = vmul.f32 %v8671_v25, %v7274_v1 }
 0x354   : > { %v3028_v10 = vadd.f32 %v8669_v0, %v3003_v52  ;;  %v3059_v58 = vrot.slane %v3055_v31, 4  ;;  %v3046_v16 = vadd.f32 %v3040_v12, %v3025_v13  ;;  %v8673_v44 = vrot.slane %v8672_v40, 4  ;;  %v8682_v12 = vld [vmem:[#allocation32_spill] sm:$0xff] }
 0x355   : > { %v3081_v5 = vrot.slane %v3074_v57, 5  ;;  %v3097_v28 = vmul.f32 %v8671_v25, %v7288_v50  ;;  %v3047_v38 = vadd.f32 %v3041_v3, %v3026_v46  ;;  %v3105_v54 = vrot.slane %v3096_v9, 5  ;;  %v8683_v46 = vld [vmem:[#allocation45_spill] sm:$0xff] }
 0x356   : > { %v3049_v60 = vadd.f32 %v8673_v44, %v3028_v10  ;;  %v8674_v7 = vmov %v8673_v44  ;;  %v3123_v6 = vmul.f32 %v8675_v21, %v7274_v1  ;;  %v3063_v53 = vadd.f32 %v3059_v58, %v3046_v16 }
 0x357   : > { %v3048_v17 = vadd.f32 %v8674_v7, %v3027_v36  ;;  %v8678_v51 = vrot.slane %v8677_v29, 5  ;;  %v3107_v39 = vrot.slane %v3097_v28, 5  ;;  %v3064_v2 = vadd.f32 %v8676_v8, %v3047_v38 }
 0x358   : > { %v3066_v41 = vadd.f32 %v8676_v8, %v3049_v60  ;;  %v3106_v19 = vsel %vm2371_vm7, %v3105_v54, %v8679_v4  ;;  %v3124_v27 = vmul.f32 %v8675_v21, %v7288_v50  ;;  %v3085_v49 = vadd.f32 %v8680_v18, %v3063_v53  ;;  %v8686_v54 = vld [vmem:[#allocation31_spill] sm:$0xff] }
 0x359   : > { %v3082_v45 = vsel %vm2371_vm7, %v3081_v5, %v8678_v51  ;;  %v3065_v32 = vadd.f32 %v8676_v8, %v3048_v17  ;;  %v3108_v63 = vsel %vm2371_vm7, %v3107_v39, %v8679_v4  ;;  %v3125_v37 = vmul.f32 %v8675_v21, %v7268_v42  ;;  %v8685_v5 = vld [vmem:[#allocation83_spill] sm:$0xff]  ;;  %v8688_v4 = vld [vmem:[#allocation77_spill] sm:$0xff] }
 0x35a   : > { %v3088_v56 = vadd.f32 %v3082_v45, %v3066_v41  ;;  %v3086_v30 = vadd.f32 %v8680_v18, %v3064_v2  ;;  %v3134_v47 = vrot.slane %v3123_v6, 5  ;;  %v3136_v52 = vrot.slane %v3124_v27, 5  ;;  %v8687_v6 = vld [vmem:[#allocation69_spill] sm:$0xff] }
 0x35b   : > { %v3087_v20 = vadd.f32 %v8680_v18, %v3065_v32  ;;  %v3112_v11 = vadd.f32 %v8681_v55, %v3085_v49  ;;  %v3138_v23 = vrot.slane %v3125_v37, 5  ;;  %v3153_v14 = vmul.f32 %v8682_v12, %v7274_v1  ;;  %v8689_v37 = vld [vmem:[#allocation20_spill] sm:$0xff] }
 0x35c   : > { %v3115_v61 = vadd.f32 %v3108_v63, %v3088_v56  ;;  %v3113_v31 = vadd.f32 %v8681_v55, %v3086_v30  ;;  %v3135_v24 = vsel %vm2371_vm7, %v3134_v47, %v8683_v46  ;;  %v3137_v0 = vsel %vm2371_vm7, %v3136_v52, %v8683_v46  ;;  %v8690_v52 = vld [vmem:[#allocation78_spill] sm:$0xff] }
 0x35d   : > { %v3114_v13 = vadd.f32 %v3106_v19, %v3087_v20  ;;  %v3139_v10 = vsel %vm2371_vm7, %v3138_v23, %v8683_v46  ;;  %v3144_v57 = vadd.f32 %v8684_v35, %v3112_v11  ;;  %v3155_v36 = vmul.f32 %v8682_v12, %v7288_v50  ;;  %v8691_v11 = vld [vmem:[#allocation73_spill] sm:$0xff] }
 0x35e   : > { %v3156_v3 = vmul.f32 %v8682_v12, %v7268_v42  ;;  %v3145_v58 = vadd.f32 %v3135_v24, %v3113_v31  ;;  %v3147_v9 = vadd.f32 %v3139_v10, %v3115_v61  ;;  %v3157_v16 = vmul.f32 %v8682_v12, %v7280_v26  ;;  %v8693_v24 = vld [vmem:[#allocation72_spill] sm:$0xff] }
 0x35f   : > { %v3146_v25 = vadd.f32 %v3137_v0, %v3114_v13  ;;  %v3163_v40 = vrot.slane %v3153_v14, 5  ;;  %v3166_v44 = vrot.slane %v3155_v36, 5  ;;  %v3185_v28 = vmul.f32 %v8685_v5, %v7288_v50  ;;  %v8692_v14 = vld [vmem:[#allocation68_spill] sm:$0xff] }
 0x360   : > { %v3168_v60 = vrot.slane %v3156_v3, 5  ;;  %v3170_v38 = vrot.slane %v3157_v16, 5  ;;  %v3187_v7 = vmul.f32 %v8685_v5, %v7268_v42  ;;  %v3188_v17 = vmul.f32 %v8685_v5, %v7280_v26  ;;  %v8694_v3 = vld [vmem:[#allocation62_spill] sm:$0xff] }
 0x361   : > { %v3217_v21 = vmul.f32 %v8686_v54, %v7268_v42  ;;  %v3165_v53 = vsel %vm2371_vm7, %v3163_v40, %v8687_v6  ;;  %v3167_v8 = vsel %vm2371_vm7, %v3166_v44, %v8687_v6  ;;  %v3195_v29 = vrot.slane %v3185_v28, 5 }
 0x362   : > { %v3169_v41 = vsel %vm2371_vm7, %v3168_v60, %v8687_v6  ;;  %v3171_v51 = vsel %vm2371_vm7, %v3170_v38, %v8687_v6  ;;  %v3176_v45 = vadd.f32 %v3165_v53, %v3144_v57  ;;  %v3177_v39 = vadd.f32 %v3167_v8, %v3145_v58  ;;  %v8697_v6 = vld [vmem:[#allocation58_spill] sm:$0xff] }
 0x363   : > { %v3178_v2 = vadd.f32 %v3169_v41, %v3146_v25  ;;  %v3179_v32 = vadd.f32 %v3171_v51, %v3147_v9  ;;  %v3197_v19 = vsel %vm2371_vm7, %v3195_v29, %v8688_v4  ;;  %v3198_v27 = vrot.slane %v3187_v7, 5 }
 0x364   : > { %v3200_v18 = vrot.slane %v3188_v17, 5  ;;  %v3208_v49 = vadd.f32 %v3197_v19, %v3176_v45  ;;  %v3219_v56 = vmul.f32 %v8686_v54, %v7280_v26  ;;  %v3225_v63 = vrot.slane %v3217_v21, 5 }
 0x365   : > { %v3244_v30 = vmul.f32 %v8689_v37, %v7280_v26  ;;  %v3199_v20 = vsel %vm2371_vm7, %v3198_v27, %v8688_v4  ;;  %v3211_v55 = vadd.f32 %v8690_v52, %v3179_v32  ;;  %v3268_v61 = vmul.f32 %v8691_v11, %v7274_v1 }
 0x366   : > { %v3201_v47 = vsel %vm2371_vm7, %v3200_v18, %v8688_v4  ;;  %v3209_v23 = vadd.f32 %v3199_v20, %v3177_v39  ;;  %v3227_v31 = vsel %vm2371_vm7, %v3225_v63, %v8692_v14  ;;  %v3228_v13 = vrot.slane %v3219_v56, 5  ;;  %v8698_v56 = vld [vmem:[#allocation50_spill] sm:$0xff] }
 0x367   : > { %v3210_v12 = vadd.f32 %v3201_v47, %v3178_v2  ;;  %v3235_v46 = vadd.f32 %v3227_v31, %v3208_v49  ;;  %v3238_v0 = vadd.f32 %v8693_v24, %v3211_v55  ;;  %v3250_v10 = vrot.slane %v3244_v30, 5 }
 0x368   : > { %v3276_v35 = vrot.slane %v3268_v61, 6  ;;  %v3229_v57 = vsel %vm2371_vm7, %v3228_v13, %v8692_v14  ;;  %v3291_v58 = vmul.f32 %v8694_v3, %v7274_v1  ;;  %v3292_v25 = vmul.f32 %v8694_v3, %v7288_v50  ;;  %v8700_v14 = vld [vmem:[#allocation82_spill] sm:$0xff] }
 0x369   : > { %v3237_v36 = vadd.f32 %v8693_v24, %v3210_v12  ;;  %v3236_v9 = vadd.f32 %v3229_v57, %v3209_v23  ;;  %v8695_v16 = vrot.slane %v7145_v48, 5  ;;  %v3260_v44 = vadd.f32 %v7221_v22, %v3238_v0  ;;  %v8699_v23 = vld [vmem:[#allocation54_spill] sm:$0xff] }
 0x36a   : > { %v8696_v60 = vrot.slane %v7156_v15, 6  ;;  %v3300_v7 = vrot.slane %v3291_v58, 6  ;;  %v3302_v17 = vrot.slane %v3292_v25, 6  ;;  %v3318_v53 = vmul.f32 %v8697_v6, %v7274_v1  ;;  %v8701_v58 = vld [vmem:[#allocation76_spill] sm:$0xff] }
 0x36b   : > { %v3252_v40 = vsel %vm2371_vm7, %v3250_v10, %v8695_v16  ;;  %v3259_v38 = vadd.f32 %v7221_v22, %v3237_v36  ;;  %v3258_v54 = vadd.f32 %v7221_v22, %v3236_v9  ;;  %v3319_v48 = vmul.f32 %v8697_v6, %v7288_v50  ;;  %v8702_v16 = vld [vmem:[#allocation25_spill] sm:$0xff] }
 0x36c   : > { %v3277_v5 = vsel %vm3272_vm9, %v3276_v35, %v8696_v60  ;;  %v3257_v28 = vadd.f32 %v3252_v40, %v3235_v46  ;;  %v3301_v41 = vsel %vm3272_vm9, %v3300_v7, %v7210_v43  ;;  %v3303_v29 = vsel %vm3272_vm9, %v3302_v17, %v7210_v43  ;;  %v8707_v17 = vld [vmem:[#allocation63_spill] sm:$0xff] }
 0x36d   : > { %v3283_v21 = vadd.f32 %v3277_v5, %v3260_v44  ;;  %v3282_v15 = vadd.f32 %v7227_v33, %v3259_v38  ;;  %v3281_v51 = vadd.f32 %v7227_v33, %v3258_v54  ;;  %v3320_v45 = vmul.f32 %v8697_v6, %v7268_v42  ;;  %v8703_v44 = vld [vmem:[#allocation51_spill] sm:$0xff]  ;;  %v8704_v5 = vld [vmem:[#allocation21_spill] sm:$0xff] }
 0x36e   : > { %v3280_v8 = vadd.f32 %v7227_v33, %v3257_v28  ;;  %v3329_v39 = vrot.slane %v3318_v53, 6  ;;  %v3331_v4 = vrot.slane %v3319_v48, 6  ;;  %v3348_v19 = vmul.f32 %v7195_v62, %v7274_v1  ;;  %v8705_v28 = vld [vmem:[#allocation74_spill] sm:$0xff] }
 0x36f   : > { %v3310_v22 = vadd.f32 %v3303_v29, %v3283_v21  ;;  %v3309_v32 = vadd.f32 %v3301_v41, %v3282_v15  ;;  %v3308_v27 = vadd.f32 %v7241_v34, %v3281_v51  ;;  %v3333_v43 = vrot.slane %v3320_v45, 6 }
 0x370   : > { %v3307_v2 = vadd.f32 %v7241_v34, %v3280_v8  ;;  %v3330_v18 = vsel %vm3272_vm9, %v3329_v39, %v7230_v59  ;;  %v3350_v33 = vmul.f32 %v7195_v62, %v7288_v50  ;;  %v3332_v49 = vsel %vm3272_vm9, %v3331_v4, %v7230_v59  ;;  %v8710_v39 = vld [vmem:[#allocation79_spill] sm:$0xff] }
 0x371   : > { %v3351_v37 = vmul.f32 %v7195_v62, %v7268_v42  ;;  %v3352_v1 = vmul.f32 %v7195_v62, %v7280_v26  ;;  %v3334_v34 = vsel %vm3272_vm9, %v3333_v43, %v7230_v59  ;;  %v3340_v30 = vadd.f32 %v3330_v18, %v3308_v27 }
 0x372   : > { %v3339_v63 = vadd.f32 %v8698_v56, %v3307_v2  ;;  %v3341_v20 = vadd.f32 %v3332_v49, %v3309_v32  ;;  %v3358_v47 = vrot.slane %v3348_v19, 6  ;;  %v3342_v52 = vadd.f32 %v3334_v34, %v3310_v22  ;;  %v8708_v22 = vld [vmem:[#allocation75_spill] sm:$0xff]  ;;  %v4793_v34 = vld [vmem:[%s8145_s13] ss:$0 sm:$0xff] }
 0x373   : > { %v3361_v55 = vrot.slane %v3350_v33, 6  ;;  %v3363_v11 = vrot.slane %v3351_v37, 6  ;;  %v3365_v61 = vrot.slane %v3352_v1, 6  ;;  %v3380_v31 = vmul.f32 %v8700_v14, %v7288_v50 }
 0x374   : > { %v3360_v12 = vsel %vm3272_vm9, %v3358_v47, %v8699_v23  ;;  %v3382_v13 = vmul.f32 %v8700_v14, %v7268_v42  ;;  %v3383_v62 = vmul.f32 %v8700_v14, %v7280_v26  ;;  %v3412_v25 = vmul.f32 %v8701_v58, %v7268_v42 }
 0x375   : > { %v3362_v59 = vsel %vm3272_vm9, %v3361_v55, %v8699_v23  ;;  %v3364_v46 = vsel %vm3272_vm9, %v3363_v11, %v8699_v23  ;;  %v3366_v24 = vsel %vm3272_vm9, %v3365_v61, %v8699_v23  ;;  %v3371_v0 = vadd.f32 %v3360_v12, %v3339_v63 }
 0x376   : > { %v3372_v10 = vadd.f32 %v3362_v59, %v3340_v30  ;;  %v3373_v35 = vadd.f32 %v3364_v46, %v3341_v20  ;;  %v3374_v57 = vadd.f32 %v3366_v24, %v3342_v52  ;;  %v3390_v50 = vrot.slane %v3380_v31, 6  ;;  %v4794_v20 = vld [vmem:[%s8145_s13 + $0x1] ss:$0 sm:$0xff] }
 0x377   : > { %v3393_v36 = vrot.slane %v3382_v13, 6  ;;  %v3395_v3 = vrot.slane %v3383_v62, 6  ;;  %v3414_v9 = vmul.f32 %v8701_v58, %v7280_v26  ;;  %v8706_v38 = vrot.slane %v8705_v28, 6  ;;  %v8716_v28 = vld [vmem:[#allocation16_spill] sm:$0xff] }
 0x378   : > { %v3392_v40 = vsel %vm3272_vm9, %v3390_v50, %v8702_v16  ;;  %v3406_v60 = vadd.f32 %v8703_v44, %v3374_v57  ;;  %v3439_v54 = vmul.f32 %v8707_v17, %v7280_v26  ;;  %v3420_v53 = vrot.slane %v3412_v25, 6  ;;  %v3796_v57 = vld [vmem:[%s8147_s15] sm:$0xff]  ;;  %v3797_v50 = vld [vmem:[%s8147_s15 + $0x8] sm:$0xff] }
 0x379   : > { %v3426_v7 = vsel %vm3272_vm9, %v8706_v38, %v8704_v5  ;;  %v3394_v21 = vsel %vm3272_vm9, %v3393_v36, %v8702_v16  ;;  %v3396_v42 = vsel %vm3272_vm9, %v3395_v3, %v8702_v16  ;;  %v3403_v6 = vadd.f32 %v3392_v40, %v3371_v0  ;;  %v4798_v25 = vld [vmem:[%s8146_s14 + $0x1] ss:$0 sm:$0xff]  ;;  %v4795_v17 = vld [vmem:[%s8146_s14] ss:$0 sm:$0xff] }
 0x37a   : > { %v3404_v48 = vadd.f32 %v3394_v21, %v3372_v10  ;;  %v3405_v8 = vadd.f32 %v3396_v42, %v3373_v35  ;;  %v3423_v15 = vrot.slane %v3414_v9, 6  ;;  %v3433_v41 = vadd.f32 %v3426_v7, %v3406_v60  ;;  %v8714_v40 = vld [vmem:[#allocation18_spill] sm:$0xff] }
 0x37b   : > { %v3422_v29 = vsel %vm3272_vm9, %v3420_v53, %v8704_v5  ;;  %v3445_v51 = vrot.slane %v3439_v54, 6  ;;  %v8709_v45 = vrot.slane %v8708_v22, 6  ;;  %v8711_v26 = vrot.slane %v8710_v39, 6  ;;  %v7715_v54 = vld [vmem:[%s8146_s14 + $0x7] ss:$0 sm:$0xff]  ;;  %v8719_v22 = vld [vmem:[#allocation15_spill] sm:$0xff] }
 0x37c   : > { %v3424_v32 = vsel %vm3272_vm9, %v3423_v15, %v8704_v5  ;;  %v3430_v4 = vadd.f32 %v3422_v29, %v3403_v6  ;;  %v3432_v19 = vadd.f32 %v3426_v7, %v3405_v8  ;;  %v5021_v36 = vpack.c.bf16 %v3797_v50, %v3796_v57  ;;  %v7727_v53 = vld [vmem:[%s8146_s14 + $0x3] ss:$0 sm:$0xff]  ;;  %v8717_v15 = vld [vmem:[#allocation13_spill] sm:$0xff] }
 0x37d   : > { %v3449_v2 = vsel %vm3272_vm9, %v8711_v26, %v8709_v45  ;;  %v3431_v18 = vadd.f32 %v3424_v32, %v3404_v48  ;;  %v8712_v43 = vmov %v8709_v45  ;;  %v8713_v3 = vmov 0.0   ;;  %v7732_v48 = vld [vmem:[%s8146_s14 + $0x4] ss:$0 sm:$0xff] }
 0x37e   : > { %v3455_v27 = vadd.f32 %v3449_v2, %v3433_v41  ;;  %v3447_v33 = vsel %vm3272_vm9, %v3445_v51, %v8712_v43  ;;  %v3454_v49 = vadd.f32 %v3449_v2, %v3432_v19  ;;  %5022 = vmatprep.subr.bf16.mxu0 %v5021_v36  ;;  %v4373_v58 = vrot.slane %v8713_v3, 1  ;;  %v8718_v29 = vld [vmem:[#allocation14_spill] sm:$0xff]  ;;  %v8720_v19 = vld [vmem:[#allocation17_spill] sm:$0xff] }
 0x37f   : > { %v3452_v56 = vadd.f32 %v3447_v33, %v3430_v4  ;;  %v3453_v63 = vadd.f32 %v3449_v2, %v3431_v18  ;;  %5024 = vmatpush3.bf16.msra.mxu0 %v5021_v36  ;;  %v5151_v9 = vmov -3.4028235e+38   ;;  %v7697_v44 = vmul.f32 %v4798_v25, %v8714_v40  ;;  %v4801_v2 = vld [vmem:[%s8146_s14 + $0x2] ss:$0 sm:$0xff]  ;;  %v7751_v4 = vld [vmem:[%s8146_s14 + $0x8] ss:$0 sm:$0xff] }
 0x380   : > { %v3469_v37 = vcombine.low %v3454_v49, %v3455_v27  ;;  %v4367_v16 = vrot.slane %v5151_v9, 1  ;;  %v4378_v38 = vadd.f32 %v4373_v58, %v8716_v28  ;;  %v7722_v6 = vmul.f32 %v7715_v54, %v8714_v40  ;;  %v7761_v43 = vld [vmem:[%s8146_s14 + $0x5] ss:$0 sm:$0xff] }
 0x381   : > { %v3468_v1 = vcombine.low %v3452_v56, %v3453_v63  ;;  %v3616_v39 = vmul.f32 %v4795_v17, %v8714_v40  ;;  %v4797_v56 = vld [vmem:[%s8146_s14 + $0x6] ss:$0 sm:$0xff]  ;;  %v7768_v63 = vmul.f32 %v4801_v2, %v8714_v40 }
 0x382   : > { %v7735_v41 = vmax.f32 %v8717_v15, %v4367_v16 }
 0x383   : > { %4956 = vmatprep.mubr.msk.f32.mxu1 %vm2261_vm6, %v3468_v1 }
 0x384   : > { %4957 = vmatmul.mubr.msk.f32.vlgmr.msra.gmra.mrb[8].mxu1 %vm2261_vm6, %v3469_v37  ;;  %v7772_v37 = vmul.f32 %v7751_v4, %v8714_v40 }
 0x457   : > { %v4958_v30 = vpop.f32.mrb[8].mxu1 }
 0x458   : > { %v3555_v47 = vmul.f32 %v4958_v30, %v4793_v34  ;;  %v3540_v52 = vpop.f32.mrb[9].mxu1  ;;  %v7776_v30 = vmul.f32 %v4797_v56, %v8714_v40 }
 0x459   : > { %v3554_v55 = vmul.f32 %v4793_v34, %v3540_v52 }
 0x45a   : > { %v3562_v11 = vadd.f32 %v4794_v20, %v3555_v47  ;;  %v4423_v47 = vrot.slane %v8714_v40, 1 }
 0x45b   : > { %v3561_v61 = vadd.f32 %v4794_v20, %v3554_v55  ;;  %v3712_v20 = vrot.slane %v7722_v6, 1  ;;  %v8723_v6 = vld [vmem:[#allocation12_spill] sm:$0xff] }
 0x45c   : > { %3567 = vrot.lane.b32.xlu1 %v3562_v11, %s8344_s28  ;;  %v4477_v35 = vcombine.high %v3562_v11, %v3562_v11 }
 0x45d   : > { %3565 = vrot.lane.b32.xlu0 %v3561_v61, %s8344_s28  ;;  %v4476_v10 = vcombine.high %v3561_v61, %v3561_v61  ;;  %s8724_s28 = sld [smem:[#allocation88_spill]] }
 0x4ce   : > { %v3568_v23 = vpop.permute.xlu1 %3567 }
 0x4cf   : > { %v3566_v12 = vpop.permute.xlu0 %3565  ;;  %v3572_v14 = vadd.f32 %v3568_v23, %v3562_v11 }
 0x4d0   : > { %v3571_v31 = vadd.f32 %v3566_v12, %v3561_v61 }
 0x4d1   : > { %v3576_v59 = vcombine.high %v3572_v14, %v3572_v14  ;;  %v3581_v24 = vmax.f32 %v3572_v14, 0.0 }
 0x4d2   : > { %v3575_v13 = vcombine.high %v3571_v31, %v3571_v31  ;;  %v3579_v62 = vmax.f32 %v3571_v31, 0.0 }
 0x4d3   : > { %v3582_v0 = vmax.f32 %v3576_v59, 0.0 }
 0x4d4   : > { %3587 = vrot.lane.b32.xlu0 %v3579_v62, %s5148_s21  ;;  %v3580_v46 = vmax.f32 %v3575_v13, 0.0 }
 0x4d6   : > { %3589 = vrot.lane.b32.xlu1 %v3580_v46, %s5148_s21 }
 0x4d8   : > { %3591 = vrot.lane.b32.xlu0 %v3581_v24, %s5148_s21 }
 0x4da   : > { %3593 = vrot.lane.b32.xlu1 %v3582_v0, %s5148_s21 }
 0x4dc   : > { %4387 = vrot.lane.b32.xlu0 %v3571_v31, %s5148_s21 }
 0x4de   : > { %4389 = vrot.lane.b32.xlu1 %v3575_v13, %s5148_s21 }
 0x4e0   : > { %4391 = vrot.lane.b32.xlu0 %v3572_v14, %s5148_s21 }
 0x4e2   : > { %4393 = vrot.lane.b32.xlu1 %v3576_v59, %s5148_s21  ;;  %s8728_s21 = smov 16  }
 0x4e4   : > { %4478 = vrot.lane.b32.xlu0 %v3561_v61, %s5149_s27 }
 0x4e6   : > { %4480 = vrot.lane.b32.xlu1 %v4476_v10, %s5149_s27 }
 0x4e8   : > { %4482 = vrot.lane.b32.xlu0 %v3562_v11, %s5149_s27 }
 0x4ea   : > { %4484 = vrot.lane.b32.xlu1 %v4477_v35, %s5149_s27  ;;  %s8715_s27 = sld [smem:[#allocation87_spill]] }
 0x4ec   : > { %4494 = vrot.lane.b32.xlu0 %v3561_v61, %s5150_s23  ;;  %v4446_v61 = vrot.slane %v8714_v40, 2 }
 0x4ee   : > { %4496 = vrot.lane.b32.xlu1 %v4476_v10, %s5150_s23 }
 0x4f0   : > { %4498 = vrot.lane.b32.xlu0 %v3562_v11, %s5150_s23  ;;  %v4379_v60 = vld [vmem:[%s8715_s27] sm:$0xf]  ;;  %v4380_v5 = vld [vmem:[%s8715_s27 + $0x4] sm:$0xf]  ;;  %v4382_v7 = vld [vmem:[%s8715_s27 + $0xc] sm:$0xf] }
 0x4f1   : > { %v4381_v21 = vld [vmem:[%s8715_s27 + $0x8] sm:$0xf]  ;;  %v7738_v51 = vmul.f32 %v4379_v60, %v8718_v29  ;;  %v7741_v45 = vmul.f32 %v4380_v5, %v8719_v22  ;;  %v7756_v18 = vmul.f32 %v4382_v7, %v4378_v38 }
 0x4f2   : > { %4500 = vrot.lane.b32.xlu1 %v4477_v35, %s5150_s23  ;;  %v7754_v27 = vmul.f32 %v4381_v21, %v8720_v19 }
 0x546   : > { %v3588_v42 = vpop.permute.xlu0 %3587 }
 0x547   : > { %v3595_v8 = vrot.slane %v3588_v42, 7 }
 0x548   : > { %v3590_v32 = vpop.permute.xlu1 %3589 }
 0x549   : > { %v3603_v33 = vsel %vm1180_vm2, 0.0, %v3595_v8  ;;  %v3596_v49 = vrot.slane %v3590_v32, 7 }
 0x54a   : > { %v3607_v1 = vsel %vm1198_vm3, %v3603_v33, 0.0  ;;  %v3592_v34 = vpop.permute.xlu0 %3591 }
 0x54b   : > { %v3625_v52 = vmul.f32 %v7727_v53, %v3607_v1  ;;  %v7781_v55 = vmul.f32 %v4798_v25, %v3607_v1  ;;  %v7784_v11 = vmul.f32 %v7732_v48, %v3607_v1  ;;  %v7787_v23 = vmul.f32 %v4801_v2, %v3607_v1 }
 0x54c   : > { %v7790_v12 = vmul.f32 %v7761_v43, %v3607_v1  ;;  %v3604_v14 = vsel %vm1180_vm2, 0.0, %v3596_v49  ;;  %v3597_v31 = vrot.slane %v3592_v34, 7  ;;  %v3594_v13 = vpop.permute.xlu1 %3593  ;;  %v3617_v62 = vmul.f32 %v4795_v17, %v3607_v1 }
 0x54d   : > { %v7794_v59 = vsel %vm1198_vm3, %v3604_v14, 0.0  ;;  %v7798_v0 = vadd.f32 %v3625_v52, %v3616_v39  ;;  %v3598_v22 = vrot.slane %v3594_v13, 7 }
 0x54e   : > { %v3605_v57 = vsel %vm1180_vm2, 0.0, %v3597_v31  ;;  %v4388_v50 = vpop.permute.xlu0 %4387  ;;  %v3653_v9 = vmul.f32 %v4798_v25, %v7794_v59  ;;  %v3626_v16 = vmul.f32 %v7727_v53, %v7794_v59  ;;  %v3618_v60 = vmul.f32 %v4795_v17, %v7794_v59 }
 0x54f   : > { %v7806_v58 = vsel %vm1198_vm3, %v3605_v57, 0.0  ;;  %v7816_v7 = vmul.f32 %v4797_v56, %v7794_v59  ;;  %v7821_v42 = vmul.f32 %v4801_v2, %v7794_v59  ;;  %v3606_v52 = vsel %vm1180_vm2, 0.0, %v3598_v22 }
 0x550   : > { %v3627_v5 = vmul.f32 %v7727_v53, %v7806_v58  ;;  %v3654_v28 = vmul.f32 %v4798_v25, %v7806_v58  ;;  %v4390_v38 = vpop.permute.xlu1 %4389  ;;  %v3678_v21 = vmul.f32 %v7732_v48, %v7806_v58  ;;  %v7824_v8 = vmul.f32 %v4801_v2, %v7806_v58 }
 0x551   : > { %v3619_v15 = vmul.f32 %v4795_v17, %v7806_v58  ;;  %v7828_v29 = vmul.f32 %v4797_v56, %v7806_v58  ;;  %v4395_v25 = vrot.slane %v4388_v50, 7  ;;  %v3661_v19 = vrot.slane %v3653_v9, 1 }
 0x552   : > { %v4392_v39 = vpop.permute.xlu0 %4391  ;;  %v3631_v32 = vadd.f32 %v3627_v5, %v3618_v60  ;;  %v3662_v33 = vrot.slane %v3654_v28, 1  ;;  %v4396_v49 = vrot.slane %v4390_v38, 7  ;;  %v3686_v1 = vrot.slane %v3678_v21, 1 }
 0x553   : > { %v3736_v34 = vrot.slane %v7821_v42, 2  ;;  %v4403_v2 = vsel %vm1180_vm2, 0.0, %v4395_v25  ;;  %v3737_v17 = vrot.slane %v7824_v8, 2  ;;  %v3610_v31 = vsel %vm1198_vm3, %v3606_v52, 0.0 }
 0x554   : > { %v4394_v14 = vpop.permute.xlu1 %4393  ;;  %v7836_v13 = vsel %vm1198_vm3, %v4403_v2, 0.0  ;;  %v4404_v57 = vsel %vm1180_vm2, 0.0, %v4396_v49  ;;  %v3628_v50 = vmul.f32 %v7727_v53, %v3610_v31  ;;  %v3640_v9 = vmul.f32 %v4797_v56, %v3610_v31 }
 0x555   : > { %v3679_v60 = vmul.f32 %v7732_v48, %v3610_v31  ;;  %v3703_v5 = vmul.f32 %v7715_v54, %v3610_v31  ;;  %v7843_v38 = vmul.f32 %v7761_v43, %v3610_v31  ;;  %v4411_v21 = vadd.f32 %v7836_v13, %v8714_v40 }
 0x556   : > { %v4479_v28 = vpop.permute.xlu0 %4478  ;;  %v4397_v42 = vrot.slane %v4392_v39, 7  ;;  %v4398_v22 = vrot.slane %v4394_v14, 7  ;;  %v3632_v25 = vadd.f32 %v3628_v50, %v3619_v15  ;;  %v3644_v52 = vadd.f32 %v3640_v9, %v3631_v32 }
 0x557   : > { %v7848_v49 = vmul.f32 %v7751_v4, %v3610_v31  ;;  %v3630_v56 = vadd.f32 %v3626_v16, %v3617_v62  ;;  %v3687_v2 = vrot.slane %v3679_v60, 1  ;;  %v3711_v24 = vrot.slane %v3703_v5, 1 }
 0x558   : > { %v4481_v53 = vpop.permute.xlu1 %4480  ;;  %v4424_v3 = vrot.slane %v7836_v13, 1  ;;  %v4408_v36 = vsel %vm1198_vm3, %v4404_v57, 0.0  ;;  %v3645_v46 = vadd.f32 %v7776_v30, %v3632_v25  ;;  %v3669_v35 = vadd.f32 %v3661_v19, %v3644_v52 }
 0x559   : > { %v4412_v10 = vadd.f32 %v4408_v36, %v7836_v13  ;;  %v4415_v39 = vadd.f32 %v4411_v21, %v4408_v36  ;;  %v4447_v32 = vrot.slane %v7836_v13, 2  ;;  %v4405_v14 = vsel %vm1180_vm2, 0.0, %v4397_v42 }
 0x55a   : > { %v4406_v62 = vsel %vm1180_vm2, 0.0, %v4398_v22  ;;  %v4483_v16 = vpop.permute.xlu0 %4482  ;;  %v3670_v31 = vadd.f32 %v3662_v33, %v3645_v46  ;;  %v3694_v50 = vadd.f32 %v3686_v1, %v3669_v35  ;;  %v4409_v30 = vsel %vm1198_vm3, %v4405_v14, 0.0 }
 0x55b   : > { %v4431_v57 = vadd.f32 %v4423_v47, %v4415_v39  ;;  %v4425_v19 = vrot.slane %v4408_v36, 1  ;;  %v4448_v9 = vrot.slane %v4408_v36, 2  ;;  %v4416_v60 = vadd.f32 %v4412_v10, %v4409_v30 }
 0x55c   : > { %v4413_v5 = vadd.f32 %v4409_v30, %v4408_v36  ;;  %v4485_v21 = vpop.permute.xlu1 %4484  ;;  %v3695_v25 = vadd.f32 %v3687_v2, %v3670_v31  ;;  %v3719_v52 = vadd.f32 %v3711_v24, %v3694_v50  ;;  %v4410_v42 = vsel %vm1198_vm3, %v4406_v62, 0.0  ;;  %v8721_v31 = vld [vmem:[#allocation10_spill] sm:$0xff]  ;;  %v8722_v50 = vld [vmem:[#allocation11_spill] sm:$0xff] }
 0x55d   : > { %v4438_v13 = vadd.f32 %v4431_v57, %v4424_v3  ;;  %v4426_v15 = vrot.slane %v4409_v30, 1  ;;  %v4432_v22 = vadd.f32 %v4424_v3, %v4416_v60  ;;  %v4414_v26 = vadd.f32 %v4410_v42, %v4409_v30 }
 0x55e   : > { %v4417_v46 = vadd.f32 %v4413_v5, %v4410_v42  ;;  %v3720_v35 = vadd.f32 %v3712_v20, %v3695_v25  ;;  %v4449_v33 = vrot.slane %v4409_v30, 2  ;;  %v4436_v1 = vrot.slane %v4410_v42, 1  ;;  %v4495_v24 = vpop.permute.xlu0 %4494 }
 0x55f   : > { %v4442_v39 = vadd.f32 %v4438_v13, %v4425_v19  ;;  %v7864_v14 = vadd.f32 %v3736_v34, %v3719_v52  ;;  %v4439_v10 = vadd.f32 %v4432_v22, %v4425_v19  ;;  %v4418_v36 = vadd.f32 %v4414_v26, %v8714_v40 }
 0x560   : > { %v4433_v2 = vadd.f32 %v4425_v19, %v4417_v46  ;;  %v7870_v3 = vadd.f32 %v4479_v28, %v8721_v31  ;;  %v7873_v57 = vadd.f32 %v4481_v53, %v8722_v50  ;;  %v7876_v20 = vadd.f32 %v4483_v16, %v8723_v6  ;;  %v4497_v26 = vpop.permute.xlu1 %4496 }
 0x561   : > { %v4454_v62 = vadd.f32 %v4446_v61, %v4442_v39  ;;  %v4434_v30 = vadd.f32 %v4426_v15, %v4418_v36  ;;  %v4443_v60 = vadd.f32 %v4439_v10, %v4426_v15  ;;  %v7879_v5 = vadd.f32 %v4485_v21, %v7735_v41 }
 0x562   : > { %v4440_v34 = vadd.f32 %v4433_v2, %v4426_v15  ;;  %v4458_v19 = vrot.slane %v4410_v42, 2  ;;  %v4528_v52 = vcombine.low %v7870_v3, %v7873_v57  ;;  %v4506_v28 = vadd.f32 %v4495_v24, %v7738_v51  ;;  %v4468_v51 = vld [vmem:[%s8724_s28] sm:$0xf] }
 0x563   : > { %v4460_v25 = vadd.f32 %v4454_v62, %v4447_v32  ;;  %v4441_v13 = vadd.f32 %v4436_v1, %v4434_v30  ;;  %v4455_v22 = vadd.f32 %v4447_v32, %v4443_v60  ;;  %v4529_v16 = vcombine.low %v7876_v20, %v7879_v5 }
 0x564   : > { %v4444_v53 = vadd.f32 %v4440_v34, %v4436_v1  ;;  %v4507_v15 = vadd.f32 %v4497_v26, %v7741_v45  ;;  %v3642_v21 = vadd.f32 %v7816_v7, %v7798_v0  ;;  %v3643_v42 = vadd.f32 %v7828_v29, %v3630_v56  ;;  %v4469_v0 = vld [vmem:[%s8724_s28 + $0x4] sm:$0xf]  ;;  %v4471_v26 = vld [vmem:[%s8724_s28 + $0xc] sm:$0xf] }
 0x565   : > { %v4464_v46 = vadd.f32 %v4460_v25, %v4448_v9  ;;  %v4445_v39 = vadd.f32 %v4441_v13, %v4423_v47  ;;  %v4461_v1 = vadd.f32 %v4455_v22, %v4448_v9  ;;  %v3677_v10 = vmul.f32 %v7732_v48, %v7794_v59  ;;  %v4470_v48 = vld [vmem:[%s8724_s28 + $0x8] sm:$0xf] }
 0x566   : > { %v4456_v32 = vadd.f32 %v4448_v9, %v4444_v53  ;;  %v3745_v45 = vadd.f32 %v3737_v17, %v3720_v35  ;;  %v4536_v7 = vcombine.low %v4506_v28, %v4507_v15  ;;  %v8725_v29 = vrot.slane %v7697_v44, 1  ;;  %v4499_v53 = vpop.permute.xlu0 %4498  ;;  %v4501_v15 = vpop.permute.xlu1 %4500 }
 0x567   : > { %v8726_v56 = vrot.slane %v7781_v55, 1  ;;  %v4465_v2 = vadd.f32 %v4461_v1, %v4449_v33  ;;  %v4457_v9 = vadd.f32 %v4449_v33, %v4445_v39  ;;  %v3685_v62 = vrot.slane %v3677_v10, 1 }
 0x568   : > { %v3667_v47 = vadd.f32 %v8725_v29, %v3642_v21  ;;  %v4462_v24 = vadd.f32 %v4456_v32, %v4449_v33  ;;  %v4472_v30 = vmul.f32 %v4468_v51, %v4464_v46  ;;  %v8727_v8 = vrot.slane %v7784_v11, 1  ;;  %4538 = vrot.lane.b32.xlu0 %v4536_v7, %s8728_s21 }
 0x569   : > { %v3668_v36 = vadd.f32 %v8726_v56, %v3643_v42  ;;  %v3701_v35 = vmul.f32 %v7715_v54, %v7794_v59  ;;  %v3702_v44 = vmul.f32 %v7715_v54, %v7806_v58  ;;  %v4473_v55 = vmul.f32 %v4469_v0, %v4465_v2 }
 0x56a   : > { %v3692_v17 = vadd.f32 %v8727_v8, %v3667_v47  ;;  %v4466_v34 = vadd.f32 %v4462_v24, %v4458_v19  ;;  %v4463_v33 = vadd.f32 %v4458_v19, %v4457_v9  ;;  %v3752_v11 = vmul.f32 %v7761_v43, %v7794_v59 }
 0x56b   : > { %v3693_v60 = vadd.f32 %v3685_v62, %v3668_v36  ;;  %v3709_v25 = vrot.slane %v3701_v35, 1  ;;  %v3710_v28 = vrot.slane %v3702_v44, 1  ;;  %v3776_v13 = vmul.f32 %v7751_v4, %v7794_v59  ;;  %v4806_v44 = vld [vmem:[%s8148_s16] ss:$0 sm:$0xff] }
 0x56c   : > { %v4511_v54 = vadd.f32 %v7873_v57, %v4473_v55  ;;  %v4474_v22 = vmul.f32 %v4470_v48, %v4466_v34  ;;  %v4467_v19 = vadd.f32 %v4463_v33, %v4446_v61  ;;  %v3777_v46 = vmul.f32 %v7751_v4, %v7806_v58  ;;  %v4807_v34 = vld [vmem:[%s8148_s16 + $0x1] ss:$0 sm:$0xff] }
 0x56d   : > { %v8729_v21 = vrot.slane %v7843_v38, 2  ;;  %v4510_v39 = vadd.f32 %v7870_v3, %v4472_v30  ;;  %v3717_v51 = vadd.f32 %v3709_v25, %v3692_v17  ;;  %v3718_v1 = vadd.f32 %v3710_v28, %v3693_v60 }
 0x56e   : > { %v4475_v32 = vmul.f32 %v4471_v26, %v4467_v19  ;;  %v3760_v59 = vrot.slane %v3752_v11, 2  ;;  %v3784_v10 = vrot.slane %v3776_v13, 2  ;;  %v4508_v0 = vadd.f32 %v4499_v53, %v7754_v27  ;;  %v7967_v13 = vld [vmem:[%s8149_s17 + $0x1] ss:$0 sm:$0xff] }
 0x56f   : > { %v3770_v42 = vadd.f32 %v8729_v21, %v3745_v45  ;;  %v8730_v7 = vrot.slane %v7768_v63, 2  ;;  %v8731_v61 = vrot.slane %v7787_v23, 2  ;;  %v4509_v4 = vadd.f32 %v4501_v15, %v7756_v18  ;;  %v4808_v15 = vld [vmem:[%s8149_s17] ss:$0 sm:$0xff]  ;;  %v4813_v21 = vld [vmem:[%s8149_s17 + $0x7] ss:$0 sm:$0xff] }
 0x570   : > { %v3753_v38 = vmul.f32 %v7761_v43, %v7806_v58  ;;  %v4512_v45 = vadd.f32 %v7876_v20, %v4474_v22  ;;  %v4513_v56 = vadd.f32 %v7879_v5, %v4475_v32  ;;  %v3785_v36 = vrot.slane %v3777_v46, 2  ;;  %v7974_v46 = vld [vmem:[%s8149_s17 + $0x2] ss:$0 sm:$0xff] }
 0x571   : > { %v3742_v29 = vadd.f32 %v8730_v7, %v3717_v51  ;;  %v3743_v47 = vadd.f32 %v8731_v61, %v3718_v1  ;;  %v4548_v2 = vcombine.low %v4510_v39, %v4511_v54  ;;  %v8732_v24 = vrot.slane %v7790_v12, 2 }
 0x572   : > { %v4537_v63 = vcombine.low %v4508_v0, %v4509_v4  ;;  %v3761_v62 = vrot.slane %v3753_v38, 2  ;;  %v3786_v23 = vrot.slane %v7848_v49, 2  ;;  %v8733_v30 = vrot.slane %v7772_v37, 2  ;;  %v4104_v37 = vld [vmem:[%s8150_s18] sm:$0xff]  ;;  %v4105_v49 = vld [vmem:[%s8150_s18 + $0x8] sm:$0xff] }
 0x573   : > { %v3767_v27 = vadd.f32 %v8732_v24, %v3742_v29  ;;  %v3768_v9 = vadd.f32 %v3760_v59, %v3743_v47  ;;  %4550 = vrot.lane.b32.xlu0 %v4548_v2, %s8734_s25  ;;  %v4549_v8 = vcombine.low %v4512_v45, %v4513_v56  ;;  %v3959_v19 = vmul.f32 %v7967_v13, %v8714_v40  ;;  %v4810_v59 = vld [vmem:[%s8149_s17 + $0x6] ss:$0 sm:$0xff]  ;;  %v4809_v4 = vld [vmem:[%s8149_s17 + $0x3] ss:$0 sm:$0xff] }
 0x574   : > { %v3795_v18 = vadd.f32 %v8733_v30, %v3770_v42  ;;  %v3769_v48 = vadd.f32 %v3761_v62, %v7864_v14  ;;  %4540 = vrot.lane.b32.xlu1 %v4537_v63, %s8728_s21  ;;  %v5025_v14 = vpack.c.bf16 %v4105_v49, %v4104_v37  ;;  %v7984_v51 = vmul.f32 %v7974_v46, %v8714_v40  ;;  %s4664_s21 = sshll.u32 %s635_s0, 4 }
 0x575   : > { %v3792_v43 = vadd.f32 %v3784_v10, %v3767_v27  ;;  %v3793_v58 = vadd.f32 %v3785_v36, %v3768_v9  ;;  %v7991_v10 = vmul.f32 %v4813_v21, %v8714_v40  ;;  %v3949_v7 = vmul.f32 %v4810_v59, %v8714_v40  ;;  %v8014_v9 = vld [vmem:[%s8149_s17 + $0x8] ss:$0 sm:$0xff]  ;;  %s637_s1 = scalar_lea.vmem [#allocation2], %s4664_s21  ;;  %s5152_s21 = smov [#allocation2]  }
 0x576   : > { %v3794_v12 = vadd.f32 %v3786_v23, %v3769_v48  ;;  %5026 = vmatprep.subr.bf16.mxu1 %v5025_v14  ;;  %v3924_v45 = vmul.f32 %v4808_v15, %v8714_v40  ;;  %v3967_v56 = vrot.slane %v3959_v19, 1  ;;  %v4042_v27 = vrot.slane %v7984_v51, 2  ;;  %s4586_s23 = sshll.u32 %s637_s1, 4  ;;  %s8079_s23 = int_to_ptr.vmem [resolvable:$true] %s4586_s23 }
 0x577   : > { %v3802_v17 = vcombine.low %v3792_v43, %v3793_v58  ;;  %5028 = vmatpush3.bf16.msra.mxu1 %v5025_v14  ;;  %v4020_v23 = vrot.slane %v7991_v10, 1  ;;  %v8021_v30 = vmul.f32 %v8014_v9, %v8714_v40  ;;  %v4812_v58 = vld [vmem:[%s8149_s17 + $0x4] ss:$0 sm:$0xff] }
 0x578   : > { %v3803_v35 = vcombine.low %v3794_v12, %v3795_v18  ;;  %4552 = vrot.lane.b32.xlu1 %v4549_v8, %s8734_s25  ;;  %s4828_s25 = sshll.u32 %s5281_s2, 8 }
 0x579   : > { %4963 = vmatprep.mubr.msk.f32.mxu0 %vm1103_vm4, %v3802_v17  ;;  %s8084_s2 = scalar_lea.hbm %s8152_s20, %s4828_s25  ;;  %s5084_s25 = sshll.u32 %s5152_s21, 4  ;;  %s5085_s25 = int_to_ptr.vmem [resolvable:$false] %s5084_s25 }
 0x57a   : > { %4964 = vmatmul.mubr.msk.f32.vlgmr.msra.gmra.mrb[10].mxu0 %vm1103_vm4, %v3803_v35  ;;  %s5086_s26 = scalar_lea.vmem %s5085_s25, 512  ;;  %p5087_p0 = scmp.lt.s32.totalorder %s8079_s23, %s5085_s25 }
 0x64d   : > { %v4965_v55 = vpop.f32.mrb[10].mxu0 }
 0x64e   : > { %v3889_v33 = vmul.f32 %v4965_v55, %v4806_v44  ;;  %v3874_v60 = vpop.f32.mrb[11].mxu0 }
 0x64f   : > { %v3888_v26 = vmul.f32 %v4806_v44, %v3874_v60 }
 0x650   : > { %v3896_v25 = vadd.f32 %v4807_v34, %v3889_v33 }
 0x651   : > { %v3895_v28 = vadd.f32 %v4807_v34, %v3888_v26 }
 0x652   : > { %v3898_v11 = vmax.f32 %v3896_v25, 0.0  ;;  %v4815_v25 = vld [vmem:[%s8149_s17 + $0x5] ss:$0 sm:$0xff] }
 0x653   : > { %v3897_v53 = vmax.f32 %v3895_v28, 0.0 }
 0x654   : > { %v3902_v54 = vcombine.high %v3898_v11, %v3898_v11  ;;  %v3905_v22 = vrot.slane %v3898_v11, 7 }
 0x655   : > { %v3901_v42 = vcombine.high %v3897_v53, %v3897_v53  ;;  %v3903_v39 = vrot.slane %v3897_v53, 7 }
 0x656   : > { %v3906_v1 = vrot.slane %v3902_v54, 7  ;;  %v3913_v32 = vsel %vm1180_vm2, 0.0, %v3905_v22 }
 0x657   : > { %v7994_v0 = vsel %vm1198_vm3, %v3913_v32, 0.0  ;;  %v3904_v29 = vrot.slane %v3901_v42, 7  ;;  %v3911_v61 = vsel %vm1180_vm2, 0.0, %v3903_v39 }
 0x658   : > { %v3914_v47 = vsel %vm1180_vm2, 0.0, %v3906_v1  ;;  %v3962_v38 = vmul.f32 %v7967_v13, %v7994_v0  ;;  %v3915_v24 = vsel %vm1198_vm3, %v3911_v61, 0.0  ;;  %v3927_v63 = vmul.f32 %v4808_v15, %v7994_v0 }
 0x659   : > { %v8006_v36 = vsel %vm1198_vm3, %v3914_v47, 0.0  ;;  %v3912_v2 = vsel %vm1180_vm2, 0.0, %v3904_v29  ;;  %v3935_v18 = vmul.f32 %v4809_v4, %v7994_v0  ;;  %v3947_v8 = vmul.f32 %v4810_v59, %v7994_v0 }
 0x65a   : > { %v3936_v62 = vmul.f32 %v4809_v4, %v8006_v36  ;;  %v3970_v43 = vrot.slane %v3962_v38, 1  ;;  %v3916_v48 = vsel %vm1198_vm3, %v3912_v2, 0.0  ;;  %v3987_v12 = vmul.f32 %v4812_v58, %v8006_v36 }
 0x65b   : > { %v8031_v35 = vmul.f32 %v4813_v21, %v8006_v36  ;;  %v3933_v37 = vmul.f32 %v4809_v4, %v3915_v24  ;;  %v3925_v40 = vmul.f32 %v4808_v15, %v3915_v24  ;;  %v3934_v49 = vmul.f32 %v4809_v4, %v3916_v48 }
 0x65c   : > { %v3940_v17 = vadd.f32 %v3936_v62, %v3927_v63  ;;  %v3946_v14 = vmul.f32 %v4810_v59, %v3916_v48  ;;  %v3960_v44 = vmul.f32 %v7967_v13, %v3915_v24  ;;  %v3984_v33 = vmul.f32 %v4812_v58, %v3915_v24 }
 0x65d   : > { %v3937_v34 = vadd.f32 %v3933_v37, %v3924_v45  ;;  %v3985_v60 = vmul.f32 %v4812_v58, %v3916_v48  ;;  %v3948_v26 = vmul.f32 %v4810_v59, %v8006_v36  ;;  %v3938_v28 = vadd.f32 %v3934_v49, %v3925_v40 }
 0x65e   : > { %v3953_v55 = vadd.f32 %v3949_v7, %v3940_v17  ;;  %v4009_v11 = vmul.f32 %v4813_v21, %v3916_v48  ;;  %v4010_v53 = vmul.f32 %v4813_v21, %v7994_v0  ;;  %v4062_v22 = vmul.f32 %v4815_v25, %v8006_v36 }
 0x65f   : > { %v3926_v19 = vmul.f32 %v4808_v15, %v3916_v48  ;;  %v3950_v42 = vadd.f32 %v3946_v14, %v3937_v34  ;;  %v3995_v39 = vrot.slane %v3987_v12, 1  ;;  %v3951_v51 = vadd.f32 %v3947_v8, %v3938_v28 }
 0x660   : > { %v3978_v54 = vadd.f32 %v3970_v43, %v3953_v55  ;;  %v3968_v1 = vrot.slane %v3960_v44, 1  ;;  %v4035_v32 = vmul.f32 %v7974_v46, %v3915_v24  ;;  %v4019_v59 = vrot.slane %v8031_v35, 1 }
 0x661   : > { %v3992_v10 = vrot.slane %v3984_v33, 1  ;;  %v3975_v7 = vadd.f32 %v3967_v56, %v3950_v42  ;;  %v3993_v29 = vrot.slane %v3985_v60, 1  ;;  %v4017_v4 = vrot.slane %v4009_v11, 1 }
 0x662   : > { %v4003_v61 = vadd.f32 %v3995_v39, %v3978_v54  ;;  %v3976_v47 = vadd.f32 %v3968_v1, %v3951_v51  ;;  %v4018_v38 = vrot.slane %v4010_v53, 1  ;;  %v4059_v45 = vmul.f32 %v4815_v25, %v3915_v24 }
 0x663   : > { %v4000_v21 = vadd.f32 %v3992_v10, %v3975_v7  ;;  %v4060_v2 = vmul.f32 %v4815_v25, %v3916_v48  ;;  %v3939_v63 = vadd.f32 %v3935_v18, %v3926_v19  ;;  %v4043_v62 = vrot.slane %v4035_v32, 2 }
 0x664   : > { %v4001_v15 = vadd.f32 %v3993_v29, %v3976_v47  ;;  %v4084_v43 = vmul.f32 %v8014_v9, %v3916_v48  ;;  %v3961_v8 = vmul.f32 %v7967_v13, %v3916_v48  ;;  %v4085_v12 = vmul.f32 %v8014_v9, %v7994_v0 }
 0x665   : > { %v4025_v17 = vadd.f32 %v4017_v4, %v4000_v21  ;;  %v3952_v56 = vadd.f32 %v3948_v26, %v3939_v63  ;;  %v3986_v35 = vmul.f32 %v4812_v58, %v7994_v0  ;;  %v4028_v49 = vadd.f32 %v4020_v23, %v4003_v61 }
 0x666   : > { %v4026_v37 = vadd.f32 %v4018_v38, %v4001_v15  ;;  %v3969_v40 = vrot.slane %v3961_v8, 1  ;;  %v4037_v24 = vmul.f32 %v7974_v46, %v7994_v0  ;;  %v4067_v14 = vrot.slane %v4059_v45, 2 }
 0x667   : > { %v4050_v18 = vadd.f32 %v4042_v27, %v4025_v17  ;;  %v4068_v44 = vrot.slane %v4060_v2, 2  ;;  %v4036_v55 = vmul.f32 %v7974_v46, %v3916_v48  ;;  %v3994_v33 = vrot.slane %v3986_v35, 1 }
 0x668   : > { %v4051_v34 = vadd.f32 %v4043_v62, %v4026_v37  ;;  %v3977_v13 = vadd.f32 %v3969_v40, %v3952_v56  ;;  %v4045_v60 = vrot.slane %v4037_v24, 2  ;;  %v4092_v11 = vrot.slane %v4084_v43, 2  ;;  %v4541_v62 = vpop.permute.xlu1 %4540  ;;  %v4539_v43 = vpop.permute.xlu0 %4538 }
 0x669   : > { %v4075_v28 = vadd.f32 %v4067_v14, %v4050_v18  ;;  %v4093_v26 = vrot.slane %v4085_v12, 2  ;;  %v4061_v58 = vmul.f32 %v4815_v25, %v7994_v0  ;;  %v4070_v19 = vrot.slane %v4062_v22, 2 }
 0x66a   : > { %v4076_v53 = vadd.f32 %v4068_v44, %v4051_v34  ;;  %v4002_v54 = vadd.f32 %v3994_v33, %v3977_v13  ;;  %v4053_v23 = vadd.f32 %v4045_v60, %v4028_v49  ;;  %v4044_v42 = vrot.slane %v4036_v55, 2 }
 0x66b   : > { %v4086_v27 = vmul.f32 %v8014_v9, %v8006_v36  ;;  %v4095_v39 = vrot.slane %v8021_v30, 2  ;;  %v4100_v46 = vadd.f32 %v4092_v11, %v4075_v28  ;;  %v4069_v7 = vrot.slane %v4061_v58, 2  ;;  %v4819_v36 = vld [vmem:[%s8151_s19] ss:$0 sm:$0xff]  ;;  %v4820_v30 = vld [vmem:[%s8151_s19 + $0x1] ss:$0 sm:$0xff] }
 0x66c   : > { %v4101_v48 = vadd.f32 %v4093_v26, %v4076_v53  ;;  %v4027_v51 = vadd.f32 %v4019_v59, %v4002_v54  ;;  %v4078_v1 = vadd.f32 %v4070_v19, %v4053_v23  ;;  %v4519_v38 = vcombine.low %v8723_v6, %v7735_v41  ;;  %v4553_v8 = vpop.permute.xlu1 %4552  ;;  %v4551_v17 = vpop.permute.xlu0 %4550 }
 0x66d   : > { %v4094_v25 = vrot.slane %v4086_v27, 2  ;;  %v4518_v45 = vcombine.low %v8721_v31, %v8722_v50  ;;  %v4565_v41 = vsel %vm1103_vm4, %v4529_v16, %v4541_v62  ;;  %v4564_v31 = vsel %vm1103_vm4, %v4528_v52, %v4539_v43 }
 0x66e   : > { %v4110_v32 = vcombine.low %v4100_v46, %v4101_v48  ;;  %v4052_v10 = vadd.f32 %v4044_v42, %v4027_v51  ;;  %v4103_v29 = vadd.f32 %v4095_v39, %v4078_v1  ;;  %v4567_v50 = vsel %vm668_vm0, %v4565_v41, %v4553_v8 }
 0x66f   : > { %v4566_v20 = vsel %vm668_vm0, %v4564_v31, %v4551_v17 }
 0x670   : > { %4970 = vmatprep.mubr.msk.f32.mxu1 %vm1103_vm4, %v4110_v32  ;;  %v4077_v0 = vadd.f32 %v4069_v7, %v4052_v10 }
 0x672   : > { %v4102_v61 = vadd.f32 %v4094_v25, %v4077_v0 }
 0x674   : > { %v4111_v22 = vcombine.low %v4102_v61, %v4103_v29 }
 0x676   : > { %4971 = vmatmul.mubr.msk.f32.vlgmr.msra.gmra.mrb[10].mxu1 %vm1103_vm4, %v4111_v22 }
 0x749   : > { %v4972_v9 = vpop.f32.mrb[10].mxu1 }
 0x74a   : > { %v4197_v59 = vmul.f32 %v4972_v9, %v4819_v36  ;;  %v4182_v47 = vpop.f32.mrb[11].mxu1 }
 0x74b   : > { %v4196_v4 = vmul.f32 %v4819_v36, %v4182_v47 }
 0x74c   : > { %v4204_v21 = vadd.f32 %v4820_v30, %v4197_v59 }
 0x74d   : > { %v4203_v2 = vadd.f32 %v4820_v30, %v4196_v4 }
 0x74e   : > { %v4523_v63 = vadd.f32 %v4519_v38, %v4204_v21 }
 0x74f   : > { %v4522_v15 = vadd.f32 %v4518_v45, %v4203_v2 }
 0x750   : > { %4560 = vrot.lane.b32.xlu1 %v4523_v63, %s8735_s30 }
 0x751   : > { %4558 = vrot.lane.b32.xlu0 %v4522_v15, %s8735_s30  ;;  %s5080_s30 = scalar_lea.vmem %s8079_s23, 256 }
 0x752   : > { %p5081_p11 = scmp.ne.s32.totalorder %s8079_s23, %s5080_s30  ;;  %p5088_p1 = scmp.lt.s32.totalorder %s5086_s26, %s5080_s30 }
 0x754   : > { %p5082_p12 = pnand %p5081_p11, %p5298_p5  ;;  %p5089_p2 = por %p5088_p1, %p5087_p0 }
 0x756   : > { %p5083_p13 = pneg %p5082_p12 }
 0x758   : > { %p5090_p3 = pnand %p5089_p2, %p5083_p13 }
 0x7c2   : > { %v4561_v6 = vpop.permute.xlu1 %4560 }
 0x7c3   : > { %v4569_v5 = vsel %vm1120_vm5, %v4567_v50, %v4561_v6  ;;  %v4559_v3 = vpop.permute.xlu0 %4558 }
 0x7c4   : > { %4571 = vst.msk [vmem:[%s637_s1 + $0x8] sm:$0xff] %vm2261_vm6, %v4569_v5  ;;  %v4568_v57 = vsel %vm1120_vm5, %v4566_v20, %v4559_v3 }
 0x7c5   : > { %4570 = vst.msk [vmem:[%s637_s1] sm:$0xff] %vm2261_vm6, %v4568_v57 }
 0x7c6   : > { %5093 = shalt.err (!%p5090_p3)
}
 0x7c7   : > { %s5094_s0 = scalar_lea.hbm %s8084_s2, 256  ;;  %s5098_s21 = scalar_lea.hbm %s8152_s20, 512 }
 0x7c8   : > { %p5095_p4 = scmp.ne.s32.totalorder %s8084_s2, %s5094_s0  ;;  %p5099_p9 = scmp.lt.u32.totalorder %s8084_s2, %s8152_s20 }
 0x7c9   : > { %p5100_p10 = scmp.lt.u32.totalorder %s5098_s21, %s5094_s0  ;;  %p5102_p12 = scmp.lt.u32.totalorder %s5094_s0, %s8084_s2 }
 0x7ca   : > { %p5096_p7 = pnand %p5095_p4, %p5298_p5 }
 0x7cb   : > { %p5101_p11 = por %p5100_p10, %p5099_p9 }
 0x7cc   : > { %p5097_p8 = pneg %p5096_p7 }
 0x7cd   : > { %p5103_p13 = por %p5102_p12, %p5101_p11 }
 0x7cf   : > { %p5104_p0 = pnand %p5103_p13, %p5097_p8 }
 0x7d1   : > { %5107 = shalt.err (!%p5104_p0)
}
 0x7d2   : > { %s5153_s30 = smov 128   ;;  %s5154_s26 = smov 8  }
 0x7d3   : > { %5029 = dma.vmem_to_hbm [thread:$0]  (%p5298_p5), %s8079_s23, 256, %s8084_s2, %s8091_s29, %s5153_s30, %s5153_s30, %s5154_s26  }
 0x7d4 PF: > { %s8736_s1 = sld [smem:[#allocation5_spill]]  ;;  %p5035_p1 = scmp.ge.s32.totalorder %s5142_s24, 2 }
 0x7d6   : > { %p5032_p2 = pnand %p5035_p1, %p5302_p6 }
 0x7da   : > { %s4601_s5 = sand.u32 1, %s8736_s1  }
 0x7db   : > { %s4602_s0 = scalar_lea.sflag [#allocation3], %s4601_s5 }
 0x7dc   : > { %5125 = dma.done.wait (!%p5032_p2), %s4602_s0, 256  }
 0x7dd   : > { %5127 = vsyncadd (!%p5032_p2), %s4602_s0, 4294967040  ;;  %s8738_s24 = sld [smem:[#allocation7_spill]]  ;;  %s8739_s21 = sld [smem:[#allocation6_spill]] }
 0x7de   : > { %s8740_s23 = sld [smem:[#allocation8_spill]]  ;;  %s8741_s1 = smov %s5134_s22 }
 0x7e3   : > { %p30_p3 = scmp.ge.s32.totalorder %s8738_s24, 4   ;;  %s8742_s22 = smov %s8739_s21 }
 0x7e5   :  { %32 = sbr.rel (!%p30_p3) target bundleno = 10 (0xa), region = 138 }
 0x7ec   :  { %4607 = vsyncpa [#allocation3], 1 }
 0x7ed   :  { %4609 = vsyncpa [#allocation3 + $0x1], 1 }

</bundles_post_ra>
